<compile_context>
chip_gen: v7x
topology: tpu7x:2x2x1
jax: 0.10.0
libtpu: 0.0.40
codegen_flags: <defaults>
</compile_context>

<pallas_src>
import functools
import math

import numpy as np
import jax
import jax.numpy as jnp
from jax.experimental import pallas as pl
from jax.experimental.pallas import tpu as pltpu

# ---------------- config (small synthetic shapes) ----------------
D_MODEL = 32       # d_model
NHEAD = 4          # attention heads
HEAD_DIM = D_MODEL // NHEAD
DIM_FF = 64        # FFN hidden dim
NUM_LAYERS = 2     # decoder layers
NUM_QUERIES = 8    # NQ
BATCH = 2          # B
MEM_LEN = 16       # S
QUERY_DIM = 2      # query_dim
LN_EPS = 1e-5

# ---- row indices: per-layer (L, N_WD, D, D) weight stack ----
(W_SA_QC, W_SA_KC, W_SA_V, W_SA_QP, W_SA_KP, W_SA_OUT,
 W_CA_QC, W_CA_KC, W_CA_V, W_CA_KP, W_CA_QSINE, W_CA_OUT, W_CA_QP) = range(13)
N_WD = 13

# ---- row indices: per-layer (L, N_VD, D) bias / LayerNorm stack ----
(V_SA_QC, V_SA_KC, V_SA_V, V_SA_QP, V_SA_KP, V_SA_OUT,
 V_CA_QC, V_CA_KC, V_CA_V, V_CA_KP, V_CA_QSINE, V_CA_OUT, V_CA_QP,
 V_LN1_G, V_LN1_B, V_LN2_G, V_LN2_B, V_LN3_G, V_LN3_B, V_FF2_B) = range(20)
N_VD = 20

# ---- rows: shared (N_SM, D, D) matrix stack ----
(SM_RPH_W1, SM_RPH_W2, SM_QS_W1, SM_QS_W2, SM_BB_W1, SM_BB_W2, SM_BB_W3) = range(7)
N_SM = 7

# ---- rows: shared (N_SV, D) vector stack (biases, final norm, sine consts) ----
(SV_RPH_B1, SV_RPH_B2, SV_QS_B1, SV_QS_B2, SV_BB_B1, SV_BB_B2, SV_BB_B3,
 SV_NORM_G, SV_NORM_B, SV_SINE_INV, SV_SINE_EVEN, SV_SINE_XSEL) = range(12)
N_SV = 12


# ======================= fused decoder kernel =======================

def _decoder_kernel(tgt_ref, mem_ref, pos_ref, refu_ref, svec_ref, smat_ref,
                    lw_ref, lv_ref, wff1_ref, wff2_ref, bff1_ref,
                    hs_ref, refs_ref,
                    x_st, ref_st,
                    *, nhead, eps, query_dim):
    """One decoder layer for one batch element.  grid = (B, L).

    The decoder state and the reference points are carried across the layer
    axis (innermost, "arbitrary") in VMEM scratch.
    """
    NQ, D = tgt_ref.shape
    S = mem_ref.shape[0]
    H = nhead
    hd = D // H

    layer = pl.program_id(1)
    gate = (layer == 0).astype(jnp.float32)      # 1.0 on layer 0, else 0.0

    # ---- lazy parameter access (loaded at point of use, straight from refs) --
    def sv(i):              # shared (1, D) vector row
        return svec_ref[i:i + 1, :]

    def sm(i):              # shared (D, D) matrix
        return smat_ref[i, :, :]

    def lw(i):              # this layer's (D, D) matrix
        return lw_ref[0, i, :, :]

    def lv(i):              # this layer's (1, D) vector row
        return lv_ref[0, i:i + 1, :]

    def mm(a, b):
        return jnp.dot(a, b, preferred_element_type=jnp.float32)

    def layer_norm(v, g, b):
        m = jnp.mean(v, axis=-1, keepdims=True)
        c = v - m
        var = jnp.mean(c * c, axis=-1, keepdims=True)
        return c * jax.lax.rsqrt(var + eps) * g + b

    def softmax_lastdim(s):
        s = s - jnp.max(s, axis=-1, keepdims=True)
        e = jnp.exp(s)
        return e / jnp.sum(e, axis=-1, keepdims=True)

    def sigmoid(v):
        return 1.0 / (1.0 + jnp.exp(-v))

    def inv_sigmoid(v):
        v = jnp.clip(v, 0.0, 1.0)
        return jnp.log(jnp.maximum(v, 1e-3) / jnp.maximum(1.0 - v, 1e-3))

    # ---- layer 0: initialize the carried state --------------------------------
    @pl.when(layer == 0)
    def _():
        x_st[...] = tgt_ref[...]
        ref_st[...] = sigmoid(refu_ref[...])

    x = x_st[...]                       # (NQ, D)      decoder state
    refp = ref_st[...]                  # (1, NQ, 2)   reference points (sigmoid space)
    # reference points that feed this layer (PyTorch ref_points list semantics)
    refs_ref[...] = refp.reshape(1, 1, NQ, query_dim)

    # ---- sine positional embedding of the reference points (in-kernel, EUP) --
    xsel = sv(SV_SINE_XSEL)
    coord = refp[:, :, 0:1] * xsel + refp[:, :, 1:2] * (1.0 - xsel)   # (1, NQ, D)
    arg = coord * sv(SV_SINE_INV)
    even = sv(SV_SINE_EVEN)
    qse_raw = (even * jnp.sin(arg) + (1.0 - even) * jnp.cos(arg)).reshape(NQ, D)

    # ---- conditioning heads ----------------------------------------------------
    # query_pos = ref_point_head(query_sine_embed)
    qp = jnp.maximum(mm(qse_raw, sm(SM_RPH_W1)) + sv(SV_RPH_B1), 0.0)
    qp = mm(qp, sm(SM_RPH_W2)) + sv(SV_RPH_B2)                        # (NQ, D)
    # query_scale (cond_elewise); pos_transformation == 1 on layer 0
    qsc = jnp.maximum(mm(x, sm(SM_QS_W1)) + sv(SV_QS_B1), 0.0)
    qsc = mm(qsc, sm(SM_QS_W2)) + sv(SV_QS_B2)
    qse = qse_raw * (gate + (1.0 - gate) * qsc)

    # ---- self attention (1/sqrt(hd) pre-folded into q-side weights) -----------
    q_sa = (mm(x, lw(W_SA_QC)) + lv(V_SA_QC)
            + mm(qp, lw(W_SA_QP)) + lv(V_SA_QP)).reshape(1, NQ, D)
    k_sa = (mm(x, lw(W_SA_KC)) + lv(V_SA_KC)
            + mm(qp, lw(W_SA_KP)) + lv(V_SA_KP)).reshape(1, NQ, D)
    v_sa = (mm(x, lw(W_SA_V)) + lv(V_SA_V)).reshape(1, NQ, D)

    w_sa_out = lw(W_SA_OUT)
    sa = lv(V_SA_OUT)                    # out-proj bias; head contributions added below
    # TODO(synk): at production sizes move heads onto a grid axis / 4-D batched einsum.
    for h in range(H):
        hsl = slice(h * hd, (h + 1) * hd)
        s = jnp.einsum('bqd,bkd->bqk', q_sa[:, :, hsl], k_sa[:, :, hsl],
                       preferred_element_type=jnp.float32)
        p = softmax_lastdim(s)
        o_h = jnp.einsum('bqk,bkd->bqd', p, v_sa[:, :, hsl],
                         preferred_element_type=jnp.float32).reshape(NQ, hd)
        sa = sa + mm(o_h, w_sa_out[hsl, :])          # out-proj folded per head (no concat)
    x = layer_norm(x + sa, lv(V_LN1_G), lv(V_LN1_B))

    # ---- conditional cross attention (1/sqrt(2*hd) pre-folded into q side) ----
    mem = mem_ref[...]                               # (S, D)
    q_c = mm(x, lw(W_CA_QC)) + lv(V_CA_QC)
    q_c = q_c + gate * (mm(qp, lw(W_CA_QP)) + lv(V_CA_QP))   # only on layer 0
    q_s = mm(qse, lw(W_CA_QSINE)) + lv(V_CA_QSINE)
    k_c = mm(mem, lw(W_CA_KC)) + lv(V_CA_KC)
    k_p = mm(pos_ref[...], lw(W_CA_KP)) + lv(V_CA_KP)
    v_ca = (mm(mem, lw(W_CA_V)) + lv(V_CA_V)).reshape(1, S, D)

    qc3 = q_c.reshape(1, NQ, D)
    qs3 = q_s.reshape(1, NQ, D)
    kc3 = (k_c + gate * k_p).reshape(1, S, D)        # layer 0: k = k_content + k_pos
    kp3 = k_p.reshape(1, S, D)

    w_ca_out = lw(W_CA_OUT)
    ca = lv(V_CA_OUT)
    for h in range(H):
        hsl = slice(h * hd, (h + 1) * hd)
        s = (jnp.einsum('bqd,bkd->bqk', qc3[:, :, hsl], kc3[:, :, hsl],
                        preferred_element_type=jnp.float32)
             + jnp.einsum('bqd,bkd->bqk', qs3[:, :, hsl], kp3[:, :, hsl],
                          preferred_element_type=jnp.float32))
        p = softmax_lastdim(s)
        o_h = jnp.einsum('bqk,bkd->bqd', p, v_ca[:, :, hsl],
                         preferred_element_type=jnp.float32).reshape(NQ, hd)
        ca = ca + mm(o_h, w_ca_out[hsl, :])
    x = layer_norm(x + ca, lv(V_LN2_G), lv(V_LN2_B))

    # ---- FFN --------------------------------------------------------------------
    ff = jnp.maximum(mm(x, wff1_ref[0, :, :]) + bff1_ref[0, :, :], 0.0)
    ff = mm(ff, wff2_ref[0, :, :]) + lv(V_FF2_B)
    x = layer_norm(x + ff, lv(V_LN3_G), lv(V_LN3_B))

    # ---- carried state + per-layer outputs ---------------------------------------
    x_st[...] = x
    hs_ref[...] = layer_norm(x, sv(SV_NORM_G), sv(SV_NORM_B)).reshape(1, 1, NQ, D)

    # shared bbox head (last linear zero-init) -> next reference points
    bb = jnp.maximum(mm(x, sm(SM_BB_W1)) + sv(SV_BB_B1), 0.0)
    bb = jnp.maximum(mm(bb, sm(SM_BB_W2)) + sv(SV_BB_B2), 0.0)
    bb = mm(bb, sm(SM_BB_W3)) + sv(SV_BB_B3)          # (NQ, D); cols >= query_dim are 0
    bb2 = bb[:, 0:query_dim].reshape(1, NQ, query_dim)
    ref_st[...] = sigmoid(bb2 + inv_sigmoid(refp))


# ======================= decoder forward (one pallas_call) =======================

def transformer_decoder_forward(packed, tgt, memory, pos, refpoints_unsigmoid):
    NQ, B, D = tgt.shape
    S = memory.shape[0]
    L = packed['lw'].shape[0]

    # one-time transpose to batch-major slabs (rows = b*len + i)
    tgt2 = tgt.transpose(1, 0, 2).reshape(B * NQ, D)
    mem2 = memory.transpose(1, 0, 2).reshape(B * S, D)
    pos2 = pos.transpose(1, 0, 2).reshape(B * S, D)
    refu = refpoints_unsigmoid.transpose(1, 0, 2)          # (B, NQ, 2)

    kernel = functools.partial(_decoder_kernel, nhead=NHEAD, eps=LN_EPS,
                               query_dim=QUERY_DIM)

    grid = (B, L)   # batch: parallel (megacore), layers: arbitrary (carried state)

    in_specs = [
        pl.BlockSpec((NQ, D), lambda b, l: (b, 0)),                  # tgt rows of batch b
        pl.BlockSpec((S, D), lambda b, l: (b, 0)),                   # memory rows of b
        pl.BlockSpec((S, D), lambda b, l: (b, 0)),                   # pos rows of b
        pl.BlockSpec((1, NQ, QUERY_DIM), lambda b, l: (b, 0, 0)),    # refpoints (unsigmoid)
        pl.BlockSpec((N_SV, D), lambda b, l: (0, 0)),                # shared vectors
        pl.BlockSpec((N_SM, D, D), lambda b, l: (0, 0, 0)),          # shared matrices
        pl.BlockSpec((1, N_WD, D, D), lambda b, l: (l, 0, 0, 0)),    # layer DxD weights
        pl.BlockSpec((1, N_VD, D), lambda b, l: (l, 0, 0)),          # layer biases / LN
        pl.BlockSpec((1, D, DIM_FF), lambda b, l: (l, 0, 0)),        # layer FFN w1
        pl.BlockSpec((1, DIM_FF, D), lambda b, l: (l, 0, 0)),        # layer FFN w2
        pl.BlockSpec((1, 1, DIM_FF), lambda b, l: (l, 0, 0)),        # layer FFN b1
    ]
    out_specs = (
        pl.BlockSpec((1, 1, NQ, D), lambda b, l: (l, b, 0, 0)),           # hs
        pl.BlockSpec((1, 1, NQ, QUERY_DIM), lambda b, l: (l, b, 0, 0)),   # ref points
    )
    out_shape = (
        jax.ShapeDtypeStruct((L, B, NQ, D), jnp.float32),
        jax.ShapeDtypeStruct((L, B, NQ, QUERY_DIM), jnp.float32),
    )

    hs, refs = pl.pallas_call(
        kernel,
        grid=grid,
        in_specs=in_specs,
        out_specs=out_specs,
        out_shape=out_shape,
        scratch_shapes=[
            pltpu.VMEM((NQ, D), jnp.float32),               # carried decoder state
            pltpu.VMEM((1, NQ, QUERY_DIM), jnp.float32),    # carried reference points
        ],
        compiler_params=pltpu.CompilerParams(
            dimension_semantics=("parallel", "arbitrary"),
            vmem_limit_bytes=32 * 1024 * 1024),
    )(tgt2, mem2, pos2, refu, packed['svec'], packed['smat'],
      packed['lw'], packed['lv'], packed['wff1'], packed['wff2'], packed['bff1'])

    return hs, refs


# ======================= parameter init & packing =======================

def init_params(key):
    keys = iter(jax.random.split(key, 256))

    def lin(din, dout, zero=False):
        if zero:
            return (jnp.zeros((din, dout), jnp.float32),
                    jnp.zeros((dout,), jnp.float32))
        w = 0.05 * jax.random.normal(next(keys), (din, dout), jnp.float32)
        b = 0.05 * jax.random.normal(next(keys), (dout,), jnp.float32)
        return w, b

    def ln():
        return (jnp.ones((D_MODEL,), jnp.float32),
                jnp.zeros((D_MODEL,), jnp.float32))

    layers = []
    for layer_id in range(NUM_LAYERS):
        layers.append({
            'sa_qcontent': lin(D_MODEL, D_MODEL), 'sa_qpos': lin(D_MODEL, D_MODEL),
            'sa_kcontent': lin(D_MODEL, D_MODEL), 'sa_kpos': lin(D_MODEL, D_MODEL),
            'sa_v': lin(D_MODEL, D_MODEL), 'sa_out': lin(D_MODEL, D_MODEL),
            'norm1': ln(),
            'ca_qcontent': lin(D_MODEL, D_MODEL),
            # keep_query_pos=False: ca_qpos_proj is None for layers >= 1
            'ca_qpos': lin(D_MODEL, D_MODEL) if layer_id == 0 else None,
            'ca_kcontent': lin(D_MODEL, D_MODEL), 'ca_kpos': lin(D_MODEL, D_MODEL),
            'ca_v': lin(D_MODEL, D_MODEL), 'ca_qpos_sine': lin(D_MODEL, D_MODEL),
            'ca_out': lin(D_MODEL, D_MODEL),
            'norm2': ln(),
            'linear1': lin(D_MODEL, DIM_FF), 'linear2': lin(DIM_FF, D_MODEL),
            'norm3': ln(),
        })

    return {
        'layers': layers,
        'ref_point_head': [lin(D_MODEL, D_MODEL), lin(D_MODEL, D_MODEL)],   # MLP(D,D,D,2)
        'query_scale': [lin(D_MODEL, D_MODEL), lin(D_MODEL, D_MODEL)],      # MLP(D,D,D,2)
        'bbox_embed': [lin(D_MODEL, D_MODEL), lin(D_MODEL, D_MODEL),
                       lin(D_MODEL, QUERY_DIM, zero=True)],                 # MLP(D,D,2,3)
        'norm': ln(),
    }


def pack_params(params):
    """Stack weights per layer, pack biases/LN into slabs, fold softmax scales."""
    D = D_MODEL
    scale_sa = 1.0 / math.sqrt(HEAD_DIM)          # self-attn head dim
    scale_ca = 1.0 / math.sqrt(2 * HEAD_DIM)      # cross-attn head dim is 2*hd

    def padD(v):
        return jnp.pad(v, (0, D - v.shape[0]))

    # shared matrices (bbox last layer padded to D output cols with zeros)
    bb_w3, bb_b3 = params['bbox_embed'][2]
    bb_w3p = jnp.pad(bb_w3, ((0, 0), (0, D - bb_w3.shape[1])))
    smat = jnp.stack([
        params['ref_point_head'][0][0], params['ref_point_head'][1][0],
        params['query_scale'][0][0], params['query_scale'][1][0],
        params['bbox_embed'][0][0], params['bbox_embed'][1][0], bb_w3p])

    # shared vectors + constants of gen_sineembed_for_position
    each = D // 2
    dim_t = 10000.0 ** (2.0 * np.floor(np.arange(each) / 2.0) / each)
    sine_inv = np.tile(2.0 * np.pi / dim_t, 2).astype(np.float32)       # scale / dim_t
    sine_even = (np.arange(D) % 2 == 0).astype(np.float32)              # sin vs cos lanes
    sine_xsel = (np.arange(D) < each).astype(np.float32)                # x-half vs y-half
    svec = jnp.stack([
        params['ref_point_head'][0][1], params['ref_point_head'][1][1],
        params['query_scale'][0][1], params['query_scale'][1][1],
        params['bbox_embed'][0][1], params['bbox_embed'][1][1], padD(bb_b3),
        params['norm'][0], params['norm'][1],
        jnp.asarray(sine_inv), jnp.asarray(sine_even), jnp.asarray(sine_xsel)])

    lw_list, lv_list, wff1_list, wff2_list, bff1_list = [], [], [], [], []
    for layer_id in range(NUM_LAYERS):
        lp = params['layers'][layer_id]

        def w(k):
            return lp[k][0]

        def b(k):
            return lp[k][1]

        if lp['ca_qpos'] is not None:
            ca_qp_w = lp['ca_qpos'][0] * scale_ca
            ca_qp_b = lp['ca_qpos'][1] * scale_ca
        else:                                     # padded (unused) for layers >= 1
            ca_qp_w = jnp.zeros((D, D), jnp.float32)
            ca_qp_b = jnp.zeros((D,), jnp.float32)

        lw_list.append(jnp.stack([
            w('sa_qcontent') * scale_sa, w('sa_kcontent'), w('sa_v'),
            w('sa_qpos') * scale_sa, w('sa_kpos'), w('sa_out'),
            w('ca_qcontent') * scale_ca, w('ca_kcontent'), w('ca_v'),
            w('ca_kpos'), w('ca_qpos_sine') * scale_ca, w('ca_out'), ca_qp_w]))
        lv_list.append(jnp.stack([
            b('sa_qcontent') * scale_sa, b('sa_kcontent'), b('sa_v'),
            b('sa_qpos') * scale_sa, b('sa_kpos'), b('sa_out'),
            b('ca_qcontent') * scale_ca, b('ca_kcontent'), b('ca_v'),
            b('ca_kpos'), b('ca_qpos_sine') * scale_ca, b('ca_out'), ca_qp_b,
            lp['norm1'][0], lp['norm1'][1], lp['norm2'][0], lp['norm2'][1],
            lp['norm3'][0], lp['norm3'][1], b('linear2')]))
        wff1_list.append(w('linear1'))
        wff2_list.append(w('linear2'))
        bff1_list.append(b('linear1').reshape(1, DIM_FF))

    return {
        'smat': smat, 'svec': svec,
        'lw': jnp.stack(lw_list),        # (L, 13, D, D)
        'lv': jnp.stack(lv_list),        # (L, 20, D)
        'wff1': jnp.stack(wff1_list),    # (L, D, FF)
        'wff2': jnp.stack(wff2_list),    # (L, FF, D)
        'bff1': jnp.stack(bff1_list),    # (L, 1, FF)
    }


# ======================= main =======================

if __name__ == "__main__":
    key = jax.random.PRNGKey(0)
    k_params, k_tgt, k_mem, k_pos, k_ref = jax.random.split(key, 5)

    params = init_params(k_params)
    packed = pack_params(params)

    tgt = jax.random.normal(k_tgt, (NUM_QUERIES, BATCH, D_MODEL), jnp.float32)
    memory = jax.random.normal(k_mem, (MEM_LEN, BATCH, D_MODEL), jnp.float32)
    pos = jax.random.normal(k_pos, (MEM_LEN, BATCH, D_MODEL), jnp.float32)
    refpoints_unsigmoid = jax.random.normal(
        k_ref, (NUM_QUERIES, BATCH, QUERY_DIM), jnp.float32)

    fwd = jax.jit(transformer_decoder_forward)
    hs, refs = fwd(packed, tgt, memory, pos, refpoints_unsigmoid)
    jax.block_until_ready((hs, refs))

    assert hs.shape == (NUM_LAYERS, BATCH, NUM_QUERIES, D_MODEL)
    assert refs.shape == (NUM_LAYERS, BATCH, NUM_QUERIES, QUERY_DIM)
    assert bool(jnp.all(jnp.isfinite(hs))) and bool(jnp.all(jnp.isfinite(refs)))
    print("KERNEL_OK")
</pallas_src>

<mosaic_0001>
module attributes {stable_mosaic.version = 11 : i64} {
  func.func @_decoder_kernel(%arg0: i32, %arg1: i32, %arg2: memref<8x32xf32, #tpu.memory_space<vmem>>, %arg3: memref<16x32xf32, #tpu.memory_space<vmem>>, %arg4: memref<16x32xf32, #tpu.memory_space<vmem>>, %arg5: memref<1x8x2xf32, #tpu.memory_space<vmem>>, %arg6: memref<12x32xf32, #tpu.memory_space<vmem>>, %arg7: memref<7x32x32xf32, #tpu.memory_space<vmem>>, %arg8: memref<1x13x32x32xf32, #tpu.memory_space<vmem>>, %arg9: memref<1x20x32xf32, #tpu.memory_space<vmem>>, %arg10: memref<1x32x64xf32, #tpu.memory_space<vmem>>, %arg11: memref<1x64x32xf32, #tpu.memory_space<vmem>>, %arg12: memref<1x1x64xf32, #tpu.memory_space<vmem>>, %arg13: memref<1x1x8x32xf32, #tpu.memory_space<vmem>>, %arg14: memref<1x1x8x2xf32, #tpu.memory_space<vmem>>, %arg15: memref<8x32xf32, #tpu.memory_space<vmem>>, %arg16: memref<1x8x2xf32, #tpu.memory_space<vmem>>) attributes {dimension_semantics = [#tpu.dimension_semantics<parallel>, #tpu.dimension_semantics<arbitrary>], iteration_bounds = array<i64: 2, 2>, scalar_prefetch = 0 : i64, scratch_operands = 2 : i64, tpu.core_type = #tpu.core_type<tc>, window_params = [{transform_indices = @transform_0, window_bounds = array<i64: 8, 32>}, {transform_indices = @transform_1, window_bounds = array<i64: 16, 32>}, {transform_indices = @transform_2, window_bounds = array<i64: 16, 32>}, {transform_indices = @transform_3, window_bounds = array<i64: 1, 8, 2>}, {pipeline_mode = #tpu.pipeline_mode<synchronous>, transform_indices = @transform_4, window_bounds = array<i64: 12, 32>}, {pipeline_mode = #tpu.pipeline_mode<synchronous>, transform_indices = @transform_5, window_bounds = array<i64: 7, 32, 32>}, {transform_indices = @transform_6, window_bounds = array<i64: 1, 13, 32, 32>}, {transform_indices = @transform_7, window_bounds = array<i64: 1, 20, 32>}, {transform_indices = @transform_8, window_bounds = array<i64: 1, 32, 64>}, {transform_indices = @transform_9, window_bounds = array<i64: 1, 64, 32>}, {transform_indices = @transform_10, window_bounds = array<i64: 1, 1, 64>}, {transform_indices = @transform_11, window_bounds = array<i64: 1, 1, 8, 32>}, {transform_indices = @transform_12, window_bounds = array<i64: 1, 1, 8, 2>}]} {
    %c0_i32 = arith.constant 0 : i32
    %0 = arith.cmpi eq, %arg1, %c0_i32 : i32
    %1 = arith.extui %0 : i1 to i32
    %2 = arith.sitofp %1 : i32 to f32
    %c0_i32_0 = arith.constant 0 : i32
    %3 = arith.cmpi eq, %arg1, %c0_i32_0 : i32
    %4 = arith.extui %3 : i1 to i32
    %c0_i32_1 = arith.constant 0 : i32
    %5 = arith.cmpi ne, %4, %c0_i32_1 : i32
    scf.if %5 {
      %c0_269 = arith.constant 0 : index
      %c0_270 = arith.constant 0 : index
      %501 = vector.load %arg2[%c0_269, %c0_270] : memref<8x32xf32, #tpu.memory_space<vmem>>, vector<8x32xf32>
      %c0_271 = arith.constant 0 : index
      %c0_272 = arith.constant 0 : index
      %502 = vector.load %arg15[%c0_271, %c0_272] : memref<8x32xf32, #tpu.memory_space<vmem>>, vector<8x32xf32>
      tpu.vector_store %arg15[%c0_271, %c0_272], %501 {strides = array<i32>} : memref<8x32xf32, #tpu.memory_space<vmem>>, vector<8x32xf32>,
      %c0_273 = arith.constant 0 : index
      %c0_274 = arith.constant 0 : index
      %c0_275 = arith.constant 0 : index
      %503 = vector.load %arg5[%c0_273, %c0_274, %c0_275] : memref<1x8x2xf32, #tpu.memory_space<vmem>>, vector<1x8x2xf32>
      %cst_276 = arith.constant 0.000000e+00 : f32
      %504 = vector.broadcast %cst_276 : f32 to vector<1x8x2xf32>
      %505 = arith.subf %504, %503 : vector<1x8x2xf32>
      %506 = math.exp %505 : vector<1x8x2xf32>
      %cst_277 = arith.constant 1.000000e+00 : f32
      %507 = vector.broadcast %cst_277 : f32 to vector<1x8x2xf32>
      %508 = arith.addf %507, %506 : vector<1x8x2xf32>
      %cst_278 = arith.constant 1.000000e+00 : f32
      %509 = vector.broadcast %cst_278 : f32 to vector<1x8x2xf32>
      %510 = arith.divf %509, %508 : vector<1x8x2xf32>
      %c0_279 = arith.constant 0 : index
      %c0_280 = arith.constant 0 : index
      %c0_281 = arith.constant 0 : index
      %511 = vector.load %arg16[%c0_279, %c0_280, %c0_281] : memref<1x8x2xf32, #tpu.memory_space<vmem>>, vector<1x8x2xf32>
      tpu.vector_store %arg16[%c0_279, %c0_280, %c0_281], %510 {strides = array<i32>} : memref<1x8x2xf32, #tpu.memory_space<vmem>>, vector<1x8x2xf32>,
    } else {
    }
    %c0 = arith.constant 0 : index
    %c0_2 = arith.constant 0 : index
    %6 = vector.load %arg15[%c0, %c0_2] : memref<8x32xf32, #tpu.memory_space<vmem>>, vector<8x32xf32>
    %c0_3 = arith.constant 0 : index
    %c0_4 = arith.constant 0 : index
    %c0_5 = arith.constant 0 : index
    %7 = vector.load %arg16[%c0_3, %c0_4, %c0_5] : memref<1x8x2xf32, #tpu.memory_space<vmem>>, vector<1x8x2xf32>
    %8 = vector.shape_cast %7 : vector<1x8x2xf32> to vector<1x1x8x2xf32>
    %c0_6 = arith.constant 0 : index
    %c0_7 = arith.constant 0 : index
    %c0_8 = arith.constant 0 : index
    %c0_9 = arith.constant 0 : index
    %9 = vector.load %arg14[%c0_6, %c0_7, %c0_8, %c0_9] : memref<1x1x8x2xf32, #tpu.memory_space<vmem>>, vector<1x1x8x2xf32>
    tpu.vector_store %arg14[%c0_6, %c0_7, %c0_8, %c0_9], %8 {strides = array<i32>} : memref<1x1x8x2xf32, #tpu.memory_space<vmem>>, vector<1x1x8x2xf32>,
    %c11 = arith.constant 11 : index
    %c0_10 = arith.constant 0 : index
    %10 = vector.load %arg6[%c11, %c0_10] : memref<12x32xf32, #tpu.memory_space<vmem>>, vector<1x32xf32>
    %11 = vector.extract_strided_slice %7 {offsets = [0, 0, 0], sizes = [1, 8, 1], strides = [1, 1, 1]} : vector<1x8x2xf32> to vector<1x8x1xf32>
    %12 = vector.shape_cast %10 : vector<1x32xf32> to vector<1x1x32xf32>
    %13 = vector.broadcast %11 : vector<1x8x1xf32> to vector<1x8x32xf32>
    %14 = vector.broadcast %12 : vector<1x1x32xf32> to vector<1x8x32xf32>
    %15 = arith.mulf %13, %14 : vector<1x8x32xf32>
    %16 = vector.extract_strided_slice %7 {offsets = [0, 0, 1], sizes = [1, 8, 1], strides = [1, 1, 1]} : vector<1x8x2xf32> to vector<1x8x1xf32>
    %cst = arith.constant 1.000000e+00 : f32
    %17 = vector.broadcast %cst : f32 to vector<1x32xf32>
    %18 = arith.subf %17, %10 : vector<1x32xf32>
    %19 = vector.shape_cast %18 : vector<1x32xf32> to vector<1x1x32xf32>
    %20 = vector.broadcast %16 : vector<1x8x1xf32> to vector<1x8x32xf32>
    %21 = vector.broadcast %19 : vector<1x1x32xf32> to vector<1x8x32xf32>
    %22 = arith.mulf %20, %21 : vector<1x8x32xf32>
    %23 = arith.addf %15, %22 : vector<1x8x32xf32>
    %c9 = arith.constant 9 : index
    %c0_11 = arith.constant 0 : index
    %24 = vector.load %arg6[%c9, %c0_11] : memref<12x32xf32, #tpu.memory_space<vmem>>, vector<1x32xf32>
    %25 = vector.shape_cast %24 : vector<1x32xf32> to vector<1x1x32xf32>
    %26 = vector.broadcast %25 : vector<1x1x32xf32> to vector<1x8x32xf32>
    %27 = arith.mulf %23, %26 : vector<1x8x32xf32>
    %c10 = arith.constant 10 : index
    %c0_12 = arith.constant 0 : index
    %28 = vector.load %arg6[%c10, %c0_12] : memref<12x32xf32, #tpu.memory_space<vmem>>, vector<1x32xf32>
    %29 = math.sin %27 : vector<1x8x32xf32>
    %30 = vector.shape_cast %28 : vector<1x32xf32> to vector<1x1x32xf32>
    %31 = vector.broadcast %30 : vector<1x1x32xf32> to vector<1x8x32xf32>
    %32 = arith.mulf %31, %29 : vector<1x8x32xf32>
    %cst_13 = arith.constant 1.000000e+00 : f32
    %33 = vector.broadcast %cst_13 : f32 to vector<1x32xf32>
    %34 = arith.subf %33, %28 : vector<1x32xf32>
    %35 = math.cos %27 : vector<1x8x32xf32>
    %36 = vector.shape_cast %34 : vector<1x32xf32> to vector<1x1x32xf32>
    %37 = vector.broadcast %36 : vector<1x1x32xf32> to vector<1x8x32xf32>
    %38 = arith.mulf %37, %35 : vector<1x8x32xf32>
    %39 = arith.addf %32, %38 : vector<1x8x32xf32>
    %40 = vector.shape_cast %39 : vector<1x8x32xf32> to vector<8x32xf32>
    %c0_14 = arith.constant 0 : index
    %c0_15 = arith.constant 0 : index
    %c0_16 = arith.constant 0 : index
    %41 = vector.load %arg7[%c0_14, %c0_15, %c0_16] : memref<7x32x32xf32, #tpu.memory_space<vmem>>, vector<1x32x32xf32>
    %42 = vector.shape_cast %41 : vector<1x32x32xf32> to vector<32x32xf32>
    %cst_17 = arith.constant dense<0.000000e+00> : vector<8x32xf32>
    %43 = tpu.matmul %40, %42, %cst_17 {dimension_numbers = #tpu.dot_dimension_numbers<[1], [0], [0], [1], [0, 0, 1, 1], [], []>} : vector<8x32xf32>, vector<32x32xf32>, vector<8x32xf32> -> vector<8x32xf32>
    %c0_18 = arith.constant 0 : index
    %c0_19 = arith.constant 0 : index
    %44 = vector.load %arg6[%c0_18, %c0_19] : memref<12x32xf32, #tpu.memory_space<vmem>>, vector<1x32xf32>
    %45 = vector.broadcast %44 : vector<1x32xf32> to vector<8x32xf32>
    %46 = arith.addf %43, %45 : vector<8x32xf32>
    %cst_20 = arith.constant 0.000000e+00 : f32
    %47 = vector.broadcast %cst_20 : f32 to vector<8x32xf32>
    %48 = arith.maximumf %46, %47 : vector<8x32xf32>
    %c1 = arith.constant 1 : index
    %c0_21 = arith.constant 0 : index
    %c0_22 = arith.constant 0 : index
    %49 = vector.load %arg7[%c1, %c0_21, %c0_22] : memref<7x32x32xf32, #tpu.memory_space<vmem>>, vector<1x32x32xf32>
    %50 = vector.shape_cast %49 : vector<1x32x32xf32> to vector<32x32xf32>
    %cst_23 = arith.constant dense<0.000000e+00> : vector<8x32xf32>
    %51 = tpu.matmul %48, %50, %cst_23 {dimension_numbers = #tpu.dot_dimension_numbers<[1], [0], [0], [1], [0, 0, 1, 1], [], []>} : vector<8x32xf32>, vector<32x32xf32>, vector<8x32xf32> -> vector<8x32xf32>
    %c1_24 = arith.constant 1 : index
    %c0_25 = arith.constant 0 : index
    %52 = vector.load %arg6[%c1_24, %c0_25] : memref<12x32xf32, #tpu.memory_space<vmem>>, vector<1x32xf32>
    %53 = vector.broadcast %52 : vector<1x32xf32> to vector<8x32xf32>
    %54 = arith.addf %51, %53 : vector<8x32xf32>
    %c2 = arith.constant 2 : index
    %c0_26 = arith.constant 0 : index
    %c0_27 = arith.constant 0 : index
    %55 = vector.load %arg7[%c2, %c0_26, %c0_27] : memref<7x32x32xf32, #tpu.memory_space<vmem>>, vector<1x32x32xf32>
    %56 = vector.shape_cast %55 : vector<1x32x32xf32> to vector<32x32xf32>
    %cst_28 = arith.constant dense<0.000000e+00> : vector<8x32xf32>
    %57 = tpu.matmul %6, %56, %cst_28 {dimension_numbers = #tpu.dot_dimension_numbers<[1], [0], [0], [1], [0, 0, 1, 1], [], []>} : vector<8x32xf32>, vector<32x32xf32>, vector<8x32xf32> -> vector<8x32xf32>
    %c2_29 = arith.constant 2 : index
    %c0_30 = arith.constant 0 : index
    %58 = vector.load %arg6[%c2_29, %c0_30] : memref<12x32xf32, #tpu.memory_space<vmem>>, vector<1x32xf32>
    %59 = vector.broadcast %58 : vector<1x32xf32> to vector<8x32xf32>
    %60 = arith.addf %57, %59 : vector<8x32xf32>
    %cst_31 = arith.constant 0.000000e+00 : f32
    %61 = vector.broadcast %cst_31 : f32 to vector<8x32xf32>
    %62 = arith.maximumf %60, %61 : vector<8x32xf32>
    %c3 = arith.constant 3 : index
    %c0_32 = arith.constant 0 : index
    %c0_33 = arith.constant 0 : index
    %63 = vector.load %arg7[%c3, %c0_32, %c0_33] : memref<7x32x32xf32, #tpu.memory_space<vmem>>, vector<1x32x32xf32>
    %64 = vector.shape_cast %63 : vector<1x32x32xf32> to vector<32x32xf32>
    %cst_34 = arith.constant dense<0.000000e+00> : vector<8x32xf32>
    %65 = tpu.matmul %62, %64, %cst_34 {dimension_numbers = #tpu.dot_dimension_numbers<[1], [0], [0], [1], [0, 0, 1, 1], [], []>} : vector<8x32xf32>, vector<32x32xf32>, vector<8x32xf32> -> vector<8x32xf32>
    %c3_35 = arith.constant 3 : index
    %c0_36 = arith.constant 0 : index
    %66 = vector.load %arg6[%c3_35, %c0_36] : memref<12x32xf32, #tpu.memory_space<vmem>>, vector<1x32xf32>
    %67 = vector.broadcast %66 : vector<1x32xf32> to vector<8x32xf32>
    %68 = arith.addf %65, %67 : vector<8x32xf32>
    %cst_37 = arith.constant 1.000000e+00 : f32
    %69 = arith.subf %cst_37, %2 : f32
    %70 = vector.broadcast %69 : f32 to vector<8x32xf32>
    %71 = arith.mulf %70, %68 : vector<8x32xf32>
    %72 = vector.broadcast %2 : f32 to vector<8x32xf32>
    %73 = arith.addf %72, %71 : vector<8x32xf32>
    %74 = arith.mulf %40, %73 : vector<8x32xf32>
    %c0_38 = arith.constant 0 : index
    %c0_39 = arith.constant 0 : index
    %c0_40 = arith.constant 0 : index
    %c0_41 = arith.constant 0 : index
    %75 = vector.load %arg8[%c0_38, %c0_39, %c0_40, %c0_41] : memref<1x13x32x32xf32, #tpu.memory_space<vmem>>, vector<1x1x32x32xf32>
    %76 = vector.shape_cast %75 : vector<1x1x32x32xf32> to vector<32x32xf32>
    %cst_42 = arith.constant dense<0.000000e+00> : vector<8x32xf32>
    %77 = tpu.matmul %6, %76, %cst_42 {dimension_numbers = #tpu.dot_dimension_numbers<[1], [0], [0], [1], [0, 0, 1, 1], [], []>} : vector<8x32xf32>, vector<32x32xf32>, vector<8x32xf32> -> vector<8x32xf32>
    %c0_43 = arith.constant 0 : index
    %c0_44 = arith.constant 0 : index
    %c0_45 = arith.constant 0 : index
    %78 = vector.load %arg9[%c0_43, %c0_44, %c0_45] : memref<1x20x32xf32, #tpu.memory_space<vmem>>, vector<1x1x32xf32>
    %79 = vector.shape_cast %78 : vector<1x1x32xf32> to vector<1x32xf32>
    %80 = vector.broadcast %79 : vector<1x32xf32> to vector<8x32xf32>
    %81 = arith.addf %77, %80 : vector<8x32xf32>
    %c0_46 = arith.constant 0 : index
    %c3_47 = arith.constant 3 : index
    %c0_48 = arith.constant 0 : index
    %c0_49 = arith.constant 0 : index
    %82 = vector.load %arg8[%c0_46, %c3_47, %c0_48, %c0_49] : memref<1x13x32x32xf32, #tpu.memory_space<vmem>>, vector<1x1x32x32xf32>
    %83 = vector.shape_cast %82 : vector<1x1x32x32xf32> to vector<32x32xf32>
    %cst_50 = arith.constant dense<0.000000e+00> : vector<8x32xf32>
    %84 = tpu.matmul %54, %83, %cst_50 {dimension_numbers = #tpu.dot_dimension_numbers<[1], [0], [0], [1], [0, 0, 1, 1], [], []>} : vector<8x32xf32>, vector<32x32xf32>, vector<8x32xf32> -> vector<8x32xf32>
    %85 = arith.addf %81, %84 : vector<8x32xf32>
    %c0_51 = arith.constant 0 : index
    %c3_52 = arith.constant 3 : index
    %c0_53 = arith.constant 0 : index
    %86 = vector.load %arg9[%c0_51, %c3_52, %c0_53] : memref<1x20x32xf32, #tpu.memory_space<vmem>>, vector<1x1x32xf32>
    %87 = vector.shape_cast %86 : vector<1x1x32xf32> to vector<1x32xf32>
    %88 = vector.broadcast %87 : vector<1x32xf32> to vector<8x32xf32>
    %89 = arith.addf %85, %88 : vector<8x32xf32>
    %90 = vector.shape_cast %89 : vector<8x32xf32> to vector<1x8x32xf32>
    %c0_54 = arith.constant 0 : index
    %c1_55 = arith.constant 1 : index
    %c0_56 = arith.constant 0 : index
    %c0_57 = arith.constant 0 : index
    %91 = vector.load %arg8[%c0_54, %c1_55, %c0_56, %c0_57] : memref<1x13x32x32xf32, #tpu.memory_space<vmem>>, vector<1x1x32x32xf32>
    %92 = vector.shape_cast %91 : vector<1x1x32x32xf32> to vector<32x32xf32>
    %cst_58 = arith.constant dense<0.000000e+00> : vector<8x32xf32>
    %93 = tpu.matmul %6, %92, %cst_58 {dimension_numbers = #tpu.dot_dimension_numbers<[1], [0], [0], [1], [0, 0, 1, 1], [], []>} : vector<8x32xf32>, vector<32x32xf32>, vector<8x32xf32> -> vector<8x32xf32>
    %c0_59 = arith.constant 0 : index
    %c1_60 = arith.constant 1 : index
    %c0_61 = arith.constant 0 : index
    %94 = vector.load %arg9[%c0_59, %c1_60, %c0_61] : memref<1x20x32xf32, #tpu.memory_space<vmem>>, vector<1x1x32xf32>
    %95 = vector.shape_cast %94 : vector<1x1x32xf32> to vector<1x32xf32>
    %96 = vector.broadcast %95 : vector<1x32xf32> to vector<8x32xf32>
    %97 = arith.addf %93, %96 : vector<8x32xf32>
    %c0_62 = arith.constant 0 : index
    %c4 = arith.constant 4 : index
    %c0_63 = arith.constant 0 : index
    %c0_64 = arith.constant 0 : index
    %98 = vector.load %arg8[%c0_62, %c4, %c0_63, %c0_64] : memref<1x13x32x32xf32, #tpu.memory_space<vmem>>, vector<1x1x32x32xf32>
    %99 = vector.shape_cast %98 : vector<1x1x32x32xf32> to vector<32x32xf32>
    %cst_65 = arith.constant dense<0.000000e+00> : vector<8x32xf32>
    %100 = tpu.matmul %54, %99, %cst_65 {dimension_numbers = #tpu.dot_dimension_numbers<[1], [0], [0], [1], [0, 0, 1, 1], [], []>} : vector<8x32xf32>, vector<32x32xf32>, vector<8x32xf32> -> vector<8x32xf32>
    %101 = arith.addf %97, %100 : vector<8x32xf32>
    %c0_66 = arith.constant 0 : index
    %c4_67 = arith.constant 4 : index
    %c0_68 = arith.constant 0 : index
    %102 = vector.load %arg9[%c0_66, %c4_67, %c0_68] : memref<1x20x32xf32, #tpu.memory_space<vmem>>, vector<1x1x32xf32>
    %103 = vector.shape_cast %102 : vector<1x1x32xf32> to vector<1x32xf32>
    %104 = vector.broadcast %103 : vector<1x32xf32> to vector<8x32xf32>
    %105 = arith.addf %101, %104 : vector<8x32xf32>
    %106 = vector.shape_cast %105 : vector<8x32xf32> to vector<1x8x32xf32>
    %c0_69 = arith.constant 0 : index
    %c2_70 = arith.constant 2 : index
    %c0_71 = arith.constant 0 : index
    %c0_72 = arith.constant 0 : index
    %107 = vector.load %arg8[%c0_69, %c2_70, %c0_71, %c0_72] : memref<1x13x32x32xf32, #tpu.memory_space<vmem>>, vector<1x1x32x32xf32>
    %108 = vector.shape_cast %107 : vector<1x1x32x32xf32> to vector<32x32xf32>
    %cst_73 = arith.constant dense<0.000000e+00> : vector<8x32xf32>
    %109 = tpu.matmul %6, %108, %cst_73 {dimension_numbers = #tpu.dot_dimension_numbers<[1], [0], [0], [1], [0, 0, 1, 1], [], []>} : vector<8x32xf32>, vector<32x32xf32>, vector<8x32xf32> -> vector<8x32xf32>
    %c0_74 = arith.constant 0 : index
    %c2_75 = arith.constant 2 : index
    %c0_76 = arith.constant 0 : index
    %110 = vector.load %arg9[%c0_74, %c2_75, %c0_76] : memref<1x20x32xf32, #tpu.memory_space<vmem>>, vector<1x1x32xf32>
    %111 = vector.shape_cast %110 : vector<1x1x32xf32> to vector<1x32xf32>
    %112 = vector.broadcast %111 : vector<1x32xf32> to vector<8x32xf32>
    %113 = arith.addf %109, %112 : vector<8x32xf32>
    %114 = vector.shape_cast %113 : vector<8x32xf32> to vector<1x8x32xf32>
    %c0_77 = arith.constant 0 : index
    %c5 = arith.constant 5 : index
    %c0_78 = arith.constant 0 : index
    %c0_79 = arith.constant 0 : index
    %115 = vector.load %arg8[%c0_77, %c5, %c0_78, %c0_79] : memref<1x13x32x32xf32, #tpu.memory_space<vmem>>, vector<1x1x32x32xf32>
    %116 = vector.shape_cast %115 : vector<1x1x32x32xf32> to vector<32x32xf32>
    %c0_80 = arith.constant 0 : index
    %c5_81 = arith.constant 5 : index
    %c0_82 = arith.constant 0 : index
    %117 = vector.load %arg9[%c0_80, %c5_81, %c0_82] : memref<1x20x32xf32, #tpu.memory_space<vmem>>, vector<1x1x32xf32>
    %118 = vector.shape_cast %117 : vector<1x1x32xf32> to vector<1x32xf32>
    %119 = vector.extract_strided_slice %90 {offsets = [0, 0, 0], sizes = [1, 8, 8], strides = [1, 1, 1]} : vector<1x8x32xf32> to vector<1x8x8xf32>
    %120 = vector.extract_strided_slice %106 {offsets = [0, 0, 0], sizes = [1, 8, 8], strides = [1, 1, 1]} : vector<1x8x32xf32> to vector<1x8x8xf32>
    "tpu.trace_start"() <{level = 10 : i32, message = "bqd,bkd->bqk"}> : () -> ()
    %cst_83 = arith.constant dense<0.000000e+00> : vector<1x8x8xf32>
    %121 = tpu.matmul %119, %120, %cst_83 {dimension_numbers = #tpu.dot_dimension_numbers<[2], [2], [1], [1], [0, 0, 0, 1, 1, 1], [0], [0]>} : vector<1x8x8xf32>, vector<1x8x8xf32>, vector<1x8x8xf32> -> vector<1x8x8xf32>
    "tpu.trace_stop"() : () -> ()
    %cst_84 = arith.constant dense<0xFF800000> : vector<1x8xf32>
    %122 = vector.multi_reduction <maximumf>, %121, %cst_84 [2] : vector<1x8x8xf32> to vector<1x8xf32>
    %123 = vector.shape_cast %122 : vector<1x8xf32> to vector<1x8x1xf32>
    %124 = vector.broadcast %123 : vector<1x8x1xf32> to vector<1x8x8xf32>
    %125 = arith.subf %121, %124 : vector<1x8x8xf32>
    %126 = math.exp %125 : vector<1x8x8xf32>
    %cst_85 = arith.constant dense<0.000000e+00> : vector<1x8xf32>
    %127 = vector.multi_reduction <add>, %126, %cst_85 [2] : vector<1x8x8xf32> to vector<1x8xf32>
    %128 = vector.shape_cast %127 : vector<1x8xf32> to vector<1x8x1xf32>
    %129 = vector.broadcast %128 : vector<1x8x1xf32> to vector<1x8x8xf32>
    %130 = arith.divf %126, %129 : vector<1x8x8xf32>
    %131 = vector.extract_strided_slice %114 {offsets = [0, 0, 0], sizes = [1, 8, 8], strides = [1, 1, 1]} : vector<1x8x32xf32> to vector<1x8x8xf32>
    "tpu.trace_start"() <{level = 10 : i32, message = "bqk,bkd->bqd"}> : () -> ()
    %cst_86 = arith.constant dense<0.000000e+00> : vector<1x8x8xf32>
    %132 = tpu.matmul %130, %131, %cst_86 {dimension_numbers = #tpu.dot_dimension_numbers<[2], [1], [1], [2], [0, 0, 0, 1, 1, 2], [0], [0]>} : vector<1x8x8xf32>, vector<1x8x8xf32>, vector<1x8x8xf32> -> vector<1x8x8xf32>
    "tpu.trace_stop"() : () -> ()
    %133 = vector.shape_cast %132 : vector<1x8x8xf32> to vector<8x8xf32>
    %134 = vector.extract_strided_slice %116 {offsets = [0, 0], sizes = [8, 32], strides = [1, 1]} : vector<32x32xf32> to vector<8x32xf32>
    %cst_87 = arith.constant dense<0.000000e+00> : vector<8x32xf32>
    %135 = tpu.matmul %133, %134, %cst_87 {dimension_numbers = #tpu.dot_dimension_numbers<[1], [0], [0], [1], [0, 0, 1, 1], [], []>} : vector<8x8xf32>, vector<8x32xf32>, vector<8x32xf32> -> vector<8x32xf32>
    %136 = vector.broadcast %118 : vector<1x32xf32> to vector<8x32xf32>
    %137 = arith.addf %136, %135 : vector<8x32xf32>
    %138 = vector.extract_strided_slice %90 {offsets = [0, 0, 8], sizes = [1, 8, 8], strides = [1, 1, 1]} : vector<1x8x32xf32> to vector<1x8x8xf32>
    %139 = vector.extract_strided_slice %106 {offsets = [0, 0, 8], sizes = [1, 8, 8], strides = [1, 1, 1]} : vector<1x8x32xf32> to vector<1x8x8xf32>
    "tpu.trace_start"() <{level = 10 : i32, message = "bqd,bkd->bqk"}> : () -> ()
    %cst_88 = arith.constant dense<0.000000e+00> : vector<1x8x8xf32>
    %140 = tpu.matmul %138, %139, %cst_88 {dimension_numbers = #tpu.dot_dimension_numbers<[2], [2], [1], [1], [0, 0, 0, 1, 1, 1], [0], [0]>} : vector<1x8x8xf32>, vector<1x8x8xf32>, vector<1x8x8xf32> -> vector<1x8x8xf32>
    "tpu.trace_stop"() : () -> ()
    %cst_89 = arith.constant dense<0xFF800000> : vector<1x8xf32>
    %141 = vector.multi_reduction <maximumf>, %140, %cst_89 [2] : vector<1x8x8xf32> to vector<1x8xf32>
    %142 = vector.shape_cast %141 : vector<1x8xf32> to vector<1x8x1xf32>
    %143 = vector.broadcast %142 : vector<1x8x1xf32> to vector<1x8x8xf32>
    %144 = arith.subf %140, %143 : vector<1x8x8xf32>
    %145 = math.exp %144 : vector<1x8x8xf32>
    %cst_90 = arith.constant dense<0.000000e+00> : vector<1x8xf32>
    %146 = vector.multi_reduction <add>, %145, %cst_90 [2] : vector<1x8x8xf32> to vector<1x8xf32>
    %147 = vector.shape_cast %146 : vector<1x8xf32> to vector<1x8x1xf32>
    %148 = vector.broadcast %147 : vector<1x8x1xf32> to vector<1x8x8xf32>
    %149 = arith.divf %145, %148 : vector<1x8x8xf32>
    %150 = vector.extract_strided_slice %114 {offsets = [0, 0, 8], sizes = [1, 8, 8], strides = [1, 1, 1]} : vector<1x8x32xf32> to vector<1x8x8xf32>
    "tpu.trace_start"() <{level = 10 : i32, message = "bqk,bkd->bqd"}> : () -> ()
    %cst_91 = arith.constant dense<0.000000e+00> : vector<1x8x8xf32>
    %151 = tpu.matmul %149, %150, %cst_91 {dimension_numbers = #tpu.dot_dimension_numbers<[2], [1], [1], [2], [0, 0, 0, 1, 1, 2], [0], [0]>} : vector<1x8x8xf32>, vector<1x8x8xf32>, vector<1x8x8xf32> -> vector<1x8x8xf32>
    "tpu.trace_stop"() : () -> ()
    %152 = vector.shape_cast %151 : vector<1x8x8xf32> to vector<8x8xf32>
    %153 = vector.extract_strided_slice %116 {offsets = [8, 0], sizes = [8, 32], strides = [1, 1]} : vector<32x32xf32> to vector<8x32xf32>
    %cst_92 = arith.constant dense<0.000000e+00> : vector<8x32xf32>
    %154 = tpu.matmul %152, %153, %cst_92 {dimension_numbers = #tpu.dot_dimension_numbers<[1], [0], [0], [1], [0, 0, 1, 1], [], []>} : vector<8x8xf32>, vector<8x32xf32>, vector<8x32xf32> -> vector<8x32xf32>
    %155 = arith.addf %137, %154 : vector<8x32xf32>
    %156 = vector.extract_strided_slice %90 {offsets = [0, 0, 16], sizes = [1, 8, 8], strides = [1, 1, 1]} : vector<1x8x32xf32> to vector<1x8x8xf32>
    %157 = vector.extract_strided_slice %106 {offsets = [0, 0, 16], sizes = [1, 8, 8], strides = [1, 1, 1]} : vector<1x8x32xf32> to vector<1x8x8xf32>
    "tpu.trace_start"() <{level = 10 : i32, message = "bqd,bkd->bqk"}> : () -> ()
    %cst_93 = arith.constant dense<0.000000e+00> : vector<1x8x8xf32>
    %158 = tpu.matmul %156, %157, %cst_93 {dimension_numbers = #tpu.dot_dimension_numbers<[2], [2], [1], [1], [0, 0, 0, 1, 1, 1], [0], [0]>} : vector<1x8x8xf32>, vector<1x8x8xf32>, vector<1x8x8xf32> -> vector<1x8x8xf32>
    "tpu.trace_stop"() : () -> ()
    %cst_94 = arith.constant dense<0xFF800000> : vector<1x8xf32>
    %159 = vector.multi_reduction <maximumf>, %158, %cst_94 [2] : vector<1x8x8xf32> to vector<1x8xf32>
    %160 = vector.shape_cast %159 : vector<1x8xf32> to vector<1x8x1xf32>
    %161 = vector.broadcast %160 : vector<1x8x1xf32> to vector<1x8x8xf32>
    %162 = arith.subf %158, %161 : vector<1x8x8xf32>
    %163 = math.exp %162 : vector<1x8x8xf32>
    %cst_95 = arith.constant dense<0.000000e+00> : vector<1x8xf32>
    %164 = vector.multi_reduction <add>, %163, %cst_95 [2] : vector<1x8x8xf32> to vector<1x8xf32>
    %165 = vector.shape_cast %164 : vector<1x8xf32> to vector<1x8x1xf32>
    %166 = vector.broadcast %165 : vector<1x8x1xf32> to vector<1x8x8xf32>
    %167 = arith.divf %163, %166 : vector<1x8x8xf32>
    %168 = vector.extract_strided_slice %114 {offsets = [0, 0, 16], sizes = [1, 8, 8], strides = [1, 1, 1]} : vector<1x8x32xf32> to vector<1x8x8xf32>
    "tpu.trace_start"() <{level = 10 : i32, message = "bqk,bkd->bqd"}> : () -> ()
    %cst_96 = arith.constant dense<0.000000e+00> : vector<1x8x8xf32>
    %169 = tpu.matmul %167, %168, %cst_96 {dimension_numbers = #tpu.dot_dimension_numbers<[2], [1], [1], [2], [0, 0, 0, 1, 1, 2], [0], [0]>} : vector<1x8x8xf32>, vector<1x8x8xf32>, vector<1x8x8xf32> -> vector<1x8x8xf32>
    "tpu.trace_stop"() : () -> ()
    %170 = vector.shape_cast %169 : vector<1x8x8xf32> to vector<8x8xf32>
    %171 = vector.extract_strided_slice %116 {offsets = [16, 0], sizes = [8, 32], strides = [1, 1]} : vector<32x32xf32> to vector<8x32xf32>
    %cst_97 = arith.constant dense<0.000000e+00> : vector<8x32xf32>
    %172 = tpu.matmul %170, %171, %cst_97 {dimension_numbers = #tpu.dot_dimension_numbers<[1], [0], [0], [1], [0, 0, 1, 1], [], []>} : vector<8x8xf32>, vector<8x32xf32>, vector<8x32xf32> -> vector<8x32xf32>
    %173 = arith.addf %155, %172 : vector<8x32xf32>
    %174 = vector.extract_strided_slice %90 {offsets = [0, 0, 24], sizes = [1, 8, 8], strides = [1, 1, 1]} : vector<1x8x32xf32> to vector<1x8x8xf32>
    %175 = vector.extract_strided_slice %106 {offsets = [0, 0, 24], sizes = [1, 8, 8], strides = [1, 1, 1]} : vector<1x8x32xf32> to vector<1x8x8xf32>
    "tpu.trace_start"() <{level = 10 : i32, message = "bqd,bkd->bqk"}> : () -> ()
    %cst_98 = arith.constant dense<0.000000e+00> : vector<1x8x8xf32>
    %176 = tpu.matmul %174, %175, %cst_98 {dimension_numbers = #tpu.dot_dimension_numbers<[2], [2], [1], [1], [0, 0, 0, 1, 1, 1], [0], [0]>} : vector<1x8x8xf32>, vector<1x8x8xf32>, vector<1x8x8xf32> -> vector<1x8x8xf32>
    "tpu.trace_stop"() : () -> ()
    %cst_99 = arith.constant dense<0xFF800000> : vector<1x8xf32>
    %177 = vector.multi_reduction <maximumf>, %176, %cst_99 [2] : vector<1x8x8xf32> to vector<1x8xf32>
    %178 = vector.shape_cast %177 : vector<1x8xf32> to vector<1x8x1xf32>
    %179 = vector.broadcast %178 : vector<1x8x1xf32> to vector<1x8x8xf32>
    %180 = arith.subf %176, %179 : vector<1x8x8xf32>
    %181 = math.exp %180 : vector<1x8x8xf32>
    %cst_100 = arith.constant dense<0.000000e+00> : vector<1x8xf32>
    %182 = vector.multi_reduction <add>, %181, %cst_100 [2] : vector<1x8x8xf32> to vector<1x8xf32>
    %183 = vector.shape_cast %182 : vector<1x8xf32> to vector<1x8x1xf32>
    %184 = vector.broadcast %183 : vector<1x8x1xf32> to vector<1x8x8xf32>
    %185 = arith.divf %181, %184 : vector<1x8x8xf32>
    %186 = vector.extract_strided_slice %114 {offsets = [0, 0, 24], sizes = [1, 8, 8], strides = [1, 1, 1]} : vector<1x8x32xf32> to vector<1x8x8xf32>
    "tpu.trace_start"() <{level = 10 : i32, message = "bqk,bkd->bqd"}> : () -> ()
    %cst_101 = arith.constant dense<0.000000e+00> : vector<1x8x8xf32>
    %187 = tpu.matmul %185, %186, %cst_101 {dimension_numbers = #tpu.dot_dimension_numbers<[2], [1], [1], [2], [0, 0, 0, 1, 1, 2], [0], [0]>} : vector<1x8x8xf32>, vector<1x8x8xf32>, vector<1x8x8xf32> -> vector<1x8x8xf32>
    "tpu.trace_stop"() : () -> ()
    %188 = vector.shape_cast %187 : vector<1x8x8xf32> to vector<8x8xf32>
    %189 = vector.extract_strided_slice %116 {offsets = [24, 0], sizes = [8, 32], strides = [1, 1]} : vector<32x32xf32> to vector<8x32xf32>
    %cst_102 = arith.constant dense<0.000000e+00> : vector<8x32xf32>
    %190 = tpu.matmul %188, %189, %cst_102 {dimension_numbers = #tpu.dot_dimension_numbers<[1], [0], [0], [1], [0, 0, 1, 1], [], []>} : vector<8x8xf32>, vector<8x32xf32>, vector<8x32xf32> -> vector<8x32xf32>
    %191 = arith.addf %173, %190 : vector<8x32xf32>
    %192 = arith.addf %6, %191 : vector<8x32xf32>
    %c0_103 = arith.constant 0 : index
    %c13 = arith.constant 13 : index
    %c0_104 = arith.constant 0 : index
    %193 = vector.load %arg9[%c0_103, %c13, %c0_104] : memref<1x20x32xf32, #tpu.memory_space<vmem>>, vector<1x1x32xf32>
    %194 = vector.shape_cast %193 : vector<1x1x32xf32> to vector<1x32xf32>
    %c0_105 = arith.constant 0 : index
    %c14 = arith.constant 14 : index
    %c0_106 = arith.constant 0 : index
    %195 = vector.load %arg9[%c0_105, %c14, %c0_106] : memref<1x20x32xf32, #tpu.memory_space<vmem>>, vector<1x1x32xf32>
    %196 = vector.shape_cast %195 : vector<1x1x32xf32> to vector<1x32xf32>
    %cst_107 = arith.constant dense<0.000000e+00> : vector<8xf32>
    %197 = vector.multi_reduction <add>, %192, %cst_107 [1] : vector<8x32xf32> to vector<8xf32>
    %198 = vector.shape_cast %197 : vector<8xf32> to vector<8x1xf32>
    %cst_108 = arith.constant 3.200000e+01 : f32
    %199 = vector.broadcast %cst_108 : f32 to vector<8x1xf32>
    %200 = arith.divf %198, %199 : vector<8x1xf32>
    %201 = vector.broadcast %200 : vector<8x1xf32> to vector<8x32xf32>
    %202 = arith.subf %192, %201 : vector<8x32xf32>
    %203 = arith.mulf %202, %202 : vector<8x32xf32>
    %cst_109 = arith.constant dense<0.000000e+00> : vector<8xf32>
    %204 = vector.multi_reduction <add>, %203, %cst_109 [1] : vector<8x32xf32> to vector<8xf32>
    %205 = vector.shape_cast %204 : vector<8xf32> to vector<8x1xf32>
    %cst_110 = arith.constant 3.200000e+01 : f32
    %206 = vector.broadcast %cst_110 : f32 to vector<8x1xf32>
    %207 = arith.divf %205, %206 : vector<8x1xf32>
    %cst_111 = arith.constant 9.99999974E-6 : f32
    %208 = vector.broadcast %cst_111 : f32 to vector<8x1xf32>
    %209 = arith.addf %207, %208 : vector<8x1xf32>
    %210 = math.rsqrt %209 : vector<8x1xf32>
    %211 = vector.broadcast %210 : vector<8x1xf32> to vector<8x32xf32>
    %212 = arith.mulf %202, %211 : vector<8x32xf32>
    %213 = vector.broadcast %194 : vector<1x32xf32> to vector<8x32xf32>
    %214 = arith.mulf %212, %213 : vector<8x32xf32>
    %215 = vector.broadcast %196 : vector<1x32xf32> to vector<8x32xf32>
    %216 = arith.addf %214, %215 : vector<8x32xf32>
    %c0_112 = arith.constant 0 : index
    %c0_113 = arith.constant 0 : index
    %217 = vector.load %arg3[%c0_112, %c0_113] : memref<16x32xf32, #tpu.memory_space<vmem>>, vector<16x32xf32>
    %c0_114 = arith.constant 0 : index
    %c6 = arith.constant 6 : index
    %c0_115 = arith.constant 0 : index
    %c0_116 = arith.constant 0 : index
    %218 = vector.load %arg8[%c0_114, %c6, %c0_115, %c0_116] : memref<1x13x32x32xf32, #tpu.memory_space<vmem>>, vector<1x1x32x32xf32>
    %219 = vector.shape_cast %218 : vector<1x1x32x32xf32> to vector<32x32xf32>
    %cst_117 = arith.constant dense<0.000000e+00> : vector<8x32xf32>
    %220 = tpu.matmul %216, %219, %cst_117 {dimension_numbers = #tpu.dot_dimension_numbers<[1], [0], [0], [1], [0, 0, 1, 1], [], []>} : vector<8x32xf32>, vector<32x32xf32>, vector<8x32xf32> -> vector<8x32xf32>
    %c0_118 = arith.constant 0 : index
    %c6_119 = arith.constant 6 : index
    %c0_120 = arith.constant 0 : index
    %221 = vector.load %arg9[%c0_118, %c6_119, %c0_120] : memref<1x20x32xf32, #tpu.memory_space<vmem>>, vector<1x1x32xf32>
    %222 = vector.shape_cast %221 : vector<1x1x32xf32> to vector<1x32xf32>
    %223 = vector.broadcast %222 : vector<1x32xf32> to vector<8x32xf32>
    %224 = arith.addf %220, %223 : vector<8x32xf32>
    %c0_121 = arith.constant 0 : index
    %c12 = arith.constant 12 : index
    %c0_122 = arith.constant 0 : index
    %c0_123 = arith.constant 0 : index
    %225 = vector.load %arg8[%c0_121, %c12, %c0_122, %c0_123] : memref<1x13x32x32xf32, #tpu.memory_space<vmem>>, vector<1x1x32x32xf32>
    %226 = vector.shape_cast %225 : vector<1x1x32x32xf32> to vector<32x32xf32>
    %cst_124 = arith.constant dense<0.000000e+00> : vector<8x32xf32>
    %227 = tpu.matmul %54, %226, %cst_124 {dimension_numbers = #tpu.dot_dimension_numbers<[1], [0], [0], [1], [0, 0, 1, 1], [], []>} : vector<8x32xf32>, vector<32x32xf32>, vector<8x32xf32> -> vector<8x32xf32>
    %c0_125 = arith.constant 0 : index
    %c12_126 = arith.constant 12 : index
    %c0_127 = arith.constant 0 : index
    %228 = vector.load %arg9[%c0_125, %c12_126, %c0_127] : memref<1x20x32xf32, #tpu.memory_space<vmem>>, vector<1x1x32xf32>
    %229 = vector.shape_cast %228 : vector<1x1x32xf32> to vector<1x32xf32>
    %230 = vector.broadcast %229 : vector<1x32xf32> to vector<8x32xf32>
    %231 = arith.addf %227, %230 : vector<8x32xf32>
    %232 = vector.broadcast %2 : f32 to vector<8x32xf32>
    %233 = arith.mulf %232, %231 : vector<8x32xf32>
    %234 = arith.addf %224, %233 : vector<8x32xf32>
    %c0_128 = arith.constant 0 : index
    %c10_129 = arith.constant 10 : index
    %c0_130 = arith.constant 0 : index
    %c0_131 = arith.constant 0 : index
    %235 = vector.load %arg8[%c0_128, %c10_129, %c0_130, %c0_131] : memref<1x13x32x32xf32, #tpu.memory_space<vmem>>, vector<1x1x32x32xf32>
    %236 = vector.shape_cast %235 : vector<1x1x32x32xf32> to vector<32x32xf32>
    %cst_132 = arith.constant dense<0.000000e+00> : vector<8x32xf32>
    %237 = tpu.matmul %74, %236, %cst_132 {dimension_numbers = #tpu.dot_dimension_numbers<[1], [0], [0], [1], [0, 0, 1, 1], [], []>} : vector<8x32xf32>, vector<32x32xf32>, vector<8x32xf32> -> vector<8x32xf32>
    %c0_133 = arith.constant 0 : index
    %c10_134 = arith.constant 10 : index
    %c0_135 = arith.constant 0 : index
    %238 = vector.load %arg9[%c0_133, %c10_134, %c0_135] : memref<1x20x32xf32, #tpu.memory_space<vmem>>, vector<1x1x32xf32>
    %239 = vector.shape_cast %238 : vector<1x1x32xf32> to vector<1x32xf32>
    %240 = vector.broadcast %239 : vector<1x32xf32> to vector<8x32xf32>
    %241 = arith.addf %237, %240 : vector<8x32xf32>
    %c0_136 = arith.constant 0 : index
    %c7 = arith.constant 7 : index
    %c0_137 = arith.constant 0 : index
    %c0_138 = arith.constant 0 : index
    %242 = vector.load %arg8[%c0_136, %c7, %c0_137, %c0_138] : memref<1x13x32x32xf32, #tpu.memory_space<vmem>>, vector<1x1x32x32xf32>
    %243 = vector.shape_cast %242 : vector<1x1x32x32xf32> to vector<32x32xf32>
    %cst_139 = arith.constant dense<0.000000e+00> : vector<16x32xf32>
    %244 = tpu.matmul %217, %243, %cst_139 {dimension_numbers = #tpu.dot_dimension_numbers<[1], [0], [0], [1], [0, 0, 1, 1], [], []>} : vector<16x32xf32>, vector<32x32xf32>, vector<16x32xf32> -> vector<16x32xf32>
    %c0_140 = arith.constant 0 : index
    %c7_141 = arith.constant 7 : index
    %c0_142 = arith.constant 0 : index
    %245 = vector.load %arg9[%c0_140, %c7_141, %c0_142] : memref<1x20x32xf32, #tpu.memory_space<vmem>>, vector<1x1x32xf32>
    %246 = vector.shape_cast %245 : vector<1x1x32xf32> to vector<1x32xf32>
    %247 = vector.broadcast %246 : vector<1x32xf32> to vector<16x32xf32>
    %248 = arith.addf %244, %247 : vector<16x32xf32>
    %c0_143 = arith.constant 0 : index
    %c0_144 = arith.constant 0 : index
    %249 = vector.load %arg4[%c0_143, %c0_144] : memref<16x32xf32, #tpu.memory_space<vmem>>, vector<16x32xf32>
    %c0_145 = arith.constant 0 : index
    %c9_146 = arith.constant 9 : index
    %c0_147 = arith.constant 0 : index
    %c0_148 = arith.constant 0 : index
    %250 = vector.load %arg8[%c0_145, %c9_146, %c0_147, %c0_148] : memref<1x13x32x32xf32, #tpu.memory_space<vmem>>, vector<1x1x32x32xf32>
    %251 = vector.shape_cast %250 : vector<1x1x32x32xf32> to vector<32x32xf32>
    %cst_149 = arith.constant dense<0.000000e+00> : vector<16x32xf32>
    %252 = tpu.matmul %249, %251, %cst_149 {dimension_numbers = #tpu.dot_dimension_numbers<[1], [0], [0], [1], [0, 0, 1, 1], [], []>} : vector<16x32xf32>, vector<32x32xf32>, vector<16x32xf32> -> vector<16x32xf32>
    %c0_150 = arith.constant 0 : index
    %c9_151 = arith.constant 9 : index
    %c0_152 = arith.constant 0 : index
    %253 = vector.load %arg9[%c0_150, %c9_151, %c0_152] : memref<1x20x32xf32, #tpu.memory_space<vmem>>, vector<1x1x32xf32>
    %254 = vector.shape_cast %253 : vector<1x1x32xf32> to vector<1x32xf32>
    %255 = vector.broadcast %254 : vector<1x32xf32> to vector<16x32xf32>
    %256 = arith.addf %252, %255 : vector<16x32xf32>
    %c0_153 = arith.constant 0 : index
    %c8 = arith.constant 8 : index
    %c0_154 = arith.constant 0 : index
    %c0_155 = arith.constant 0 : index
    %257 = vector.load %arg8[%c0_153, %c8, %c0_154, %c0_155] : memref<1x13x32x32xf32, #tpu.memory_space<vmem>>, vector<1x1x32x32xf32>
    %258 = vector.shape_cast %257 : vector<1x1x32x32xf32> to vector<32x32xf32>
    %cst_156 = arith.constant dense<0.000000e+00> : vector<16x32xf32>
    %259 = tpu.matmul %217, %258, %cst_156 {dimension_numbers = #tpu.dot_dimension_numbers<[1], [0], [0], [1], [0, 0, 1, 1], [], []>} : vector<16x32xf32>, vector<32x32xf32>, vector<16x32xf32> -> vector<16x32xf32>
    %c0_157 = arith.constant 0 : index
    %c8_158 = arith.constant 8 : index
    %c0_159 = arith.constant 0 : index
    %260 = vector.load %arg9[%c0_157, %c8_158, %c0_159] : memref<1x20x32xf32, #tpu.memory_space<vmem>>, vector<1x1x32xf32>
    %261 = vector.shape_cast %260 : vector<1x1x32xf32> to vector<1x32xf32>
    %262 = vector.broadcast %261 : vector<1x32xf32> to vector<16x32xf32>
    %263 = arith.addf %259, %262 : vector<16x32xf32>
    %264 = vector.shape_cast %263 : vector<16x32xf32> to vector<1x16x32xf32>
    %265 = vector.shape_cast %234 : vector<8x32xf32> to vector<1x8x32xf32>
    %266 = vector.shape_cast %241 : vector<8x32xf32> to vector<1x8x32xf32>
    %267 = vector.broadcast %2 : f32 to vector<16x32xf32>
    %268 = arith.mulf %267, %256 : vector<16x32xf32>
    %269 = arith.addf %248, %268 : vector<16x32xf32>
    %270 = vector.shape_cast %269 : vector<16x32xf32> to vector<1x16x32xf32>
    %271 = vector.shape_cast %256 : vector<16x32xf32> to vector<1x16x32xf32>
    %c0_160 = arith.constant 0 : index
    %c11_161 = arith.constant 11 : index
    %c0_162 = arith.constant 0 : index
    %c0_163 = arith.constant 0 : index
    %272 = vector.load %arg8[%c0_160, %c11_161, %c0_162, %c0_163] : memref<1x13x32x32xf32, #tpu.memory_space<vmem>>, vector<1x1x32x32xf32>
    %273 = vector.shape_cast %272 : vector<1x1x32x32xf32> to vector<32x32xf32>
    %c0_164 = arith.constant 0 : index
    %c11_165 = arith.constant 11 : index
    %c0_166 = arith.constant 0 : index
    %274 = vector.load %arg9[%c0_164, %c11_165, %c0_166] : memref<1x20x32xf32, #tpu.memory_space<vmem>>, vector<1x1x32xf32>
    %275 = vector.shape_cast %274 : vector<1x1x32xf32> to vector<1x32xf32>
    %276 = vector.extract_strided_slice %265 {offsets = [0, 0, 0], sizes = [1, 8, 8], strides = [1, 1, 1]} : vector<1x8x32xf32> to vector<1x8x8xf32>
    %277 = vector.extract_strided_slice %270 {offsets = [0, 0, 0], sizes = [1, 16, 8], strides = [1, 1, 1]} : vector<1x16x32xf32> to vector<1x16x8xf32>
    "tpu.trace_start"() <{level = 10 : i32, message = "bqd,bkd->bqk"}> : () -> ()
    %cst_167 = arith.constant dense<0.000000e+00> : vector<1x8x16xf32>
    %278 = tpu.matmul %276, %277, %cst_167 {dimension_numbers = #tpu.dot_dimension_numbers<[2], [2], [1], [1], [0, 0, 0, 1, 1, 1], [0], [0]>} : vector<1x8x8xf32>, vector<1x16x8xf32>, vector<1x8x16xf32> -> vector<1x8x16xf32>
    "tpu.trace_stop"() : () -> ()
    %279 = vector.extract_strided_slice %266 {offsets = [0, 0, 0], sizes = [1, 8, 8], strides = [1, 1, 1]} : vector<1x8x32xf32> to vector<1x8x8xf32>
    %280 = vector.extract_strided_slice %271 {offsets = [0, 0, 0], sizes = [1, 16, 8], strides = [1, 1, 1]} : vector<1x16x32xf32> to vector<1x16x8xf32>
    "tpu.trace_start"() <{level = 10 : i32, message = "bqd,bkd->bqk"}> : () -> ()
    %cst_168 = arith.constant dense<0.000000e+00> : vector<1x8x16xf32>
    %281 = tpu.matmul %279, %280, %cst_168 {dimension_numbers = #tpu.dot_dimension_numbers<[2], [2], [1], [1], [0, 0, 0, 1, 1, 1], [0], [0]>} : vector<1x8x8xf32>, vector<1x16x8xf32>, vector<1x8x16xf32> -> vector<1x8x16xf32>
    "tpu.trace_stop"() : () -> ()
    %282 = arith.addf %278, %281 : vector<1x8x16xf32>
    %cst_169 = arith.constant dense<0xFF800000> : vector<1x8xf32>
    %283 = vector.multi_reduction <maximumf>, %282, %cst_169 [2] : vector<1x8x16xf32> to vector<1x8xf32>
    %284 = vector.shape_cast %283 : vector<1x8xf32> to vector<1x8x1xf32>
    %285 = vector.broadcast %284 : vector<1x8x1xf32> to vector<1x8x16xf32>
    %286 = arith.subf %282, %285 : vector<1x8x16xf32>
    %287 = math.exp %286 : vector<1x8x16xf32>
    %cst_170 = arith.constant dense<0.000000e+00> : vector<1x8xf32>
    %288 = vector.multi_reduction <add>, %287, %cst_170 [2] : vector<1x8x16xf32> to vector<1x8xf32>
    %289 = vector.shape_cast %288 : vector<1x8xf32> to vector<1x8x1xf32>
    %290 = vector.broadcast %289 : vector<1x8x1xf32> to vector<1x8x16xf32>
    %291 = arith.divf %287, %290 : vector<1x8x16xf32>
    %292 = vector.extract_strided_slice %264 {offsets = [0, 0, 0], sizes = [1, 16, 8], strides = [1, 1, 1]} : vector<1x16x32xf32> to vector<1x16x8xf32>
    "tpu.trace_start"() <{level = 10 : i32, message = "bqk,bkd->bqd"}> : () -> ()
    %cst_171 = arith.constant dense<0.000000e+00> : vector<1x8x8xf32>
    %293 = tpu.matmul %291, %292, %cst_171 {dimension_numbers = #tpu.dot_dimension_numbers<[2], [1], [1], [2], [0, 0, 0, 1, 1, 2], [0], [0]>} : vector<1x8x16xf32>, vector<1x16x8xf32>, vector<1x8x8xf32> -> vector<1x8x8xf32>
    "tpu.trace_stop"() : () -> ()
    %294 = vector.shape_cast %293 : vector<1x8x8xf32> to vector<8x8xf32>
    %295 = vector.extract_strided_slice %273 {offsets = [0, 0], sizes = [8, 32], strides = [1, 1]} : vector<32x32xf32> to vector<8x32xf32>
    %cst_172 = arith.constant dense<0.000000e+00> : vector<8x32xf32>
    %296 = tpu.matmul %294, %295, %cst_172 {dimension_numbers = #tpu.dot_dimension_numbers<[1], [0], [0], [1], [0, 0, 1, 1], [], []>} : vector<8x8xf32>, vector<8x32xf32>, vector<8x32xf32> -> vector<8x32xf32>
    %297 = vector.broadcast %275 : vector<1x32xf32> to vector<8x32xf32>
    %298 = arith.addf %297, %296 : vector<8x32xf32>
    %299 = vector.extract_strided_slice %265 {offsets = [0, 0, 8], sizes = [1, 8, 8], strides = [1, 1, 1]} : vector<1x8x32xf32> to vector<1x8x8xf32>
    %300 = vector.extract_strided_slice %270 {offsets = [0, 0, 8], sizes = [1, 16, 8], strides = [1, 1, 1]} : vector<1x16x32xf32> to vector<1x16x8xf32>
    "tpu.trace_start"() <{level = 10 : i32, message = "bqd,bkd->bqk"}> : () -> ()
    %cst_173 = arith.constant dense<0.000000e+00> : vector<1x8x16xf32>
    %301 = tpu.matmul %299, %300, %cst_173 {dimension_numbers = #tpu.dot_dimension_numbers<[2], [2], [1], [1], [0, 0, 0, 1, 1, 1], [0], [0]>} : vector<1x8x8xf32>, vector<1x16x8xf32>, vector<1x8x16xf32> -> vector<1x8x16xf32>
    "tpu.trace_stop"() : () -> ()
    %302 = vector.extract_strided_slice %266 {offsets = [0, 0, 8], sizes = [1, 8, 8], strides = [1, 1, 1]} : vector<1x8x32xf32> to vector<1x8x8xf32>
    %303 = vector.extract_strided_slice %271 {offsets = [0, 0, 8], sizes = [1, 16, 8], strides = [1, 1, 1]} : vector<1x16x32xf32> to vector<1x16x8xf32>
    "tpu.trace_start"() <{level = 10 : i32, message = "bqd,bkd->bqk"}> : () -> ()
    %cst_174 = arith.constant dense<0.000000e+00> : vector<1x8x16xf32>
    %304 = tpu.matmul %302, %303, %cst_174 {dimension_numbers = #tpu.dot_dimension_numbers<[2], [2], [1], [1], [0, 0, 0, 1, 1, 1], [0], [0]>} : vector<1x8x8xf32>, vector<1x16x8xf32>, vector<1x8x16xf32> -> vector<1x8x16xf32>
    "tpu.trace_stop"() : () -> ()
    %305 = arith.addf %301, %304 : vector<1x8x16xf32>
    %cst_175 = arith.constant dense<0xFF800000> : vector<1x8xf32>
    %306 = vector.multi_reduction <maximumf>, %305, %cst_175 [2] : vector<1x8x16xf32> to vector<1x8xf32>
    %307 = vector.shape_cast %306 : vector<1x8xf32> to vector<1x8x1xf32>
    %308 = vector.broadcast %307 : vector<1x8x1xf32> to vector<1x8x16xf32>
    %309 = arith.subf %305, %308 : vector<1x8x16xf32>
    %310 = math.exp %309 : vector<1x8x16xf32>
    %cst_176 = arith.constant dense<0.000000e+00> : vector<1x8xf32>
    %311 = vector.multi_reduction <add>, %310, %cst_176 [2] : vector<1x8x16xf32> to vector<1x8xf32>
    %312 = vector.shape_cast %311 : vector<1x8xf32> to vector<1x8x1xf32>
    %313 = vector.broadcast %312 : vector<1x8x1xf32> to vector<1x8x16xf32>
    %314 = arith.divf %310, %313 : vector<1x8x16xf32>
    %315 = vector.extract_strided_slice %264 {offsets = [0, 0, 8], sizes = [1, 16, 8], strides = [1, 1, 1]} : vector<1x16x32xf32> to vector<1x16x8xf32>
    "tpu.trace_start"() <{level = 10 : i32, message = "bqk,bkd->bqd"}> : () -> ()
    %cst_177 = arith.constant dense<0.000000e+00> : vector<1x8x8xf32>
    %316 = tpu.matmul %314, %315, %cst_177 {dimension_numbers = #tpu.dot_dimension_numbers<[2], [1], [1], [2], [0, 0, 0, 1, 1, 2], [0], [0]>} : vector<1x8x16xf32>, vector<1x16x8xf32>, vector<1x8x8xf32> -> vector<1x8x8xf32>
    "tpu.trace_stop"() : () -> ()
    %317 = vector.shape_cast %316 : vector<1x8x8xf32> to vector<8x8xf32>
    %318 = vector.extract_strided_slice %273 {offsets = [8, 0], sizes = [8, 32], strides = [1, 1]} : vector<32x32xf32> to vector<8x32xf32>
    %cst_178 = arith.constant dense<0.000000e+00> : vector<8x32xf32>
    %319 = tpu.matmul %317, %318, %cst_178 {dimension_numbers = #tpu.dot_dimension_numbers<[1], [0], [0], [1], [0, 0, 1, 1], [], []>} : vector<8x8xf32>, vector<8x32xf32>, vector<8x32xf32> -> vector<8x32xf32>
    %320 = arith.addf %298, %319 : vector<8x32xf32>
    %321 = vector.extract_strided_slice %265 {offsets = [0, 0, 16], sizes = [1, 8, 8], strides = [1, 1, 1]} : vector<1x8x32xf32> to vector<1x8x8xf32>
    %322 = vector.extract_strided_slice %270 {offsets = [0, 0, 16], sizes = [1, 16, 8], strides = [1, 1, 1]} : vector<1x16x32xf32> to vector<1x16x8xf32>
    "tpu.trace_start"() <{level = 10 : i32, message = "bqd,bkd->bqk"}> : () -> ()
    %cst_179 = arith.constant dense<0.000000e+00> : vector<1x8x16xf32>
    %323 = tpu.matmul %321, %322, %cst_179 {dimension_numbers = #tpu.dot_dimension_numbers<[2], [2], [1], [1], [0, 0, 0, 1, 1, 1], [0], [0]>} : vector<1x8x8xf32>, vector<1x16x8xf32>, vector<1x8x16xf32> -> vector<1x8x16xf32>
    "tpu.trace_stop"() : () -> ()
    %324 = vector.extract_strided_slice %266 {offsets = [0, 0, 16], sizes = [1, 8, 8], strides = [1, 1, 1]} : vector<1x8x32xf32> to vector<1x8x8xf32>
    %325 = vector.extract_strided_slice %271 {offsets = [0, 0, 16], sizes = [1, 16, 8], strides = [1, 1, 1]} : vector<1x16x32xf32> to vector<1x16x8xf32>
    "tpu.trace_start"() <{level = 10 : i32, message = "bqd,bkd->bqk"}> : () -> ()
    %cst_180 = arith.constant dense<0.000000e+00> : vector<1x8x16xf32>
    %326 = tpu.matmul %324, %325, %cst_180 {dimension_numbers = #tpu.dot_dimension_numbers<[2], [2], [1], [1], [0, 0, 0, 1, 1, 1], [0], [0]>} : vector<1x8x8xf32>, vector<1x16x8xf32>, vector<1x8x16xf32> -> vector<1x8x16xf32>
    "tpu.trace_stop"() : () -> ()
    %327 = arith.addf %323, %326 : vector<1x8x16xf32>
    %cst_181 = arith.constant dense<0xFF800000> : vector<1x8xf32>
    %328 = vector.multi_reduction <maximumf>, %327, %cst_181 [2] : vector<1x8x16xf32> to vector<1x8xf32>
    %329 = vector.shape_cast %328 : vector<1x8xf32> to vector<1x8x1xf32>
    %330 = vector.broadcast %329 : vector<1x8x1xf32> to vector<1x8x16xf32>
    %331 = arith.subf %327, %330 : vector<1x8x16xf32>
    %332 = math.exp %331 : vector<1x8x16xf32>
    %cst_182 = arith.constant dense<0.000000e+00> : vector<1x8xf32>
    %333 = vector.multi_reduction <add>, %332, %cst_182 [2] : vector<1x8x16xf32> to vector<1x8xf32>
    %334 = vector.shape_cast %333 : vector<1x8xf32> to vector<1x8x1xf32>
    %335 = vector.broadcast %334 : vector<1x8x1xf32> to vector<1x8x16xf32>
    %336 = arith.divf %332, %335 : vector<1x8x16xf32>
    %337 = vector.extract_strided_slice %264 {offsets = [0, 0, 16], sizes = [1, 16, 8], strides = [1, 1, 1]} : vector<1x16x32xf32> to vector<1x16x8xf32>
    "tpu.trace_start"() <{level = 10 : i32, message = "bqk,bkd->bqd"}> : () -> ()
    %cst_183 = arith.constant dense<0.000000e+00> : vector<1x8x8xf32>
    %338 = tpu.matmul %336, %337, %cst_183 {dimension_numbers = #tpu.dot_dimension_numbers<[2], [1], [1], [2], [0, 0, 0, 1, 1, 2], [0], [0]>} : vector<1x8x16xf32>, vector<1x16x8xf32>, vector<1x8x8xf32> -> vector<1x8x8xf32>
    "tpu.trace_stop"() : () -> ()
    %339 = vector.shape_cast %338 : vector<1x8x8xf32> to vector<8x8xf32>
    %340 = vector.extract_strided_slice %273 {offsets = [16, 0], sizes = [8, 32], strides = [1, 1]} : vector<32x32xf32> to vector<8x32xf32>
    %cst_184 = arith.constant dense<0.000000e+00> : vector<8x32xf32>
    %341 = tpu.matmul %339, %340, %cst_184 {dimension_numbers = #tpu.dot_dimension_numbers<[1], [0], [0], [1], [0, 0, 1, 1], [], []>} : vector<8x8xf32>, vector<8x32xf32>, vector<8x32xf32> -> vector<8x32xf32>
    %342 = arith.addf %320, %341 : vector<8x32xf32>
    %343 = vector.extract_strided_slice %265 {offsets = [0, 0, 24], sizes = [1, 8, 8], strides = [1, 1, 1]} : vector<1x8x32xf32> to vector<1x8x8xf32>
    %344 = vector.extract_strided_slice %270 {offsets = [0, 0, 24], sizes = [1, 16, 8], strides = [1, 1, 1]} : vector<1x16x32xf32> to vector<1x16x8xf32>
    "tpu.trace_start"() <{level = 10 : i32, message = "bqd,bkd->bqk"}> : () -> ()
    %cst_185 = arith.constant dense<0.000000e+00> : vector<1x8x16xf32>
    %345 = tpu.matmul %343, %344, %cst_185 {dimension_numbers = #tpu.dot_dimension_numbers<[2], [2], [1], [1], [0, 0, 0, 1, 1, 1], [0], [0]>} : vector<1x8x8xf32>, vector<1x16x8xf32>, vector<1x8x16xf32> -> vector<1x8x16xf32>
    "tpu.trace_stop"() : () -> ()
    %346 = vector.extract_strided_slice %266 {offsets = [0, 0, 24], sizes = [1, 8, 8], strides = [1, 1, 1]} : vector<1x8x32xf32> to vector<1x8x8xf32>
    %347 = vector.extract_strided_slice %271 {offsets = [0, 0, 24], sizes = [1, 16, 8], strides = [1, 1, 1]} : vector<1x16x32xf32> to vector<1x16x8xf32>
    "tpu.trace_start"() <{level = 10 : i32, message = "bqd,bkd->bqk"}> : () -> ()
    %cst_186 = arith.constant dense<0.000000e+00> : vector<1x8x16xf32>
    %348 = tpu.matmul %346, %347, %cst_186 {dimension_numbers = #tpu.dot_dimension_numbers<[2], [2], [1], [1], [0, 0, 0, 1, 1, 1], [0], [0]>} : vector<1x8x8xf32>, vector<1x16x8xf32>, vector<1x8x16xf32> -> vector<1x8x16xf32>
    "tpu.trace_stop"() : () -> ()
    %349 = arith.addf %345, %348 : vector<1x8x16xf32>
    %cst_187 = arith.constant dense<0xFF800000> : vector<1x8xf32>
    %350 = vector.multi_reduction <maximumf>, %349, %cst_187 [2] : vector<1x8x16xf32> to vector<1x8xf32>
    %351 = vector.shape_cast %350 : vector<1x8xf32> to vector<1x8x1xf32>
    %352 = vector.broadcast %351 : vector<1x8x1xf32> to vector<1x8x16xf32>
    %353 = arith.subf %349, %352 : vector<1x8x16xf32>
    %354 = math.exp %353 : vector<1x8x16xf32>
    %cst_188 = arith.constant dense<0.000000e+00> : vector<1x8xf32>
    %355 = vector.multi_reduction <add>, %354, %cst_188 [2] : vector<1x8x16xf32> to vector<1x8xf32>
    %356 = vector.shape_cast %355 : vector<1x8xf32> to vector<1x8x1xf32>
    %357 = vector.broadcast %356 : vector<1x8x1xf32> to vector<1x8x16xf32>
    %358 = arith.divf %354, %357 : vector<1x8x16xf32>
    %359 = vector.extract_strided_slice %264 {offsets = [0, 0, 24], sizes = [1, 16, 8], strides = [1, 1, 1]} : vector<1x16x32xf32> to vector<1x16x8xf32>
    "tpu.trace_start"() <{level = 10 : i32, message = "bqk,bkd->bqd"}> : () -> ()
    %cst_189 = arith.constant dense<0.000000e+00> : vector<1x8x8xf32>
    %360 = tpu.matmul %358, %359, %cst_189 {dimension_numbers = #tpu.dot_dimension_numbers<[2], [1], [1], [2], [0, 0, 0, 1, 1, 2], [0], [0]>} : vector<1x8x16xf32>, vector<1x16x8xf32>, vector<1x8x8xf32> -> vector<1x8x8xf32>
    "tpu.trace_stop"() : () -> ()
    %361 = vector.shape_cast %360 : vector<1x8x8xf32> to vector<8x8xf32>
    %362 = vector.extract_strided_slice %273 {offsets = [24, 0], sizes = [8, 32], strides = [1, 1]} : vector<32x32xf32> to vector<8x32xf32>
    %cst_190 = arith.constant dense<0.000000e+00> : vector<8x32xf32>
    %363 = tpu.matmul %361, %362, %cst_190 {dimension_numbers = #tpu.dot_dimension_numbers<[1], [0], [0], [1], [0, 0, 1, 1], [], []>} : vector<8x8xf32>, vector<8x32xf32>, vector<8x32xf32> -> vector<8x32xf32>
    %364 = arith.addf %342, %363 : vector<8x32xf32>
    %365 = arith.addf %216, %364 : vector<8x32xf32>
    %c0_191 = arith.constant 0 : index
    %c15 = arith.constant 15 : index
    %c0_192 = arith.constant 0 : index
    %366 = vector.load %arg9[%c0_191, %c15, %c0_192] : memref<1x20x32xf32, #tpu.memory_space<vmem>>, vector<1x1x32xf32>
    %367 = vector.shape_cast %366 : vector<1x1x32xf32> to vector<1x32xf32>
    %c0_193 = arith.constant 0 : index
    %c16 = arith.constant 16 : index
    %c0_194 = arith.constant 0 : index
    %368 = vector.load %arg9[%c0_193, %c16, %c0_194] : memref<1x20x32xf32, #tpu.memory_space<vmem>>, vector<1x1x32xf32>
    %369 = vector.shape_cast %368 : vector<1x1x32xf32> to vector<1x32xf32>
    %cst_195 = arith.constant dense<0.000000e+00> : vector<8xf32>
    %370 = vector.multi_reduction <add>, %365, %cst_195 [1] : vector<8x32xf32> to vector<8xf32>
    %371 = vector.shape_cast %370 : vector<8xf32> to vector<8x1xf32>
    %cst_196 = arith.constant 3.200000e+01 : f32
    %372 = vector.broadcast %cst_196 : f32 to vector<8x1xf32>
    %373 = arith.divf %371, %372 : vector<8x1xf32>
    %374 = vector.broadcast %373 : vector<8x1xf32> to vector<8x32xf32>
    %375 = arith.subf %365, %374 : vector<8x32xf32>
    %376 = arith.mulf %375, %375 : vector<8x32xf32>
    %cst_197 = arith.constant dense<0.000000e+00> : vector<8xf32>
    %377 = vector.multi_reduction <add>, %376, %cst_197 [1] : vector<8x32xf32> to vector<8xf32>
    %378 = vector.shape_cast %377 : vector<8xf32> to vector<8x1xf32>
    %cst_198 = arith.constant 3.200000e+01 : f32
    %379 = vector.broadcast %cst_198 : f32 to vector<8x1xf32>
    %380 = arith.divf %378, %379 : vector<8x1xf32>
    %cst_199 = arith.constant 9.99999974E-6 : f32
    %381 = vector.broadcast %cst_199 : f32 to vector<8x1xf32>
    %382 = arith.addf %380, %381 : vector<8x1xf32>
    %383 = math.rsqrt %382 : vector<8x1xf32>
    %384 = vector.broadcast %383 : vector<8x1xf32> to vector<8x32xf32>
    %385 = arith.mulf %375, %384 : vector<8x32xf32>
    %386 = vector.broadcast %367 : vector<1x32xf32> to vector<8x32xf32>
    %387 = arith.mulf %385, %386 : vector<8x32xf32>
    %388 = vector.broadcast %369 : vector<1x32xf32> to vector<8x32xf32>
    %389 = arith.addf %387, %388 : vector<8x32xf32>
    %c0_200 = arith.constant 0 : index
    %c0_201 = arith.constant 0 : index
    %c0_202 = arith.constant 0 : index
    %390 = vector.load %arg10[%c0_200, %c0_201, %c0_202] : memref<1x32x64xf32, #tpu.memory_space<vmem>>, vector<1x32x64xf32>
    %391 = vector.shape_cast %390 : vector<1x32x64xf32> to vector<32x64xf32>
    %cst_203 = arith.constant dense<0.000000e+00> : vector<8x64xf32>
    %392 = tpu.matmul %389, %391, %cst_203 {dimension_numbers = #tpu.dot_dimension_numbers<[1], [0], [0], [1], [0, 0, 1, 1], [], []>} : vector<8x32xf32>, vector<32x64xf32>, vector<8x64xf32> -> vector<8x64xf32>
    %c0_204 = arith.constant 0 : index
    %c0_205 = arith.constant 0 : index
    %c0_206 = arith.constant 0 : index
    %393 = vector.load %arg12[%c0_204, %c0_205, %c0_206] : memref<1x1x64xf32, #tpu.memory_space<vmem>>, vector<1x1x64xf32>
    %394 = vector.shape_cast %393 : vector<1x1x64xf32> to vector<1x64xf32>
    %395 = vector.broadcast %394 : vector<1x64xf32> to vector<8x64xf32>
    %396 = arith.addf %392, %395 : vector<8x64xf32>
    %cst_207 = arith.constant 0.000000e+00 : f32
    %397 = vector.broadcast %cst_207 : f32 to vector<8x64xf32>
    %398 = arith.maximumf %396, %397 : vector<8x64xf32>
    %c0_208 = arith.constant 0 : index
    %c0_209 = arith.constant 0 : index
    %c0_210 = arith.constant 0 : index
    %399 = vector.load %arg11[%c0_208, %c0_209, %c0_210] : memref<1x64x32xf32, #tpu.memory_space<vmem>>, vector<1x64x32xf32>
    %400 = vector.shape_cast %399 : vector<1x64x32xf32> to vector<64x32xf32>
    %cst_211 = arith.constant dense<0.000000e+00> : vector<8x32xf32>
    %401 = tpu.matmul %398, %400, %cst_211 {dimension_numbers = #tpu.dot_dimension_numbers<[1], [0], [0], [1], [0, 0, 1, 1], [], []>} : vector<8x64xf32>, vector<64x32xf32>, vector<8x32xf32> -> vector<8x32xf32>
    %c0_212 = arith.constant 0 : index
    %c19 = arith.constant 19 : index
    %c0_213 = arith.constant 0 : index
    %402 = vector.load %arg9[%c0_212, %c19, %c0_213] : memref<1x20x32xf32, #tpu.memory_space<vmem>>, vector<1x1x32xf32>
    %403 = vector.shape_cast %402 : vector<1x1x32xf32> to vector<1x32xf32>
    %404 = vector.broadcast %403 : vector<1x32xf32> to vector<8x32xf32>
    %405 = arith.addf %401, %404 : vector<8x32xf32>
    %406 = arith.addf %389, %405 : vector<8x32xf32>
    %c0_214 = arith.constant 0 : index
    %c17 = arith.constant 17 : index
    %c0_215 = arith.constant 0 : index
    %407 = vector.load %arg9[%c0_214, %c17, %c0_215] : memref<1x20x32xf32, #tpu.memory_space<vmem>>, vector<1x1x32xf32>
    %408 = vector.shape_cast %407 : vector<1x1x32xf32> to vector<1x32xf32>
    %c0_216 = arith.constant 0 : index
    %c18 = arith.constant 18 : index
    %c0_217 = arith.constant 0 : index
    %409 = vector.load %arg9[%c0_216, %c18, %c0_217] : memref<1x20x32xf32, #tpu.memory_space<vmem>>, vector<1x1x32xf32>
    %410 = vector.shape_cast %409 : vector<1x1x32xf32> to vector<1x32xf32>
    %cst_218 = arith.constant dense<0.000000e+00> : vector<8xf32>
    %411 = vector.multi_reduction <add>, %406, %cst_218 [1] : vector<8x32xf32> to vector<8xf32>
    %412 = vector.shape_cast %411 : vector<8xf32> to vector<8x1xf32>
    %cst_219 = arith.constant 3.200000e+01 : f32
    %413 = vector.broadcast %cst_219 : f32 to vector<8x1xf32>
    %414 = arith.divf %412, %413 : vector<8x1xf32>
    %415 = vector.broadcast %414 : vector<8x1xf32> to vector<8x32xf32>
    %416 = arith.subf %406, %415 : vector<8x32xf32>
    %417 = arith.mulf %416, %416 : vector<8x32xf32>
    %cst_220 = arith.constant dense<0.000000e+00> : vector<8xf32>
    %418 = vector.multi_reduction <add>, %417, %cst_220 [1] : vector<8x32xf32> to vector<8xf32>
    %419 = vector.shape_cast %418 : vector<8xf32> to vector<8x1xf32>
    %cst_221 = arith.constant 3.200000e+01 : f32
    %420 = vector.broadcast %cst_221 : f32 to vector<8x1xf32>
    %421 = arith.divf %419, %420 : vector<8x1xf32>
    %cst_222 = arith.constant 9.99999974E-6 : f32
    %422 = vector.broadcast %cst_222 : f32 to vector<8x1xf32>
    %423 = arith.addf %421, %422 : vector<8x1xf32>
    %424 = math.rsqrt %423 : vector<8x1xf32>
    %425 = vector.broadcast %424 : vector<8x1xf32> to vector<8x32xf32>
    %426 = arith.mulf %416, %425 : vector<8x32xf32>
    %427 = vector.broadcast %408 : vector<1x32xf32> to vector<8x32xf32>
    %428 = arith.mulf %426, %427 : vector<8x32xf32>
    %429 = vector.broadcast %410 : vector<1x32xf32> to vector<8x32xf32>
    %430 = arith.addf %428, %429 : vector<8x32xf32>
    %c0_223 = arith.constant 0 : index
    %c0_224 = arith.constant 0 : index
    %431 = vector.load %arg15[%c0_223, %c0_224] : memref<8x32xf32, #tpu.memory_space<vmem>>, vector<8x32xf32>
    tpu.vector_store %arg15[%c0_223, %c0_224], %430 {strides = array<i32>} : memref<8x32xf32, #tpu.memory_space<vmem>>, vector<8x32xf32>,
    %c7_225 = arith.constant 7 : index
    %c0_226 = arith.constant 0 : index
    %432 = vector.load %arg6[%c7_225, %c0_226] : memref<12x32xf32, #tpu.memory_space<vmem>>, vector<1x32xf32>
    %c8_227 = arith.constant 8 : index
    %c0_228 = arith.constant 0 : index
    %433 = vector.load %arg6[%c8_227, %c0_228] : memref<12x32xf32, #tpu.memory_space<vmem>>, vector<1x32xf32>
    %cst_229 = arith.constant dense<0.000000e+00> : vector<8xf32>
    %434 = vector.multi_reduction <add>, %430, %cst_229 [1] : vector<8x32xf32> to vector<8xf32>
    %435 = vector.shape_cast %434 : vector<8xf32> to vector<8x1xf32>
    %cst_230 = arith.constant 3.200000e+01 : f32
    %436 = vector.broadcast %cst_230 : f32 to vector<8x1xf32>
    %437 = arith.divf %435, %436 : vector<8x1xf32>
    %438 = vector.broadcast %437 : vector<8x1xf32> to vector<8x32xf32>
    %439 = arith.subf %430, %438 : vector<8x32xf32>
    %440 = arith.mulf %439, %439 : vector<8x32xf32>
    %cst_231 = arith.constant dense<0.000000e+00> : vector<8xf32>
    %441 = vector.multi_reduction <add>, %440, %cst_231 [1] : vector<8x32xf32> to vector<8xf32>
    %442 = vector.shape_cast %441 : vector<8xf32> to vector<8x1xf32>
    %cst_232 = arith.constant 3.200000e+01 : f32
    %443 = vector.broadcast %cst_232 : f32 to vector<8x1xf32>
    %444 = arith.divf %442, %443 : vector<8x1xf32>
    %cst_233 = arith.constant 9.99999974E-6 : f32
    %445 = vector.broadcast %cst_233 : f32 to vector<8x1xf32>
    %446 = arith.addf %444, %445 : vector<8x1xf32>
    %447 = math.rsqrt %446 : vector<8x1xf32>
    %448 = vector.broadcast %447 : vector<8x1xf32> to vector<8x32xf32>
    %449 = arith.mulf %439, %448 : vector<8x32xf32>
    %450 = vector.broadcast %432 : vector<1x32xf32> to vector<8x32xf32>
    %451 = arith.mulf %449, %450 : vector<8x32xf32>
    %452 = vector.broadcast %433 : vector<1x32xf32> to vector<8x32xf32>
    %453 = arith.addf %451, %452 : vector<8x32xf32>
    %454 = vector.shape_cast %453 : vector<8x32xf32> to vector<1x1x8x32xf32>
    %c0_234 = arith.constant 0 : index
    %c0_235 = arith.constant 0 : index
    %c0_236 = arith.constant 0 : index
    %c0_237 = arith.constant 0 : index
    %455 = vector.load %arg13[%c0_234, %c0_235, %c0_236, %c0_237] : memref<1x1x8x32xf32, #tpu.memory_space<vmem>>, vector<1x1x8x32xf32>
    tpu.vector_store %arg13[%c0_234, %c0_235, %c0_236, %c0_237], %454 {strides = array<i32>} : memref<1x1x8x32xf32, #tpu.memory_space<vmem>>, vector<1x1x8x32xf32>,
    %c4_238 = arith.constant 4 : index
    %c0_239 = arith.constant 0 : index
    %c0_240 = arith.constant 0 : index
    %456 = vector.load %arg7[%c4_238, %c0_239, %c0_240] : memref<7x32x32xf32, #tpu.memory_space<vmem>>, vector<1x32x32xf32>
    %457 = vector.shape_cast %456 : vector<1x32x32xf32> to vector<32x32xf32>
    %cst_241 = arith.constant dense<0.000000e+00> : vector<8x32xf32>
    %458 = tpu.matmul %430, %457, %cst_241 {dimension_numbers = #tpu.dot_dimension_numbers<[1], [0], [0], [1], [0, 0, 1, 1], [], []>} : vector<8x32xf32>, vector<32x32xf32>, vector<8x32xf32> -> vector<8x32xf32>
    %c4_242 = arith.constant 4 : index
    %c0_243 = arith.constant 0 : index
    %459 = vector.load %arg6[%c4_242, %c0_243] : memref<12x32xf32, #tpu.memory_space<vmem>>, vector<1x32xf32>
    %460 = vector.broadcast %459 : vector<1x32xf32> to vector<8x32xf32>
    %461 = arith.addf %458, %460 : vector<8x32xf32>
    %cst_244 = arith.constant 0.000000e+00 : f32
    %462 = vector.broadcast %cst_244 : f32 to vector<8x32xf32>
    %463 = arith.maximumf %461, %462 : vector<8x32xf32>
    %c5_245 = arith.constant 5 : index
    %c0_246 = arith.constant 0 : index
    %c0_247 = arith.constant 0 : index
    %464 = vector.load %arg7[%c5_245, %c0_246, %c0_247] : memref<7x32x32xf32, #tpu.memory_space<vmem>>, vector<1x32x32xf32>
    %465 = vector.shape_cast %464 : vector<1x32x32xf32> to vector<32x32xf32>
    %cst_248 = arith.constant dense<0.000000e+00> : vector<8x32xf32>
    %466 = tpu.matmul %463, %465, %cst_248 {dimension_numbers = #tpu.dot_dimension_numbers<[1], [0], [0], [1], [0, 0, 1, 1], [], []>} : vector<8x32xf32>, vector<32x32xf32>, vector<8x32xf32> -> vector<8x32xf32>
    %c5_249 = arith.constant 5 : index
    %c0_250 = arith.constant 0 : index
    %467 = vector.load %arg6[%c5_249, %c0_250] : memref<12x32xf32, #tpu.memory_space<vmem>>, vector<1x32xf32>
    %468 = vector.broadcast %467 : vector<1x32xf32> to vector<8x32xf32>
    %469 = arith.addf %466, %468 : vector<8x32xf32>
    %cst_251 = arith.constant 0.000000e+00 : f32
    %470 = vector.broadcast %cst_251 : f32 to vector<8x32xf32>
    %471 = arith.maximumf %469, %470 : vector<8x32xf32>
    %c6_252 = arith.constant 6 : index
    %c0_253 = arith.constant 0 : index
    %c0_254 = arith.constant 0 : index
    %472 = vector.load %arg7[%c6_252, %c0_253, %c0_254] : memref<7x32x32xf32, #tpu.memory_space<vmem>>, vector<1x32x32xf32>
    %473 = vector.shape_cast %472 : vector<1x32x32xf32> to vector<32x32xf32>
    %cst_255 = arith.constant dense<0.000000e+00> : vector<8x32xf32>
    %474 = tpu.matmul %471, %473, %cst_255 {dimension_numbers = #tpu.dot_dimension_numbers<[1], [0], [0], [1], [0, 0, 1, 1], [], []>} : vector<8x32xf32>, vector<32x32xf32>, vector<8x32xf32> -> vector<8x32xf32>
    %c6_256 = arith.constant 6 : index
    %c0_257 = arith.constant 0 : index
    %475 = vector.load %arg6[%c6_256, %c0_257] : memref<12x32xf32, #tpu.memory_space<vmem>>, vector<1x32xf32>
    %476 = vector.broadcast %475 : vector<1x32xf32> to vector<8x32xf32>
    %477 = arith.addf %474, %476 : vector<8x32xf32>
    %478 = vector.extract_strided_slice %477 {offsets = [0, 0], sizes = [8, 2], strides = [1, 1]} : vector<8x32xf32> to vector<8x2xf32>
    %479 = vector.shape_cast %478 : vector<8x2xf32> to vector<1x8x2xf32>
    %cst_258 = arith.constant 0.000000e+00 : f32
    %cst_259 = arith.constant 1.000000e+00 : f32
    %480 = vector.broadcast %cst_258 : f32 to vector<1x8x2xf32>
    %481 = arith.maximumf %480, %7 : vector<1x8x2xf32>
    %482 = vector.broadcast %cst_259 : f32 to vector<1x8x2xf32>
    %483 = arith.minimumf %482, %481 : vector<1x8x2xf32>
    %cst_260 = arith.constant 1.000000e-03 : f32
    %484 = vector.broadcast %cst_260 : f32 to vector<1x8x2xf32>
    %485 = arith.maximumf %483, %484 : vector<1x8x2xf32>
    %cst_261 = arith.constant 1.000000e+00 : f32
    %486 = vector.broadcast %cst_261 : f32 to vector<1x8x2xf32>
    %487 = arith.subf %486, %483 : vector<1x8x2xf32>
    %cst_262 = arith.constant 1.000000e-03 : f32
    %488 = vector.broadcast %cst_262 : f32 to vector<1x8x2xf32>
    %489 = arith.maximumf %487, %488 : vector<1x8x2xf32>
    %490 = arith.divf %485, %489 : vector<1x8x2xf32>
    %491 = math.log %490 : vector<1x8x2xf32>
    %492 = arith.addf %479, %491 : vector<1x8x2xf32>
    %cst_263 = arith.constant 0.000000e+00 : f32
    %493 = vector.broadcast %cst_263 : f32 to vector<1x8x2xf32>
    %494 = arith.subf %493, %492 : vector<1x8x2xf32>
    %495 = math.exp %494 : vector<1x8x2xf32>
    %cst_264 = arith.constant 1.000000e+00 : f32
    %496 = vector.broadcast %cst_264 : f32 to vector<1x8x2xf32>
    %497 = arith.addf %496, %495 : vector<1x8x2xf32>
    %cst_265 = arith.constant 1.000000e+00 : f32
    %498 = vector.broadcast %cst_265 : f32 to vector<1x8x2xf32>
    %499 = arith.divf %498, %497 : vector<1x8x2xf32>
    %c0_266 = arith.constant 0 : index
    %c0_267 = arith.constant 0 : index
    %c0_268 = arith.constant 0 : index
    %500 = vector.load %arg16[%c0_266, %c0_267, %c0_268] : memref<1x8x2xf32, #tpu.memory_space<vmem>>, vector<1x8x2xf32>
    tpu.vector_store %arg16[%c0_266, %c0_267, %c0_268], %499 {strides = array<i32>} : memref<1x8x2xf32, #tpu.memory_space<vmem>>, vector<1x8x2xf32>,
    return
  }
  func.func @transform_0(%arg0: i32, %arg1: i32) -> (i32, i32) {
    %c0_i32 = arith.constant 0 : i32
    %c0_i32_0 = arith.constant 0 : i32
    return %arg0, %c0_i32 : i32, i32
  }
  func.func @transform_1(%arg0: i32, %arg1: i32) -> (i32, i32) {
    %c0_i32 = arith.constant 0 : i32
    %c0_i32_0 = arith.constant 0 : i32
    return %arg0, %c0_i32 : i32, i32
  }
  func.func @transform_2(%arg0: i32, %arg1: i32) -> (i32, i32) {
    %c0_i32 = arith.constant 0 : i32
    %c0_i32_0 = arith.constant 0 : i32
    return %arg0, %c0_i32 : i32, i32
  }
  func.func @transform_3(%arg0: i32, %arg1: i32) -> (i32, i32, i32) {
    %c0_i32 = arith.constant 0 : i32
    %c0_i32_0 = arith.constant 0 : i32
    %c0_i32_1 = arith.constant 0 : i32
    return %arg0, %c0_i32, %c0_i32_0 : i32, i32, i32
  }
  func.func @transform_4(%arg0: i32, %arg1: i32) -> (i32, i32) {
    %c0_i32 = arith.constant 0 : i32
    %c0_i32_0 = arith.constant 0 : i32
    %c0_i32_1 = arith.constant 0 : i32
    return %c0_i32, %c0_i32_0 : i32, i32
  }
  func.func @transform_5(%arg0: i32, %arg1: i32) -> (i32, i32, i32) {
    %c0_i32 = arith.constant 0 : i32
    %c0_i32_0 = arith.constant 0 : i32
    %c0_i32_1 = arith.constant 0 : i32
    %c0_i32_2 = arith.constant 0 : i32
    return %c0_i32, %c0_i32_0, %c0_i32_1 : i32, i32, i32
  }
  func.func @transform_6(%arg0: i32, %arg1: i32) -> (i32, i32, i32, i32) {
    %c0_i32 = arith.constant 0 : i32
    %c0_i32_0 = arith.constant 0 : i32
    %c0_i32_1 = arith.constant 0 : i32
    %c0_i32_2 = arith.constant 0 : i32
    return %arg1, %c0_i32, %c0_i32_0, %c0_i32_1 : i32, i32, i32, i32
  }
  func.func @transform_7(%arg0: i32, %arg1: i32) -> (i32, i32, i32) {
    %c0_i32 = arith.constant 0 : i32
    %c0_i32_0 = arith.constant 0 : i32
    %c0_i32_1 = arith.constant 0 : i32
    return %arg1, %c0_i32, %c0_i32_0 : i32, i32, i32
  }
  func.func @transform_8(%arg0: i32, %arg1: i32) -> (i32, i32, i32) {
    %c0_i32 = arith.constant 0 : i32
    %c0_i32_0 = arith.constant 0 : i32
    %c0_i32_1 = arith.constant 0 : i32
    return %arg1, %c0_i32, %c0_i32_0 : i32, i32, i32
  }
  func.func @transform_9(%arg0: i32, %arg1: i32) -> (i32, i32, i32) {
    %c0_i32 = arith.constant 0 : i32
    %c0_i32_0 = arith.constant 0 : i32
    %c0_i32_1 = arith.constant 0 : i32
    return %arg1, %c0_i32, %c0_i32_0 : i32, i32, i32
  }
  func.func @transform_10(%arg0: i32, %arg1: i32) -> (i32, i32, i32) {
    %c0_i32 = arith.constant 0 : i32
    %c0_i32_0 = arith.constant 0 : i32
    %c0_i32_1 = arith.constant 0 : i32
    return %arg1, %c0_i32, %c0_i32_0 : i32, i32, i32
  }
  func.func @transform_11(%arg0: i32, %arg1: i32) -> (i32, i32, i32, i32) {
    %c0_i32 = arith.constant 0 : i32
    %c0_i32_0 = arith.constant 0 : i32
    %c0_i32_1 = arith.constant 0 : i32
    return %arg1, %arg0, %c0_i32, %c0_i32_0 : i32, i32, i32, i32
  }
  func.func @transform_12(%arg0: i32, %arg1: i32) -> (i32, i32, i32, i32) {
    %c0_i32 = arith.constant 0 : i32
    %c0_i32_0 = arith.constant 0 : i32
    %c0_i32_1 = arith.constant 0 : i32
    return %arg1, %arg0, %c0_i32, %c0_i32_0 : i32, i32, i32, i32
  }
}

</mosaic_0001>

<bundles_post_ra>
// kernel: transformer_decoder_forward.1
= control target key start
LH: loop header
LB: loop body
LE: loop exit
PB: predicated region body
PF: predicated region fallthrough
CT: control target
= control target key end

     0   :  { %s7533_s0 = inlined_call_operand.vmem [shape: f32[16,32], index: 0, kind: input, shape index: {}]   ;;  %s7534_s1 = inlined_call_operand.vmem [shape: f32[32,32], index: 1, kind: input, shape index: {}]   ;;  %s7535_s2 = inlined_call_operand.vmem [shape: f32[32,32], index: 2, kind: input, shape index: {}]   ;;  %s7536_s3 = inlined_call_operand.vmem [shape: f32[2,8,2], index: 3, kind: input, shape index: {}]   ;;  %s7537_s4 = inlined_call_operand.vmem [shape: f32[12,32], index: 4, kind: input, shape index: {}]   ;;  %s7538_s5 = inlined_call_operand.vmem [shape: f32[7,32,32], index: 5, kind: input, shape index: {}]   ;;  %s7539_s6 = inlined_call_operand.hbm [shape: f32[2,13,32,32], index: 6, kind: input, shape index: {}]   ;;  %s7540_s7 = inlined_call_operand.vmem [shape: f32[2,20,32], index: 7, kind: input, shape index: {}]   ;;  %s7541_s8 = inlined_call_operand.vmem [shape: f32[2,32,64], index: 8, kind: input, shape index: {}]   ;;  %s7542_s9 = inlined_call_operand.vmem [shape: f32[2,64,32], index: 9, kind: input, shape index: {}]   ;;  %s7543_s10 = inlined_call_operand.vmem [shape: f32[2,1,64], index: 10, kind: input, shape index: {}]   ;;  %s7544_s11 = inlined_call_operand.hbm [shape: f32[2,2,8,32], index: 11, kind: output, shape index: {0}]   ;;  %s7545_s12 = inlined_call_operand.vmem [shape: f32[2,2,8,2], index: 12, kind: output, shape index: {1}]  }
   0x1   :  { %7568 = sst [smem:[#allocation27_spill]] %s7533_s0 }
   0x2   :  { %7569 = sst [smem:[#allocation28_spill]] %s7534_s1 }
   0x3   :  { %7570 = sst [smem:[#allocation29_spill]] %s7535_s2 }
   0x4   :  { %7571 = sst [smem:[#allocation30_spill]] %s7536_s3 }
   0x5   :  { %7572 = sst [smem:[#allocation31_spill]] %s7537_s4 }
   0x6   :  { %7573 = sst [smem:[#allocation32_spill]] %s7538_s5 }
   0x7   :  { %7574 = sst [smem:[#allocation33_spill]] %s7539_s6 }
   0x8   :  { %7575 = sst [smem:[#allocation34_spill]] %s7541_s8 }
   0x9   :  { %7576 = sst [smem:[#allocation35_spill]] %s7543_s10 }
   0xa   :  { %7577 = sst [smem:[#allocation36_spill]] %s7544_s11 }
   0xb   :  { %7578 = sst [smem:[#allocation37_spill]] %s7545_s12 }
   0xc   :  { %18 = vsyncpa [#allocation5], 0 }
   0xd   :  { %20 = vsyncpa [#allocation5 + $0x1], 0 }
   0xe   :  { %21 = vsyncpa [#allocation6], 0 }
   0xf   :  { %23 = vsyncpa [#allocation6 + $0x1], 0  ;;  %s6646_s21 = smov 0   ;;  %s6648_s22 = smov 0  }
  0x10   :  { %s6650_s23 = smov 0   ;;  %s6652_s24 = smov 0  }
  0x11   :  { %s6654_s25 = smov 0   ;;  %s6656_s26 = smov 0  }
  0x12   :  { %s6658_s27 = smov 0   ;;  %s6660_s28 = smov 0  }
  0x13   :  { %s6662_s29 = smov 0   ;;  %s6664_s30 = smov 0  }
  0x14   :  { %s6666_s13 = smov 0  }
  0x15 LB: > { %7579 = sst [smem:[#allocation10_spill]] %s6521_s21  ;;  %s5219_s14 = sadd.s32 4294967295, %s6561_s13   ;;  %s6561_s13 = sphi %s6666_s13, %s29_s13   ;;  %s6557_s30 = sphi %s6664_s30, %s7636_s30   ;;  %s6553_s29 = sphi %s6662_s29, %s7635_s29   ;;  %s6549_s28 = sphi %s6660_s28, %s7634_s28   ;;  %s6545_s27 = sphi %s6658_s27, %s7633_s27   ;;  %s6541_s26 = sphi %s6656_s26, %s7632_s26   ;;  %s6537_s25 = sphi %s6654_s25, %s7631_s25   ;;  %s6533_s24 = sphi %s6652_s24, %s7630_s24   ;;  %s6529_s23 = sphi %s6650_s23, %s7629_s23   ;;  %s6525_s22 = sphi %s6648_s22, %s7628_s22   ;;  %s6521_s21 = sphi %s6646_s21, %s7627_s21  }
  0x16   : > { %7580 = sst [smem:[#allocation11_spill]] %s6525_s22  ;;  %s5220_s15 = sadd.s32 4294967294, %s6561_s13  }
  0x17   : > { %7581 = sst [smem:[#allocation12_spill]] %s6529_s23  ;;  %s38_s16 = sadd.s32 1, %s6553_s29 }
  0x18   : > { %7582 = sst [smem:[#allocation13_spill]] %s6537_s25  ;;  %s41_s17 = sadd.s32 1, %s6557_s30 }
  0x19   : > { %7583 = sst [smem:[#allocation14_spill]] %s6541_s26  ;;  %p39_p0 = scmp.ge.s32.totalorder %s38_s16, 2 }
  0x1a   : > { %7584 = sst [smem:[#allocation15_spill]] %s6549_s28  ;;  %s194_s18 = sadd.s32 1, %s6541_s26 }
  0x1b   : > { %7585 = sst [smem:[#allocation16_spill]] %s6553_s29  ;;  %p201_p1 = scmp.ne.s32.totalorder %s6541_s26, %s6537_s25 }
  0x1c   : > { %7586 = sst [smem:[#allocation17_spill]] %s6557_s30  ;;  %p202_p2 = scmp.eq.s32.totalorder %s6561_s13, 0 }
  0x1d   : > { %7587 = sst [smem:[#allocation18_spill]] %s6561_s13  ;;  %s7638_s16 = smov (%p39_p0, %s38_s16), 0 }
  0x1e   : > { %7588 = sst [smem:[#allocation19_spill]] %s7638_s16  ;;  %s7640_s17 = smov (!%p39_p0, %s41_s17), %s6557_s30 }
  0x1f   : > { %s191_s19 = ssub.s32 %s6553_s29, %s7638_s16  ;;  %p6712_p3 = por %p202_p2, %p201_p1 }
  0x20   : > { %p43_p4 = scmp.ge.s32.totalorder %s7640_s17, 2  ;;  %p192_p5 = scmp.eq.s32.totalorder %s191_s19, 0 }
  0x21   : > { %p207_p6 = scmp.ne.s32.totalorder %s6537_s25, %s6533_s24  ;;  %p208_p7 = scmp.eq.s32.totalorder %s5219_s14, 0 }
  0x22   : > { %s7642_s17 = smov (%p43_p4, %s7640_s17), 0  ;;  %s326_s12 = sadd.s32 1, %s6529_s23 }
  0x23   : > { %7590 = sst [smem:[#allocation20_spill]] %s7642_s17  ;;  %p6722_p8 = por %p208_p7, %p207_p6 }
  0x24   : > { %s6720_s11 = scalar_select %p192_p5, %s6541_s26, %s194_s18  }
  0x25   : > { %s322_s16 = ssub.s32 %s6557_s30, %s7642_s17  ;;  %p336_p10 = scmp.ne.s32.totalorder %s6529_s23, %s6525_s22 }
  0x26   : > { %7591 = sst [smem:[#allocation21_spill]] %s6720_s11  ;;  %s323_s5 = sor.u32 %s322_s16, %s191_s19 }
  0x27   : > { %p324_p9 = scmp.eq.s32.totalorder %s323_s5, 0  ;;  %p337_p11 = scmp.eq.s32.totalorder %s5219_s14, 3 }
  0x28   : > { %p342_p12 = scmp.ne.s32.totalorder %s6525_s22, %s6521_s21  ;;  %p343_p0 = scmp.eq.s32.totalorder %s5220_s15, 3 }
  0x29   : > { %s6734_s24 = scalar_select %p324_p9, %s6529_s23, %s326_s12  }
  0x2a   : > { %p6736_p13 = por %p337_p11, %p336_p10  ;;  %p6200_p1 = scmp.lt.s32.totalorder %s6561_s13, 4 }
  0x2b   : > { %7593 = sst [smem:[#allocation22_spill]] %s6734_s24  ;;  %p6741_p2 = por %p343_p0, %p342_p12 }
  0x2c   : > { %s7594_s10 = scalar_select %p6736_p13, 1, 0 }
  0x2d   : > { %s7596_s18 = scalar_select %p6741_p2, 1, 0 }
  0x2e   : > { %7595 = sst [smem:[#allocation23_spill]] %s7594_s10  ;;  %s429_s17 = sand.u32 1, %s6541_s26  }
  0x2f   : > { %7597 = sst [smem:[#allocation24_spill]] %s7596_s18  ;;  %s6180_s16 = smul.u32 416, %s429_s17 }
  0x30   : > { %s6181_s19 = smul.u32 6656, %s6553_s29  ;;  %p6749_p4 = pnand %p6200_p1, %p6712_p3 }
  0x31   : > { %s7599_s6 = sld [smem:[#allocation33_spill]]  ;;  %s433_s15 = scalar_lea.vmem [#allocation4], %s6180_s16 }
  0x32   : > { %s440_s11 = sshll.u32 %s433_s15, 4  ;;  %s6761_s20 = scalar_lea.sflag [#allocation5], %s429_s17  ;;  %s6758_s11 = int_to_ptr.vmem [resolvable:$true] %s440_s11 }
  0x33   : > { %p6411_p6 = pneg %p6749_p4 }
  0x37   : > { %s6756_s30 = scalar_lea.hbm %s7599_s6, %s6181_s19  ;;  %s6414_s14 = scalar_lea.hbm %s7599_s6, 13312 }
  0x38   : > { %s6409_s29 = scalar_lea.hbm %s6756_s30, 6656  ;;  %p6415_p10 = scmp.lt.u32.totalorder %s6756_s30, %s7599_s6 }
  0x39   : > { %p6410_p3 = scmp.ne.s32.totalorder %s6756_s30, %s6409_s29  ;;  %p6416_p11 = scmp.lt.u32.totalorder %s6414_s14, %s6409_s29 }
  0x3a   : > { %p6418_p0 = scmp.lt.u32.totalorder %s6409_s29, %s6756_s30 }
  0x3b   : > { %p6412_p7 = pnand %p6411_p6, %p6410_p3  ;;  %p6417_p12 = por %p6416_p11, %p6415_p10 }
  0x3d   : > { %p6413_p9 = pneg %p6412_p7  ;;  %p6419_p1 = por %p6418_p0, %p6417_p12 }
  0x3f   : > { %p6420_p5 = pnand %p6419_p1, %p6413_p9 }
  0x41   : > { %6423 = shalt.err (!%p6420_p5)
}
  0x42   : > { %s6424_s17 = scalar_lea.vmem %s6758_s11, 6656  ;;  %s6563_s15 = smov [#allocation4]  }
  0x43   : > { %p6425_p3 = scmp.ne.s32.totalorder %s6758_s11, %s6424_s17  ;;  %s6429_s19 = sshll.u32 %s6563_s15, 4  ;;  %s6430_s19 = int_to_ptr.vmem [resolvable:$false] %s6429_s19 }
  0x44   : > { %s6431_s26 = scalar_lea.vmem %s6430_s19, 13312  ;;  %p6432_p13 = scmp.lt.s32.totalorder %s6758_s11, %s6430_s19 }
  0x45   : > { %p6427_p7 = pnand %p6425_p3, %p6411_p6  ;;  %p6433_p10 = scmp.lt.s32.totalorder %s6431_s26, %s6424_s17 }
  0x47   : > { %p6428_p2 = pneg %p6427_p7  ;;  %p6434_p11 = por %p6433_p10, %p6432_p13 }
  0x49   : > { %p6435_p12 = pnand %p6434_p11, %p6428_p2 }
  0x4b   : > { %6438 = shalt.err (!%p6435_p12)
}
  0x4c   : > { %s6564_s29 = smov 128   ;;  %s6565_s12 = smov 8  }
  0x4d   : > { %6195 = dma.hbm_to_vmem [thread:$0]  (!%p6749_p4), %s6756_s30, 6656, %s6758_s11, %s6761_s20, %s6564_s29, %s6564_s29, %s6565_s12  }
  0x4e   : > { %p478_p5 = scmp.lt.s32.totalorder %s6561_s13, 5  ;;  %p7600_p6 = scmp.ge.s32.totalorder %s6561_s13, 1 }
  0x50   : > { %p479_p9 = pnand %p7600_p6, %p478_p5 }
  0x52   : > { %482 = sbr.rel (%p479_p9) target bundleno = 9088 (0x2380), region = 64 }
  0x59   : > { %s484_s14 = sand.u32 1, %s6537_s25  }
  0x5a   : > { %s6182_s16 = smul.u32 416, %s484_s14  ;;  %s485_s17 = scalar_lea.sflag [#allocation5], %s484_s14 }
  0x5c   : > { %s6793_s15 = scalar_lea.vmem [#allocation4], %s6182_s16 }
  0x5d   : > { %6512 = dma.done.wait (%p6722_p8), %s485_s17, 6656  }
  0x5e   : > { %6514 = vsyncadd (%p6722_p8), %s485_s17, 4294960640  ;;  %s7556_s11 = sand.u32 1, %s6525_s22   ;;  %p573_p13 = scmp.lt.s32.totalorder %s6549_s28, 1 }
  0x5f   : > { %s6803_s30 = sshll.u32 %s7556_s11, 3  ;;  %s5227_s5 = sshll.u32 %s6549_s28, 1 }
  0x60   : > { %p578_p2 = scmp.lt.s32.totalorder %s5227_s5, 3  ;;  %p593_p4 = scmp.lt.s32.totalorder %s6545_s27, 1 }
  0x61   : > { %s574_s20 = scalar_select %p573_p13, %s6549_s28, 1 }
  0x62   : > { %s7644_s5 = smov (!%p578_p2, %s5227_s5), 3  ;;  %s7601_s0 = sld [smem:[#allocation27_spill]] }
  0x63   : > { %s5226_s19 = sshll.u32 %s574_s20, 3  ;;  %s5228_s12 = sshll.u32 %s7644_s5, 3 }
  0x64   : > { %s7602_s1 = sld [smem:[#allocation28_spill]]  ;;  %s7603_s2 = sld [smem:[#allocation29_spill]] }
  0x65   : > { %s7605_s3 = sld [smem:[#allocation30_spill]]  ;;  %p619_p8 = scmp.eq.s32.totalorder %s6545_s27, 0 }
  0x66   : > { %s6826_s21 = scalar_select %p593_p4, %s6545_s27, 1 }
  0x67   : > { %s6828_s5 = scalar_select %p619_p8, 1, 0 }
  0x68   : > { %s576_s29 = scalar_lea.vmem %s7601_s0, %s5226_s19  ;;  %s6183_s4 = smul.u32 24, %s6826_s21 }
  0x69   : > { %s5427_s6 = sshll.u32 %s6826_s21, 5  ;;  %s7606_s8 = sld [smem:[#allocation34_spill]] }
  0x6a   : > { %s6814_s17 = scalar_lea.vmem %s7602_s1, %s5228_s12  ;;  %s6819_s11 = scalar_lea.vmem %s7603_s2, %s5228_s12 }
  0x6b   : > { %7604 = sst [smem:[#allocation25_spill]] %s6819_s11  ;;  %s592_s18 = scalar_lea.vmem %s7605_s3, %s5226_s19 }
  0x6c   : > { %s5428_s23 = sshll.u32 %s6826_s21, 6  ;;  %s6841_s14 = scalar_lea.vmem %s7540_s7, %s6183_s4 }
  0x6d   : > { %s6846_s1 = scalar_lea.vmem %s7542_s9, %s5428_s23  ;;  %s7608_s13 = sld [smem:[#allocation35_spill]] }
  0x6e   : > { %s5237_s22 = sshll.u32 %s6826_s21, 1  ;;  %s621_s25 = scvt.s32.f32 %s6828_s5 }
  0x6f   : > { %s6835_s12 = scalar_lea.vmem %s7606_s8, %s5427_s6  ;;  %s616_s28 = sadd.s32 %s5237_s22, %s574_s20 }
  0x70   : > { %7607 = sst [smem:[#allocation26_spill]] %s6835_s12  ;;  %s5238_s6 = sshll.u32 %s616_s28, 3 }
  0x71   : > { %s7609_s12 = sld [smem:[#allocation37_spill]]  ;;  %s562_s24 = scalar_lea.vmem [#allocation7], %s6803_s30 }
  0x72   : > { %p5239_p0 = scmp.ne.s32.totalorder %s6545_s27, 0 }
  0x73   : > { %s610_s10 = scalar_lea.vmem %s7608_s13, %s6826_s21  ;;  %v625_v0 = vld [vmem:[%s576_s29] sm:$0xff] (!%p5239_p0)  ;;  %vm626_vm0 = vcmask (!%p5239_p0), 261120   ;;  %vm635_vm1 = vcmask (!%p5239_p0), 15360  }
  0x74   : > { %624 = sbr.rel (%p5239_p0) target bundleno = 146 (0x92), region = 72  ;;  %v628_v1 = vld [vmem:[%s592_s18] sm:$0xff] (!%p5239_p0)  ;;  %627 = vst.msk [vmem:[#allocation2] sm:$0xff] (!%p5239_p0), %vm626_vm0, %v625_v0 }
  0x75   : > { %v629_v2 = vsub.f32 (!%p5239_p0), 0.0, %v628_v1 }
  0x77   : > { %s618_s11 = scalar_lea.vmem %s7609_s12, %s5238_s6  ;;  %v630_v3 = vmul.f32 (!%p5239_p0), 1.442695, %v629_v2 }
  0x79   : > { %6306 = vpow2.f32 (!%p5239_p0), %v630_v3 }
  0x83   : > { %v6307_v4 = vpop.eup %6306 }
  0x84   : > { %v632_v5 = vadd.f32 1.0, %v6307_v4 }
  0x86   : > { %6308 = vrcp.f32 %v632_v5 }
  0x90   : > { %v6309_v6 = vpop.eup %6308 }
  0x91   : > { %636 = vst.msk [vmem:[#allocation3] sm:$0xff] %vm635_vm1, %v6309_v6 }
  0x92 PF: > { %vm639_vm2 = vcmask 15360   ;;  %v6566_v8 = vmov 0   ;;  %v6567_v9 = vmov 1   ;;  %s7610_s3 = sld [smem:[#allocation32_spill]]  ;;  %v6568_v13 = vmov 0.0|0.0   ;;  %s7611_s16 = sld [smem:[#allocation31_spill]] }
  0x93   : > { %6310 = vset.pattern.permute.xlu0 %v6566_v8  ;;  %5996 = vmatprep.subr.bf16.mxu0 %v6568_v13  ;;  %vm6569_vm3 = vmmov 0   ;;  %v6570_v16 = vmov 0.0   ;;  %v647_v21 = vlaneseq  ;;  %v6571_v45 = vmov 683565275   ;;  %s6577_s23 = smov 120   ;;  %s6578_s19 = smov 112  }
  0x94   : > { %5612 = vmatprep.mubr.msk.f32.mxu0 %vm6569_vm3, %v6570_v16  ;;  %6002 = vmatprep.subr.bf16.mxu1 %v6568_v13  ;;  %v6572_v47 = vmov 2475754826   ;;  %v6573_v50 = vmov 2131351028   ;;  %v6574_v53 = vmov 2102212464  }
  0x95   : > { %5623 = vmatprep.mubr.msk.f32.mxu1 %vm6569_vm3, %v6570_v16  ;;  %v648_v22 = vshrl.u32 %v647_v21, 7  ;;  %v6575_v56 = vmov 920167782   ;;  %v6576_v59 = vmov 1326507024   ;;  %s6579_s6 = smov 104  }
  0x96   : > { %s7612_s2 = sld [smem:[#allocation25_spill]]  ;;  %s7615_s5 = sld [smem:[#allocation26_spill]] }
  0x97   : > { %v6895_v24 = vsub.s32 0, %v648_v22  ;;  %s7617_s21 = sld [smem:[#allocation15_spill]]  ;;  %s7619_s4 = sld [smem:[#allocation23_spill]] }
  0x98   : > { %v6859_v7 = vld [vmem:[#allocation3] sm:$0xff]  ;;  %v889_v10 = vld [vmem:[%s7610_s3] sm:$0xff]  ;;  %v891_v12 = vld [vmem:[%s7610_s3 + $0x10] sm:$0xff]  ;;  %s5423_s12 = sshll.u32 %s6545_s27, 1  ;;  %s7620_s0 = sld [smem:[#allocation36_spill]] }
  0x99   : > { %640 = vst.msk [vmem:[%s618_s11] sm:$0xff] %vm639_vm2, %v6859_v7  ;;  %644 = vperm.xlu0 %6310, %v6859_v7   ;;  %v890_v11 = vld [vmem:[%s7610_s3 + $0x8] sm:$0xff]  ;;  %v892_v15 = vld [vmem:[%s7610_s3 + $0x18] sm:$0xff]  ;;  %v5251_v18 = vld [vmem:[%s7610_s3 + $0x20] sm:$0xff]  ;;  %s7618_s11 = sld [smem:[#allocation11_spill]] }
  0x9a   : > { %v5997_v14 = vpack.c.bf16 %v890_v11, %v889_v10  ;;  %v6000_v17 = vpack.c.bf16 %v892_v15, %v891_v12  ;;  %v5252_v19 = vld [vmem:[%s7610_s3 + $0x28] sm:$0xff] }
  0x9b   : > { %v6003_v20 = vpack.c.bf16 %v5252_v19, %v5251_v18  ;;  %v641_v23 = vld [vmem:[%s7611_s16 + $0xb] sm:$0x1]  ;;  %v5240_v32 = vld [vmem:[%s7611_s16 + $0x9] ss:$0 sm:$0xff] }
  0x9c   : > { %5998 = vmatpush3.bf16.msra.mxu0 %v5997_v14  ;;  %v652_v25 = vsub.f32 1.0, %v641_v23  ;;  %v650_v27 = vrot.slane %v641_v23, %v6895_v24 }
  0x9d   : > { %6311 = vset.pattern.permute.xlu0 %v6567_v9  ;;  %5999 = vmatprep.subr.bf16.mxu0 %v6568_v13  ;;  %p7622_p3 = scmp.ne.s32.totalorder %s7619_s4, 0 }
  0x9e   : > { %654 = vperm.xlu0 %6311, %v6859_v7   ;;  %6004 = vmatpush3.bf16.msra.mxu1 %v6003_v20  ;;  %v660_v28 = vrot.slane %v652_v25, %v6895_v24 }
  0x9f   : > { %6005 = vmatprep.subr.bf16.mxu1 %v6568_v13 }
  0xa0   : > { %6001 = vmatpush3.bf16.msra.mxu0 %v6000_v17 }
  0xa1   : > { %6008 = vmatprep.subr.bf16.mxu0 %v6568_v13 }
 0x118   : > { %v645_v26 = vpop.permute.xlu0 %644 }
 0x119   : > { %v651_v30 = vmul.f32 %v650_v27, %v645_v26 }
 0x11d   : > { %v655_v29 = vpop.permute.xlu0 %654 }
 0x11e   : > { %v661_v31 = vmul.f32 %v660_v28, %v655_v29 }
 0x120   : > { %v662_v33 = vadd.f32 %v661_v31, %v651_v30 }
 0x122   : > { %v6902_v34 = vmul.f32 %v5240_v32, %v662_v33 }
 0x124   : > { %v673_v35 = vand.u32 2139095040, %v6902_v34  ;;  %v670_v39 = vand.u32 2147483647, %v6902_v34  ;;  %vm672_vm11 = vcmp.lt.s32.totalorder %v6902_v34, 0 }
 0x126   : > { %v674_v36 = vshrl.u32 %v673_v35, 23  ;;  %v677_v42 = vand.u32 8388607, %v670_v39  ;;  %vm671_vm12 = vcmp.le.f32.partialorder %v670_v39, 0.7853982 }
 0x128   : > { %v5241_v37 = vadd.s32 4294967169, %v674_v36  ;;  %v678_v61 = vor.u32 8388608, %v677_v42 }
 0x12a   : > { %v680_v38 = vadd.s32 1, %v5241_v37  ;;  %v718_v12 = vshll.u32 %v678_v61, 8 }
 0x12c   : > { %vm681_vm4 = vcmp.gt.s32.totalorder %v680_v38, 0 }
 0x12d   : > { %v682_v40 = vsel %vm681_vm4, %v680_v38, 0 }
 0x12e   : > { %v684_v41 = vand.u32 31, %v682_v40  ;;  %v683_v44 = vshrl.u32 %v682_v40, 5 }
 0x130   : > { %v685_v43 = vsub.s32 32, %v684_v41  ;;  %v687_v46 = vshll.u32 %v6571_v45, %v684_v41  ;;  %v690_v48 = vshll.u32 %v6572_v47, %v684_v41  ;;  %v693_v52 = vshll.u32 %v6573_v50, %v684_v41 }
 0x131   : > { %v696_v55 = vshll.u32 %v6574_v53, %v684_v41  ;;  %v699_v58 = vshll.u32 %v6575_v56, %v684_v41  ;;  %vm702_vm5 = vcmp.lt.s32.totalorder %v683_v44, 1  ;;  %vm705_vm6 = vcmp.lt.s32.totalorder %v683_v44, 4 }
 0x132   : > { %v688_v49 = vshrl.u32 %v6572_v47, %v685_v43  ;;  %v691_v51 = vshrl.u32 %v6573_v50, %v685_v43  ;;  %v694_v54 = vshrl.u32 %v6574_v53, %v685_v43  ;;  %v697_v57 = vshrl.u32 %v6575_v56, %v685_v43 }
 0x133   : > { %v700_v60 = vshrl.u32 %v6576_v59, %v685_v43  ;;  %v686_v6 = vshrl.u32 %v6571_v45, %v685_v43  ;;  %vm704_vm7 = vcmp.lt.s32.totalorder %v683_v44, 3  ;;  %vm703_vm8 = vcmp.lt.s32.totalorder %v683_v44, 2  ;;  %v669_v59 = vld [vmem:[%s7611_s16 + $0xa] sm:$0x1] }
 0x134   : > { %v689_v62 = vor.u32 %v688_v49, %v687_v46  ;;  %v692_v63 = vor.u32 %v691_v51, %v690_v48  ;;  %v695_v0 = vor.u32 %v694_v54, %v693_v52  ;;  %v698_v1 = vor.u32 %v697_v57, %v696_v55 }
 0x135   : > { %v701_v2 = vor.u32 %v700_v60, %v699_v58  ;;  %v779_v61 = vsub.f32 1.0, %v669_v59  ;;  %v777_v39 = vrot.slane %v669_v59, %v6895_v24 }
 0x136   : > { %v707_v3 = vsel %vm705_vm6, %v695_v0, 2102212464  ;;  %v710_v4 = vsel %vm702_vm5, %v689_v62, %v692_v63  ;;  %v714_v5 = vsel %vm702_vm5, %v692_v63, %v695_v0  ;;  %v711_v8 = vsel %vm705_vm6, %v698_v1, 920167782 }
 0x137   : > { %v715_v9 = vsel %vm705_vm6, %v701_v2, 1326507024  ;;  %v712_v10 = vsel %vm704_vm7, %v695_v0, %v711_v8  ;;  %v706_v14 = vsel %vm702_vm5, %v686_v6, %v689_v62  ;;  %v708_v15 = vsel %vm704_vm7, %v692_v63, %v707_v3 }
 0x138   : > { %v716_v11 = vsel %vm704_vm7, %v698_v1, %v715_v9  ;;  %v713_v17 = vsel %vm703_vm8, %v710_v4, %v712_v10  ;;  %v709_v23 = vsel %vm703_vm8, %v706_v14, %v708_v15  ;;  %v886_v3 = vrot.slane %v779_v61, %v6895_v24  ;;  %v5258_v24 = vld [vmem:[%s7610_s3 + $0x48] sm:$0xff] }
 0x139   : > { %v717_v18 = vsel %vm703_vm8, %v714_v5, %v716_v11  ;;  %v6911_v21 = vmul.u32.u64.low %v718_v12, %v713_v17  ;;  %v6912_v22 = vmul.u32.u64.high %v718_v12, %v713_v17, %v6911_v21  ;;  %v725_v26 = vmul.u32 %v718_v12, %v709_v23  ;;  %v5257_v11 = vld [vmem:[%s7610_s3 + $0x40] sm:$0xff]  ;;  %v5253_v23 = vld [vmem:[%s7610_s3 + $0x30] sm:$0xff]  ;;  %v5280_v61 = vld [vmem:[%s6793_s15 + $0x38] sm:$0xff] }
 0x13a   : > { %v6908_v19 = vmul.u32.u64.low %v718_v12, %v717_v18  ;;  %v6909_v20 = vmul.u32.u64.high %v718_v12, %v717_v18, %v6908_v19  ;;  %vm762_vm5 = vweird.f32 %v6902_v34  ;;  %vm898_vm6 = vcmask 261120  }
 0x13b   : > { %v728_v25 = vadd.s32 1, %v6912_v22  ;;  %v6009_v18 = vpack.c.bf16 %v5258_v24, %v5257_v11  ;;  %vm1641_vm7 = vcmask 64512  }
 0x13c   : > { %vm727_vm9 = vc.u32 %v6909_v20, %v6911_v21  ;;  %v726_v40 = vadd.s32 %v6911_v21, %v6909_v20  ;;  %v5260_v20 = vld [vmem:[%s7610_s3 + $0x58] sm:$0xff]  ;;  %vm7214_vm8 = vmpackc.low %vm1641_vm7, %vm1641_vm7 }
 0x13d   : > { %v729_v27 = vsel %vm727_vm9, %v728_v25, %v6912_v22  ;;  %v6947_v22 = vld [vmem:[#allocation2] sm:$0xff]  ;;  %v5254_v25 = vld [vmem:[%s7610_s3 + $0x38] sm:$0xff]  ;;  %vm3312_vm9 = vcmask 130048  }
 0x13e   : > { %v730_v28 = vadd.s32 %v729_v27, %v725_v26  ;;  %v6006_v26 = vpack.c.bf16 %v5254_v25, %v5253_v23  ;;  %v1229_v27 = vld [vmem:[%s6793_s15] sm:$0xff]  ;;  %v5281_v23 = vld [vmem:[%s6841_s14 + $0x1] ss:$0 sm:$0xff] }
 0x140   : > { %v731_v29 = vadd.s32 536870912, %v730_v28  ;;  %6007 = vmatpush3.bf16.msra.mxu1 %v6006_v26 }
 0x141   : > { %6014 = vmatprep.subr.bf16.mxu1 %v6568_v13 }
 0x142   : > { %v732_v30 = vshrl.u32 %v731_v29, 30 }
 0x144   : > { %v733_v31 = vshll.u32 %v732_v30, 30  ;;  %v756_v52 = vsub.s32 4, %v732_v30 }
 0x146   : > { %v734_v32 = vsub.s32 %v730_v28, %v733_v31  ;;  %v757_v55 = vsel %vm672_vm11, %v756_v52, %v732_v30  ;;  %v1230_v28 = vld [vmem:[%s6793_s15 + $0x8] sm:$0xff]  ;;  %v1231_v30 = vld [vmem:[%s6793_s15 + $0x10] sm:$0xff]  ;;  %v1232_v31 = vld [vmem:[%s6793_s15 + $0x18] sm:$0xff] }
 0x147   : > { %v759_v57 = vsel %vm671_vm12, 0, %v757_v55  ;;  %v6021_v29 = vpack.c.bf16 %v1230_v28, %v1229_v27  ;;  %v5274_v55 = vld [vmem:[%s6793_s15 + $0x78] sm:$0xff]  ;;  %v5288_v28 = vld [vmem:[%s6841_s14 + $0x4] ss:$0 sm:$0xff] }
 0x148   : > { %v736_v33 = vsub.s32 0, %v734_v32  ;;  %v763_v58 = vadd.s32 3, %v759_v57  ;;  %v873_v62 = vand.u32 3, %v759_v57  ;;  %v5277_v57 = vld [vmem:[%s6793_s15 + $0x20] sm:$0xff] }
 0x14a   : > { %v5242_v35 = vmin.u32 %v736_v33, %v734_v32  ;;  %v764_v60 = vand.u32 3, %v763_v58  ;;  %vm878_vm14 = vcmp.eq.s32.totalorder %v873_v62, 2  ;;  %vm875_vm0 = vcmp.eq.s32.totalorder %v873_v62, 0  ;;  %v5249_v33 = vld [vmem:[%s7611_s16] ss:$0 sm:$0xff]  ;;  %v5278_v58 = vld [vmem:[%s6793_s15 + $0x28] sm:$0xff] }
 0x14b   : > { %vm874_vm4 = vcmp.lt.s32.totalorder %v873_v62, 2  ;;  %v6033_v59 = vpack.c.bf16 %v5278_v58, %v5277_v57  ;;  %v5295_v57 = vld [vmem:[%s6793_s15 + $0xa0] sm:$0xff] }
 0x14c   : > { %v738_v36 = vclz %v5242_v35  ;;  %vm769_vm13 = vcmp.eq.s32.totalorder %v764_v60, 2  ;;  %vm766_vm15 = vcmp.eq.s32.totalorder %v764_v60, 0  ;;  %vm765_vm1 = vcmp.lt.s32.totalorder %v764_v60, 2  ;;  %v5263_v35 = vld [vmem:[%s7610_s3 + $0x60] sm:$0xff] }
 0x14d   : > { %v5279_v60 = vld [vmem:[%s6793_s15 + $0x30] sm:$0xff] }
 0x14e   : > { %v5243_v37 = vadd.s32 4294967294, %v738_v36  ;;  %v5264_v36 = vld [vmem:[%s7610_s3 + $0x68] sm:$0xff]  ;;  %v6036_v62 = vpack.c.bf16 %v5280_v61, %v5279_v60 }
 0x150   : > { %vm5244_vm10 = vcmp.lt.s32.totalorder %v5243_v37, 0 }
 0x151   : > { %v741_v38 = vsel %vm5244_vm10, 0, %v5243_v37  ;;  %vm4585_vm10 = vcmask 523264  }
 0x152   : > { %v742_v41 = vsub.s32 32, %v741_v38  ;;  %v746_v42 = vsub.s32 4294967266, %v741_v38  ;;  %v743_v43 = vshll.u32 %v734_v32, %v741_v38  ;;  %v6024_v32 = vpack.c.bf16 %v1232_v31, %v1231_v30 }
 0x154   : > { %v744_v44 = vshrl.u32 %v726_v40, %v742_v41  ;;  %v747_v45 = vadd.s32 127, %v746_v42  ;;  %v6015_v41 = vpack.c.bf16 %v5264_v36, %v5263_v35  ;;  %v5291_v35 = vld [vmem:[%s6793_s15 + $0x50] sm:$0xff] }
 0x156   : > { %v745_v46 = vor.u32 %v744_v44, %v743_v43  ;;  %v748_v47 = vshll.u32 %v747_v45, 23  ;;  %v5265_v43 = vld [vmem:[%s7610_s3 + $0x70] sm:$0xff]  ;;  %v5266_v44 = vld [vmem:[%s7610_s3 + $0x78] sm:$0xff]  ;;  %v5261_v45 = vld [vmem:[%s7611_s16 + $0x2] ss:$0 sm:$0xff] }
 0x158   : > { %v749_v48 = vor.u32 4788187, %v748_v47  ;;  %v752_v50 = vcvt.s32.f32 %v745_v46  ;;  %v6018_v46 = vpack.c.bf16 %v5266_v44, %v5265_v43  ;;  %v5271_v47 = vld [vmem:[%s6793_s15 + $0x60] sm:$0xff] }
 0x15a   : > { %v750_v49 = vand.u32 2147483647, %v749_v48  ;;  %v5272_v48 = vld [vmem:[%s6793_s15 + $0x68] sm:$0xff] }
 0x15b   : > { %v6027_v52 = vpack.c.bf16 %v5272_v48, %v5271_v47  ;;  %v5293_v48 = vld [vmem:[%s6841_s14 + $0x2] ss:$0 sm:$0xff] }
 0x15c   : > { %v753_v51 = vmul.f32 %v752_v50, %v750_v49 }
 0x15e   : > { %v754_v53 = vxor.u32 2147483648, %v753_v51 }
 0x160   : > { %v755_v54 = vsel %vm672_vm11, %v754_v53, %v753_v51 }
 0x161   : > { %v758_v56 = vsel %vm671_vm12, %v6902_v34, %v755_v54  ;;  %v5259_v34 = vld [vmem:[%s7610_s3 + $0x50] sm:$0xff]  ;;  %v5273_v54 = vld [vmem:[%s6793_s15 + $0x70] sm:$0xff] }
 0x162   : > { %6357 = vcosq.f32 %v758_v56  ;;  %v6012_v21 = vpack.c.bf16 %v5260_v20, %v5259_v34  ;;  %v5276_v34 = vld [vmem:[%s6841_s14 + $0x3] ss:$0 sm:$0xff] }
 0x163   : > { %6359 = vsinq.f32 %v758_v56  ;;  %v6030_v56 = vpack.c.bf16 %v5274_v55, %v5273_v54 }
 0x16c   : > { %v6358_v63 = vpop.eup %6357 }
 0x16d   : > { %v6360_v0 = vpop.eup %6359  ;;  %v770_v1 = vxor.u32 2147483648, %v6358_v63 }
 0x16e   : > { %v767_v2 = vxor.u32 2147483648, %v6360_v0 }
 0x16f   : > { %v771_v4 = vsel %vm769_vm13, %v770_v1, %v6360_v0  ;;  %v880_v5 = vsel %vm878_vm14, %v770_v1, %v6360_v0  ;;  %v5283_v1 = vld [vmem:[%s6793_s15 + $0x80] sm:$0xff] }
 0x170   : > { %v768_v6 = vsel %vm766_vm15, %v6358_v63, %v767_v2  ;;  %v877_v8 = vsel %vm875_vm0, %v6358_v63, %v767_v2  ;;  %v5255_v2 = vld [vmem:[%s7611_s16 + $0x1] ss:$0 sm:$0xff] }
 0x171   : > { %v772_v9 = vsel %vm765_vm1, %v768_v6, %v771_v4  ;;  %v881_v10 = vsel %vm874_vm4, %v877_v8, %v880_v5  ;;  %v5285_v8 = vld [vmem:[%s6793_s15 + $0x90] sm:$0xff] }
 0x172   : > { %v773_v12 = vsel %vm762_vm5, nan, %v772_v9  ;;  %v882_v14 = vsel %vm762_vm5, nan, %v881_v10  ;;  %v5286_v9 = vld [vmem:[%s6793_s15 + $0x98] sm:$0xff] }
 0x173   : > { %v778_v15 = vmul.f32 %v777_v39, %v773_v12  ;;  %v887_v17 = vmul.f32 %v886_v3, %v882_v14  ;;  %v5284_v39 = vld [vmem:[%s6793_s15 + $0x88] sm:$0xff]  ;;  %v6042_v10 = vpack.c.bf16 %v5286_v9, %v5285_v8 }
 0x174   : > { %v6039_v4 = vpack.c.bf16 %v5284_v39, %v5283_v1 }
 0x175   : > { %v6934_v19 = vadd.f32 %v887_v17, %v778_v15  ;;  %v5269_v15 = vld [vmem:[%s6841_s14] ss:$0 sm:$0xff] }
 0x177   : > { %5613 = vmatmul.mubr.msk.f32.vlgmr.msra.gmra.mrb[0].mxu0 %vm898_vm6, %v6934_v19 }
 0x178   : > { %6010 = vmatpush3.bf16.msra.mxu0 %v6009_v18  ;;  %5634 = vmatprep.mubr.msk.f32.mxu0 %vm6569_vm3, %v6570_v16 }
 0x179   : > { %6011 = vmatprep.subr.bf16.mxu0 %v6568_v13 }
 0x17c   : > { %6013 = vmatpush3.bf16.msra.mxu0 %v6012_v21 }
 0x17d   : > { %6020 = vmatprep.subr.bf16.mxu0 %v6568_v13 }
 0x17f   : > { %5635 = vmatmul.mubr.msk.f32.vlgmr.msra.gmra.mrb[2].mxu0 %vm898_vm6, %v6947_v22 }
 0x180   : > { %5656 = vmatprep.mubr.msk.f32.mxu0 %vm6569_vm3, %v6570_v16  ;;  %6022 = vmatpush3.bf16.msra.mxu0 %v6021_v29 }
 0x181   : > { %6023 = vmatprep.subr.bf16.mxu0 %v6568_v13 }
 0x184   : > { %6025 = vmatpush3.bf16.msra.mxu0 %v6024_v32  ;;  %v5289_v32 = vld [vmem:[%s6793_s15 + $0x40] sm:$0xff] }
 0x185   : > { %6032 = vmatprep.subr.bf16.mxu0 %v6568_v13 }
 0x187   : > { %5657 = vmatmul.mubr.msk.f32.vlgmr.msra.gmra.mrb[4].mxu0 %vm898_vm6, %v6947_v22 }
 0x188   : > { %5678 = vmatprep.mubr.msk.f32.mxu0 %vm6569_vm3, %v6570_v16  ;;  %6034 = vmatpush3.bf16.msra.mxu0 %v6033_v59 }
 0x189   : > { %6035 = vmatprep.subr.bf16.mxu0 %v6568_v13 }
 0x18c   : > { %6037 = vmatpush3.bf16.msra.mxu0 %v6036_v62 }
 0x18d   : > { %6044 = vmatprep.subr.bf16.mxu0 %v6568_v13 }
 0x18f   : > { %5679 = vmatmul.mubr.msk.f32.vlgmr.msra.gmra.mrb[6].mxu0 %vm898_vm6, %v6947_v22 }
 0x190   : > { %5700 = vmatprep.mubr.msk.f32.mxu0 %vm6569_vm3, %v6570_v16 }
 0x24a   : > { %v968_v37 = vpop.f32.mrb[0].mxu0 }
 0x24b   : > { %v969_v38 = vadd.f32 %v5249_v33, %v968_v37  ;;  %v5614_v40 = vpop.f32.mrb[1].mxu0  ;;  %v5290_v33 = vld [vmem:[%s6793_s15 + $0x48] sm:$0xff]  ;;  %v5292_v37 = vld [vmem:[%s6793_s15 + $0x58] sm:$0xff] }
 0x24c   : > { %v6045_v36 = vpack.c.bf16 %v5290_v33, %v5289_v32 }
 0x24d   : > { %v972_v42 = vmax.f32 %v969_v38, 0.0  ;;  %v6048_v38 = vpack.c.bf16 %v5292_v37, %v5291_v35 }
 0x24e   : > { %6046 = vmatpush3.bf16.msra.mxu0 %v6045_v36 }
 0x24f   : > { %5624 = vmatmul.mubr.msk.f32.vlgmr.msra.gmra.mrb[0].mxu1 %vm898_vm6, %v972_v42  ;;  %6047 = vmatprep.subr.bf16.mxu0 %v6568_v13 }
 0x250   : > { %6016 = vmatpush3.bf16.msra.mxu1 %v6015_v41  ;;  %5645 = vmatprep.mubr.msk.f32.mxu1 %vm6569_vm3, %v6570_v16 }
 0x251   : > { %6017 = vmatprep.subr.bf16.mxu1 %v6568_v13 }
 0x252   : > { %v1135_v49 = vpop.f32.mrb[2].mxu0  ;;  %6049 = vmatpush3.bf16.msra.mxu0 %v6048_v38 }
 0x253   : > { %v1136_v50 = vadd.f32 %v5261_v45, %v1135_v49  ;;  %v5636_v51 = vpop.f32.mrb[3].mxu0  ;;  %5713 = vmatprep.subr.mxu0 %v6570_v16 }
 0x254   : > { %6019 = vmatpush3.bf16.msra.mxu1 %v6018_v46 }
 0x255   : > { %v1139_v53 = vmax.f32 %v1136_v50, 0.0  ;;  %6026 = vmatprep.subr.bf16.mxu1 %v6568_v13  ;;  %5701 = vmatmul.mubr.msk.f32.vlgmr.msra.gmra.mrb[8].mxu0 %vm898_vm6, %v6947_v22 }
 0x256   : > { %5715 = vmatprep.mubr.msk.f32.mxu0 %vm6569_vm3, %v6570_v16  ;;  %5714 = vmatpush3.msra.mxu0 %v5295_v57 }
 0x257   : > { %5646 = vmatmul.mubr.msk.f32.vlgmr.msra.gmra.mrb[2].mxu1 %vm898_vm6, %v1139_v53  ;;  %5723 = vmatprep.subr.mxu0 %v6570_v16 }
 0x258   : > { %6028 = vmatpush3.bf16.msra.mxu1 %v6027_v52  ;;  %5667 = vmatprep.mubr.msk.f32.mxu1 %vm6569_vm3, %v6570_v16 }
 0x259   : > { %6029 = vmatprep.subr.bf16.mxu1 %v6568_v13 }
 0x25a   : > { %v1304_v63 = vpop.f32.mrb[4].mxu0 }
 0x25b   : > { %v5658_v0 = vpop.f32.mrb[5].mxu0  ;;  %v1305_v17 = vadd.f32 %v5269_v15, %v1304_v63 }
 0x25c   : > { %6031 = vmatpush3.bf16.msra.mxu1 %v6030_v56 }
 0x25d   : > { %6038 = vmatprep.subr.bf16.mxu1 %v6568_v13 }
 0x262   : > { %v1469_v12 = vpop.f32.mrb[6].mxu0 }
 0x263   : > { %v5680_v14 = vpop.f32.mrb[7].mxu0  ;;  %v1470_v26 = vadd.f32 %v5281_v23, %v1469_v12 }
 0x264   : > { %v5296_v14 = vld [vmem:[%s6793_s15 + $0xa8] sm:$0xff] }
 0x322   : > { %v1052_v3 = vpop.f32.mrb[0].mxu1 }
 0x323   : > { %v7018_v5 = vadd.f32 %v5255_v2, %v1052_v3  ;;  %v5625_v6 = vpop.f32.mrb[1].mxu1 }
 0x325   : > { %5668 = vmatmul.mubr.msk.f32.vlgmr.msra.gmra.mrb[4].mxu1 %vm898_vm6, %v7018_v5 }
 0x326   : > { %6040 = vmatpush3.bf16.msra.mxu1 %v6039_v4  ;;  %5689 = vmatprep.mubr.msk.f32.mxu1 %vm6569_vm3, %v6570_v16 }
 0x327   : > { %6041 = vmatprep.subr.bf16.mxu1 %v6568_v13 }
 0x328   : > { %v1631_v49 = vpop.f32.mrb[8].mxu0 }
 0x329   : > { %v7066_v50 = vadd.f32 %v5293_v48, %v1631_v49  ;;  %v5702_v51 = vpop.f32.mrb[9].mxu0 }
 0x32a   : > { %v7027_v11 = vpop.f32.mrb[2].mxu1  ;;  %6043 = vmatpush3.bf16.msra.mxu1 %v6042_v10 }
 0x32b   : > { %v5647_v24 = vpop.f32.mrb[3].mxu1  ;;  %5703 = vmatprep.subr.mxu1 %v6570_v16 }
 0x32d   : > { %5690 = vmatmul.mubr.msk.f32.vlgmr.msra.gmra.mrb[6].mxu1 %vm898_vm6, %v7018_v5 }
 0x32e   : > { %5705 = vmatprep.mubr.msk.f32.mxu1 %vm6569_vm3, %v6570_v16 }
 0x3f8   : > { %v1382_v18 = vpop.f32.mrb[4].mxu1 }
 0x3f9   : > { %v1386_v20 = vadd.f32 %v1382_v18, %v1305_v17  ;;  %v5669_v21 = vpop.f32.mrb[5].mxu1 }
 0x3fb   : > { %v7037_v25 = vadd.f32 %v5276_v34, %v1386_v20 }
 0x3fd   : > { %1880 = vrot.lane.b32.xlu0 %v7037_v25, %s6577_s23 }
 0x400   : > { %v1544_v27 = vpop.f32.mrb[6].mxu1 }
 0x401   : > { %v1548_v29 = vadd.f32 %v1544_v27, %v1470_v26  ;;  %v5691_v30 = vpop.f32.mrb[7].mxu1 }
 0x402   : > { %v5303_v30 = vld [vmem:[%s6841_s14 + $0x5] ss:$0 sm:$0xff] }
 0x403   : > { %v7042_v31 = vadd.f32 %v5288_v28, %v1548_v29 }
 0x405   : > { %5704 = vmatpush3.xpose.msk.msra.mxu1 %vm1641_vm7, %v7042_v31 }
 0x406   : > { %5708 = vmatprep.subr.mxu1 %v6570_v16 }
 0x408   : > { %5706 = vmatmul.mubr.msk.f32.vlgmr.msra.gmra.mrb[8].mxu1 %vm1641_vm7, %v7037_v25 }
 0x409   : > { %5710 = vmatprep.mubr.msk.f32.mxu1 %vm6569_vm3, %v6570_v16  ;;  %5709 = vmatpush3.msra.mxu1 %v7066_v50 }
 0x40a   : > { %5718 = vmatprep.subr.mxu1 %v6570_v16 }
 0x46f   : > { %v1881_v56 = vpop.permute.xlu0 %1880 }
 0x4db   : > { %v1714_v40 = vpop.f32.mrb[8].mxu1 }
 0x4dc   : > { %v5707_v41 = vpop.f32.mrb[9].mxu1  ;;  %v1718_v42 = vsel %vm1641_vm7, %v1714_v40, -inf }
 0x4dd   : > { %1719 = vmax.xlane.f32.xlu1 %v1718_v42  ;;  %v5297_v41 = vld [vmem:[%s6793_s15 + $0xb0] sm:$0xff] }
 0x56a   : > { %v1720_v43 = vpop.xlane.xlu1 %1719 }
 0x56b   : > { %v1721_v44 = vsub.f32 %v1714_v40, %v1720_v43 }
 0x56d   : > { %v1722_v45 = vmul.f32 1.442695, %v1721_v44 }
 0x56f   : > { %6361 = vpow2.f32 %v1722_v45 }
 0x579   : > { %v6362_v46 = vpop.eup %6361 }
 0x57a   : > { %v1724_v47 = vsel %vm1641_vm7, %v6362_v46, 0.0 }
 0x57b   : > { %1725 = vadd.xlane.f32.xlu1 %v1724_v47 }
 0x58c   : > { %1882 = vrot.lane.b32.xlu1 %v7042_v31, %s6577_s23 }
 0x608   : > { %v1726_v52 = vpop.xlane.xlu1 %1725 }
 0x609   : > { %6363 = vrcp.f32 %v1726_v52 }
 0x60c   : > { %v1883_v55 = vpop.permute.xlu1 %1882 }
 0x613   : > { %v6364_v53 = vpop.eup %6363 }
 0x614   : > { %v1728_v54 = vmul.f32 %v6364_v53, %v6362_v46 }
 0x616   : > { %5711 = vmatmul.mubr.msk.f32.vlgmr.msra.gmra.mrb[10].mxu1 %vm1641_vm7, %v1728_v54  ;;  %v5298_v54 = vld [vmem:[%s6793_s15 + $0xb8] sm:$0xff] }
 0x617   : > { %5719 = vmatpush3.xpose.msk.msra.mxu1 %vm1641_vm7, %v1883_v55  ;;  %5720 = vmatprep.mubr.msk.f32.mxu1 %vm6569_vm3, %v6570_v16 }
 0x618   : > { %5728 = vmatprep.subr.mxu1 %v6570_v16 }
 0x61a   : > { %5721 = vmatmul.mubr.msk.f32.vlgmr.msra.gmra.mrb[12].mxu1 %vm1641_vm7, %v1881_v56 }
 0x61b   : > { %5730 = vmatprep.mubr.msk.f32.mxu1 %vm6569_vm3, %v6570_v16  ;;  %5729 = vmatpush3.msra.mxu1 %v5296_v14 }
 0x61c   : > { %5738 = vmatprep.subr.mxu1 %v6570_v16 }
 0x6e9   : > { %v1798_v58 = vpop.f32.mrb[10].mxu1 }
 0x6ea   : > { %v5712_v59 = vpop.f32.mrb[11].mxu1  ;;  %5716 = vmatmul.mubr.msk.f32.vlgmr.msra.gmra.mrb[10].mxu0 %vm1641_vm7, %v1798_v58 }
 0x6eb   : > { %5725 = vmatprep.mubr.msk.f32.mxu0 %vm6569_vm3, %v6570_v16 }
 0x6ed   : > { %v1954_v60 = vpop.f32.mrb[12].mxu1 }
 0x6ee   : > { %v5722_v61 = vpop.f32.mrb[13].mxu1  ;;  %v1958_v62 = vsel %vm1641_vm7, %v1954_v60, -inf }
 0x6ef   : > { %1959 = vmax.xlane.f32.xlu0 %v1958_v62  ;;  %v5325_v61 = vld [vmem:[%s6793_s15 + $0x188] sm:$0xff] }
 0x705   : > { %1970 = vrot.lane.b32.xlu0 %v7066_v50, %s6577_s23 }
 0x709   : > { %2120 = vrot.lane.b32.xlu0 %v7037_v25, %s6578_s19 }
 0x77c   : > { %v1960_v63 = vpop.xlane.xlu0 %1959 }
 0x77d   : > { %v1961_v0 = vsub.f32 %v1954_v60, %v1960_v63  ;;  %v5324_v60 = vld [vmem:[%s6793_s15 + $0x180] sm:$0xff]  ;;  %v5326_v63 = vld [vmem:[%s6793_s15 + $0x190] sm:$0xff] }
 0x77e   : > { %v6057_v62 = vpack.c.bf16 %v5325_v61, %v5324_v60 }
 0x77f   : > { %v1962_v1 = vmul.f32 1.442695, %v1961_v0  ;;  %v5327_v0 = vld [vmem:[%s6793_s15 + $0x198] sm:$0xff] }
 0x780   : > { %v1971_v39 = vpop.permute.xlu0 %1970 }
 0x781   : > { %6365 = vpow2.f32 %v1962_v1  ;;  %5724 = vmatpush3.msra.mxu0 %v1971_v39 }
 0x782   : > { %5733 = vmatprep.subr.mxu0 %v6570_v16 }
 0x784   : > { %v2121_v12 = vpop.permute.xlu0 %2120 }
 0x78b   : > { %v6366_v2 = vpop.eup %6365 }
 0x78c   : > { %v1964_v3 = vsel %vm1641_vm7, %v6366_v2, 0.0 }
 0x78d   : > { %1965 = vadd.xlane.f32.xlu1 %v1964_v3 }
 0x79e   : > { %2122 = vrot.lane.b32.xlu1 %v7042_v31, %s6578_s19 }
 0x7bd   : > { %v1871_v4 = vpop.f32.mrb[10].mxu0 }
 0x7be   : > { %v5717_v6 = vpop.f32.mrb[11].mxu0  ;;  %v1879_v32 = vadd.f32 %v5303_v30, %v1871_v4  ;;  %v5339_v30 = vld [vmem:[%s6793_s15 + $0xf8] sm:$0xff] }
 0x81a   : > { %v1966_v8 = vpop.xlane.xlu1 %1965 }
 0x81b   : > { %6367 = vrcp.f32 %v1966_v8 }
 0x81e   : > { %v2123_v24 = vpop.permute.xlu1 %2122 }
 0x825   : > { %v6368_v9 = vpop.eup %6367 }
 0x826   : > { %v1968_v10 = vmul.f32 %v6368_v9, %v6366_v2  ;;  %v6060_v2 = vpack.c.bf16 %v5327_v0, %v5326_v63  ;;  %v2967_v63 = vld [vmem:[%s7612_s2 + $0x8] sm:$0xff] }
 0x828   : > { %5726 = vmatmul.mubr.msk.f32.vlgmr.msra.gmra.mrb[12].mxu0 %vm1641_vm7, %v1968_v10 }
 0x829   : > { %5734 = vmatpush3.xpose.msk.msra.mxu0 %vm1641_vm7, %v2123_v24  ;;  %5735 = vmatprep.mubr.msk.f32.mxu0 %vm6569_vm3, %v6570_v16 }
 0x82a   : > { %5743 = vmatprep.subr.mxu0 %v6570_v16 }
 0x82c   : > { %5736 = vmatmul.mubr.msk.f32.vlgmr.msra.gmra.mrb[14].mxu0 %vm1641_vm7, %v2121_v12 }
 0x82d   : > { %5745 = vmatprep.mubr.msk.f32.mxu0 %vm6569_vm3, %v6570_v16  ;;  %5744 = vmatpush3.msra.mxu0 %v5297_v41 }
 0x82e   : > { %5753 = vmatprep.subr.mxu0 %v6570_v16 }
 0x8fb   : > { %v2042_v15 = vpop.f32.mrb[12].mxu0 }
 0x8fc   : > { %v5727_v17 = vpop.f32.mrb[13].mxu0  ;;  %5731 = vmatmul.mubr.msk.f32.vlgmr.msra.gmra.mrb[14].mxu1 %vm1641_vm7, %v2042_v15 }
 0x8fd   : > { %5740 = vmatprep.mubr.msk.f32.mxu1 %vm6569_vm3, %v6570_v16 }
 0x8ff   : > { %v2194_v18 = vpop.f32.mrb[14].mxu0 }
 0x900   : > { %v5737_v34 = vpop.f32.mrb[15].mxu0  ;;  %v2198_v20 = vsel %vm1641_vm7, %v2194_v18, -inf }
 0x901   : > { %2199 = vmax.xlane.f32.xlu0 %v2198_v20  ;;  %v5320_v20 = vld [vmem:[%s6793_s15 + $0xd0] sm:$0xff] }
 0x917   : > { %2209 = vrot.lane.b32.xlu0 %v7066_v50, %s6578_s19 }
 0x91b   : > { %2359 = vrot.lane.b32.xlu0 %v7037_v25, %s6579_s6 }
 0x98e   : > { %v2200_v21 = vpop.xlane.xlu0 %2199 }
 0x98f   : > { %v2201_v23 = vsub.f32 %v2194_v18, %v2200_v21  ;;  %v5318_v18 = vld [vmem:[%s6793_s15 + $0xc0] sm:$0xff]  ;;  %v5321_v21 = vld [vmem:[%s6793_s15 + $0xd8] sm:$0xff] }
 0x991   : > { %v2202_v26 = vmul.f32 1.442695, %v2201_v23  ;;  %v6054_v23 = vpack.c.bf16 %v5321_v21, %v5320_v20 }
 0x992   : > { %v2210_v27 = vpop.permute.xlu0 %2209 }
 0x993   : > { %6369 = vpow2.f32 %v2202_v26  ;;  %5739 = vmatpush3.msra.mxu1 %v2210_v27  ;;  %v5336_v26 = vld [vmem:[%s6793_s15 + $0xe0] sm:$0xff]  ;;  %v5337_v27 = vld [vmem:[%s6793_s15 + $0xe8] sm:$0xff] }
 0x994   : > { %5748 = vmatprep.subr.mxu1 %v6570_v16 }
 0x99d   : > { %v6370_v28 = vpop.eup %6369 }
 0x99e   : > { %v2204_v29 = vsel %vm1641_vm7, %v6370_v28, 0.0 }
 0x99f   : > { %2205 = vadd.xlane.f32.xlu1 %v2204_v29  ;;  %v5338_v29 = vld [vmem:[%s6793_s15 + $0xf0] sm:$0xff] }
 0x9b0   : > { %2361 = vrot.lane.b32.xlu1 %v7042_v31, %s6579_s6  ;;  %v2360_v31 = vpop.permute.xlu0 %2359 }
 0x9cf   : > { %v2115_v33 = vpop.f32.mrb[14].mxu1 }
 0x9d0   : > { %v2119_v25 = vadd.f32 %v2115_v33, %v1879_v32  ;;  %v5732_v35 = vpop.f32.mrb[15].mxu1  ;;  %v6072_v32 = vpack.c.bf16 %v5339_v30, %v5338_v29  ;;  %v2625_v33 = vld [vmem:[%s6814_s17] sm:$0xff] }
 0xa2c   : > { %v2206_v36 = vpop.xlane.xlu1 %2205 }
 0xa2d   : > { %6371 = vrcp.f32 %v2206_v36 }
 0xa30   : > { %v2362_v40 = vpop.permute.xlu1 %2361 }
 0xa37   : > { %v6372_v37 = vpop.eup %6371 }
 0xa38   : > { %v2208_v38 = vmul.f32 %v6372_v37, %v6370_v28  ;;  %v6068_v28 = vpack.c.bf16 %v5337_v27, %v5336_v26 }
 0xa3a   : > { %5741 = vmatmul.mubr.msk.f32.vlgmr.msra.gmra.mrb[16].mxu1 %vm1641_vm7, %v2208_v38  ;;  %v5267_v38 = vld [vmem:[%s7611_s16 + $0x3] ss:$0 sm:$0xff] }
 0xa3b   : > { %5749 = vmatpush3.xpose.msk.msra.mxu1 %vm1641_vm7, %v2362_v40  ;;  %5750 = vmatprep.mubr.msk.f32.mxu1 %vm6569_vm3, %v6570_v16  ;;  %v1220_v41 = vadd.f32 %v5267_v38, %v7027_v11  ;;  %v5352_v38 = vld [vmem:[%s6793_s15 + $0x110] sm:$0xff] }
 0xa3c   : > { %5758 = vmatprep.subr.mxu1 %v6570_v16 }
 0xa3e   : > { %5751 = vmatmul.mubr.msk.f32.vlgmr.msra.gmra.mrb[18].mxu1 %vm1641_vm7, %v2360_v31  ;;  %v5316_v31 = vld [vmem:[%s6841_s14 + $0xd] ss:$0 sm:$0xff] }
 0xa3f   : > { %5760 = vmatprep.mubr.msk.f32.mxu1 %vm6569_vm3, %v6570_v16  ;;  %5759 = vmatpush3.msra.mxu1 %v5298_v54  ;;  %v1226_v54 = vstv %s621_s25 }
 0xa40   : > { %6056 = vmatprep.subr.bf16.mxu1 %v6568_v13 }
 0xb0d   : > { %v2281_v42 = vpop.f32.mrb[16].mxu1 }
 0xb0e   : > { %v5742_v43 = vpop.f32.mrb[17].mxu1  ;;  %5746 = vmatmul.mubr.msk.f32.vlgmr.msra.gmra.mrb[16].mxu0 %vm1641_vm7, %v2281_v42 }
 0xb0f   : > { %5755 = vmatprep.mubr.msk.f32.mxu0 %vm6569_vm3, %v6570_v16  ;;  %v5330_v43 = vld [vmem:[%s6793_s15 + $0x140] sm:$0xff] }
 0xb11   : > { %v2433_v44 = vpop.f32.mrb[18].mxu1 }
 0xb12   : > { %v5752_v45 = vpop.f32.mrb[19].mxu1  ;;  %v2437_v46 = vsel %vm1641_vm7, %v2433_v44, -inf }
 0xb13   : > { %2438 = vmax.xlane.f32.xlu0 %v2437_v46  ;;  %v5317_v46 = vld [vmem:[%s6841_s14 + $0xe] ss:$0 sm:$0xff] }
 0xb29   : > { %2448 = vrot.lane.b32.xlu0 %v7066_v50, %s6579_s6 }
 0xba0   : > { %v2439_v47 = vpop.xlane.xlu0 %2438 }
 0xba1   : > { %v2440_v48 = vsub.f32 %v2433_v44, %v2439_v47  ;;  %v5331_v44 = vld [vmem:[%s6793_s15 + $0x148] sm:$0xff] }
 0xba3   : > { %v2441_v49 = vmul.f32 1.442695, %v2440_v48  ;;  %v6063_v48 = vpack.c.bf16 %v5331_v44, %v5330_v43 }
 0xba4   : > { %v2449_v51 = vpop.permute.xlu0 %2448 }
 0xba5   : > { %6373 = vpow2.f32 %v2441_v49  ;;  %5754 = vmatpush3.msra.mxu0 %v2449_v51 }
 0xba6   : > { %6050 = vmatprep.subr.bf16.mxu0 %v6568_v13 }
 0xbaf   : > { %v6374_v52 = vpop.eup %6373 }
 0xbb0   : > { %v2443_v53 = vsel %vm1641_vm7, %v6374_v52, 0.0 }
 0xbb1   : > { %2444 = vadd.xlane.f32.xlu1 %v2443_v53  ;;  %v5333_v53 = vld [vmem:[%s6793_s15 + $0x158] sm:$0xff] }
 0xbe1   : > { %v2354_v50 = vpop.f32.mrb[16].mxu0 }
 0xbe2   : > { %v2358_v55 = vadd.f32 %v2354_v50, %v2119_v25  ;;  %v5747_v56 = vpop.f32.mrb[17].mxu0  ;;  %v7165_v25 = vld [vmem:[%s6814_s17 + $0x8] sm:$0xff]  ;;  %s1223_s17 = ssub.f32 1.0, %s621_s25  ;;  %v5343_v50 = vld [vmem:[%s6793_s15 + $0x120] sm:$0xff]  ;;  %s6580_s25 = smov [#allocation7]  }
 0xbe3   : > { %s6443_s8 = sshll.u32 %s6580_s25, 4  ;;  %s6444_s8 = int_to_ptr.vmem [resolvable:$false] %s6443_s8 }
 0xbe4   : > { %v1224_v45 = vstv %s1223_s17  ;;  %s6445_s27 = scalar_lea.vmem %s6444_s8, 256 }
 0xbe5   : > { %v1225_v49 = vmul.f32 %v1224_v45, %v1220_v41 }
 0xbe7   : > { %v1227_v56 = vadd.f32 %v1226_v54, %v1225_v49 }
 0xbe9   : > { %v1228_v60 = vmul.f32 %v1227_v56, %v6934_v19 }
 0xc3e   : > { %v2445_v57 = vpop.xlane.xlu1 %2444 }
 0xc3f   : > { %6375 = vrcp.f32 %v2445_v57 }
 0xc49   : > { %v6376_v58 = vpop.eup %6375 }
 0xc4a   : > { %v2447_v59 = vmul.f32 %v6376_v58, %v6374_v52  ;;  %v5332_v52 = vld [vmem:[%s6793_s15 + $0x150] sm:$0xff] }
 0xc4b   : > { %v6066_v11 = vpack.c.bf16 %v5333_v53, %v5332_v52  ;;  %v5345_v58 = vld [vmem:[%s6793_s15 + $0x130] sm:$0xff]  ;;  %v5354_v52 = vld [vmem:[%s6841_s14 + $0x8] ss:$0 sm:$0xff] }
 0xc4c   : > { %5756 = vmatmul.mubr.msk.f32.vlgmr.msra.gmra.mrb[18].mxu0 %vm1641_vm7, %v2447_v59  ;;  %v5346_v59 = vld [vmem:[%s6793_s15 + $0x138] sm:$0xff] }
 0xc4d   : > { %5771 = vmatprep.mubr.msk.f32.mxu0 %vm6569_vm3, %v6570_v16  ;;  %v6080_v61 = vpack.c.bf16 %v5346_v59, %v5345_v58  ;;  %v5357_v59 = vld [vmem:[%s6793_s15 + $0x160] sm:$0xff] }
 0xd1f   : > { %v2520_v1 = vpop.f32.mrb[18].mxu0 }
 0xd20   : > { %v5757_v39 = vpop.f32.mrb[19].mxu0  ;;  %5761 = vmatmul.mubr.msk.f32.vlgmr.msra.gmra.mrb[20].mxu1 %vm1641_vm7, %v2520_v1  ;;  %v5328_v1 = vld [vmem:[%s6841_s14 + $0xc] ss:$0 sm:$0xff] }
 0xd21   : > { %6058 = vmatpush3.bf16.msra.mxu1 %v6057_v62  ;;  %5782 = vmatprep.mubr.msk.f32.mxu1 %vm6569_vm3, %v6570_v16  ;;  %v2966_v62 = vld [vmem:[%s7612_s2] sm:$0xff]  ;;  %s7621_s2 = sand.u32 1, %s7618_s11  }
 0xd22   : > { %6059 = vmatprep.subr.bf16.mxu1 %v6568_v13 }
 0xd25   : > { %6061 = vmatpush3.bf16.msra.mxu1 %v6060_v2  ;;  %v5322_v2 = vld [vmem:[%s6841_s14 + $0x6] ss:$0 sm:$0xff] }
 0xd26   : > { %6069 = vmatprep.subr.bf16.mxu1 %v6068_v28 }
 0xd28   : > { %5783 = vmatmul.mubr.msk.f32.vlgmr.msra.gmra.mrb[22].mxu1 %vm898_vm6, %v7018_v5 }
 0xd29   : > { %6071 = vmatpush3.bf16.msra.mxu1 %v6068_v28  ;;  %5804 = vmatprep.mubr.msk.f32.mxu1 %vm898_vm6, %v2625_v33 }
 0xd2a   : > { %6073 = vmatprep.subr.bf16.mxu1 %v6072_v32 }
 0xd2d   : > { %6075 = vmatpush3.bf16.msra.mxu1 %v6072_v32 }
 0xd30   : > { %5805 = vmatmul.mubr.msk.f32.vlgmr.msra.gmra.mrb[24].mxu1 %vm898_vm6, %v7165_v25 }
 0xd31   : > { %5826 = vmatprep.mubr.msk.f32.mxu1 %vm898_vm6, %v2625_v33 }
 0xdf3   : > { %v2593_v3 = vpop.f32.mrb[20].mxu1 }
 0xdf4   : > { %v2597_v4 = vadd.f32 %v2593_v3, %v2358_v55  ;;  %v5762_v6 = vpop.f32.mrb[21].mxu1  ;;  %v5344_v55 = vld [vmem:[%s6793_s15 + $0x128] sm:$0xff] }
 0xdf5   : > { %v6076_v57 = vpack.c.bf16 %v5344_v55, %v5343_v50 }
 0xdf6   : > { %v2598_v8 = vadd.f32 %v2597_v4, %v6947_v22  ;;  %v5319_v22 = vld [vmem:[%s6793_s15 + $0xc8] sm:$0xff] }
 0xdf7   : > { %v6051_v34 = vpack.c.bf16 %v5319_v22, %v5318_v18 }
 0xdf8   : > { %v2601_v9 = vsel %vm898_vm6, %v2598_v8, 0.0 }
 0xdf9   : > { %2602 = vadd.xlane.f32.xlu1 %v2601_v9  ;;  %6052 = vmatpush3.bf16.msra.mxu0 %v6051_v34 }
 0xdfa   : > { %6053 = vmatprep.subr.bf16.mxu0 %v6568_v13 }
 0xdfb   : > { %v7150_v10 = vpop.f32.mrb[22].mxu1 }
 0xdfc   : > { %v5784_v24 = vpop.f32.mrb[23].mxu1  ;;  %v2787_v39 = vadd.f32 %v5328_v1, %v7150_v10 }
 0xdfd   : > { %6055 = vmatpush3.bf16.msra.mxu0 %v6054_v23  ;;  %v5334_v23 = vld [vmem:[%s6841_s14 + $0xa] ss:$0 sm:$0xff] }
 0xdfe   : > { %6062 = vmatprep.subr.bf16.mxu0 %v6568_v13  ;;  %v2790_v4 = vmul.f32 %v2787_v39, %v1226_v54 }
 0xe03   : > { %v5806_v19 = vpop.f32.mrb[24].mxu1 }
 0xe04   : > { %v2957_v0 = vpop.f32.mrb[25].mxu1 }
 0xe86   : > { %v2603_v12 = vpop.xlane.xlu1 %2602 }
 0xe87   : > { %v2605_v14 = vmul.f32 0.03125, %v2603_v12 }
 0xe89   : > { %v2606_v15 = vsub.f32 %v2598_v8, %v2605_v14  ;;  %v5347_v14 = vld [vmem:[%s6841_s14 + $0x9] ss:$0 sm:$0xff] }
 0xe8b   : > { %v2607_v5 = vmul.f32 %v2606_v15, %v2606_v15 }
 0xe8d   : > { %v2608_v17 = vsel %vm898_vm6, %v2607_v5, 0.0 }
 0xe8e   : > { %2609 = vadd.xlane.f32.xlu1 %v2608_v17 }
 0xf1b   : > { %v2610_v35 = vpop.xlane.xlu1 %2609 }
 0xf1c   : > { %v2611_v36 = vmul.f32 0.03125, %v2610_v35 }
 0xf1e   : > { %v2612_v37 = vadd.f32 1e-05, %v2611_v36  ;;  %v5350_v36 = vld [vmem:[%s6793_s15 + $0x100] sm:$0xff] }
 0xf20   : > { %6377 = vrsqrt.f32 %v2612_v37  ;;  %v5351_v37 = vld [vmem:[%s6793_s15 + $0x108] sm:$0xff] }
 0xf2a   : > { %v6378_v40 = vpop.eup %6377 }
 0xf2b   : > { %v2614_v42 = vmul.f32 %v6378_v40, %v2606_v15  ;;  %v5340_v15 = vld [vmem:[%s6841_s14 + $0x7] ss:$0 sm:$0xff]  ;;  %v6084_v40 = vpack.c.bf16 %v5351_v37, %v5350_v36 }
 0xf2c   : > { %v2963_v22 = vadd.f32 %v5806_v19, %v5340_v15  ;;  %v2958_v20 = vadd.f32 %v5340_v15, %v2957_v0 }
 0xf2d   : > { %v2619_v47 = vmul.f32 %v5316_v31, %v2614_v42  ;;  %v5353_v31 = vld [vmem:[%s6793_s15 + $0x118] sm:$0xff]  ;;  %6085 = vmatprep.subr.bf16.mxu1 %v6084_v40 }
 0xf2e   : > { %v6088_v41 = vpack.c.bf16 %v5353_v31, %v5352_v38  ;;  %6087 = vmatpush3.bf16.msra.mxu1 %v6084_v40 }
 0xf2f   : > { %v7181_v51 = vadd.f32 %v5317_v46, %v2619_v47 }
 0xf30   : > { %6089 = vmatprep.subr.bf16.mxu1 %v6088_v41 }
 0xf31   : > { %5772 = vmatmul.mubr.msk.f32.vlgmr.msra.gmra.mrb[20].mxu0 %vm898_vm6, %v7181_v51 }
 0xf32   : > { %6064 = vmatpush3.bf16.msra.mxu0 %v6063_v48  ;;  %5793 = vmatprep.mubr.msk.f32.mxu0 %vm6569_vm3, %v6570_v16 }
 0xf33   : > { %6065 = vmatprep.subr.bf16.mxu0 %v6568_v13  ;;  %6091 = vmatpush3.bf16.msra.mxu1 %v6088_v41 }
 0xf34   : > { %6100 = vmatprep.subr.bf16.mxu1 %v6568_v13 }
 0xf36   : > { %6067 = vmatpush3.bf16.msra.mxu0 %v6066_v11  ;;  %5827 = vmatmul.mubr.msk.f32.vlgmr.msra.gmra.mrb[26].mxu1 %vm898_vm6, %v7165_v25 }
 0xf37   : > { %6077 = vmatprep.subr.bf16.mxu0 %v6076_v57  ;;  %5847 = vmatprep.mubr.msk.f32.mxu1 %vm6569_vm3, %v6570_v16 }
 0xf39   : > { %5794 = vmatmul.mubr.msk.f32.vlgmr.msra.gmra.mrb[22].mxu0 %vm898_vm6, %v1228_v60 }
 0xf3a   : > { %6079 = vmatpush3.bf16.msra.mxu0 %v6076_v57  ;;  %5815 = vmatprep.mubr.msk.f32.mxu0 %vm898_vm6, %v2966_v62 }
 0xf3b   : > { %6081 = vmatprep.subr.bf16.mxu0 %v6080_v61 }
 0xf3e   : > { %6083 = vmatpush3.bf16.msra.mxu0 %v6080_v61 }
 0xf3f   : > { %6092 = vmatprep.subr.bf16.mxu0 %v6568_v13 }
 0xf41   : > { %5816 = vmatmul.mubr.msk.f32.vlgmr.msra.gmra.mrb[24].mxu0 %vm898_vm6, %v2967_v63 }
 0xf42   : > { %5833 = vmatprep.mubr.msk.f32.mxu0 %vm6569_vm3, %v6570_v16 }
0x1004   : > { %v2706_v3 = vpop.f32.mrb[20].mxu0 }
0x1005   : > { %v2707_v6 = vadd.f32 %v5322_v2, %v2706_v3  ;;  %v5773_v8 = vpop.f32.mrb[21].mxu0 }
0x1007   : > { %v7208_v9 = vadd.f32 %v2790_v4, %v2707_v6 }
0x1009   : > { %v5828_v25 = vpop.f32.mrb[26].mxu1 }
0x100a   : > { %v3135_v53 = vpop.f32.mrb[27].mxu1 }
0x100b   : > { %v3136_v50 = vadd.f32 %v5354_v52, %v3135_v53 }
0x100c   : > { %v2871_v24 = vpop.f32.mrb[22].mxu0 }
0x100d   : > { %v5795_v12 = vpop.f32.mrb[23].mxu0  ;;  %v7225_v32 = vadd.f32 %v5334_v23, %v2871_v24 }
0x1014   : > { %v5817_v5 = vpop.f32.mrb[24].mxu0 }
0x1015   : > { %v3056_v17 = vadd.f32 %v5817_v5, %v5347_v14  ;;  %v3050_v18 = vpop.f32.mrb[25].mxu0 }
0x1016   : > { %v3051_v34 = vadd.f32 %v5347_v14, %v3050_v18 }
0x1017   : > { %v3145_v21 = vmul.f32 %v3056_v17, %v1226_v54 }
0x1018   : > { %v3144_v26 = vmul.f32 %v3051_v34, %v1226_v54  ;;  %v7219_v27 = vpack.i.bf16 %v3056_v17, %v3051_v34  ;;  %v6093_v28 = vpack.c.bf16 %v3056_v17, %v3051_v34  ;;  %v3141_v54 = vadd.f32 %v5828_v25, %v5354_v52 }
0x1019   : > { %v3147_v29 = vadd.f32 %v3145_v21, %v2963_v22 }
0x101a   : > { %v3146_v30 = vadd.f32 %v3144_v26, %v2958_v20  ;;  %6313 = vrot.lane.b32.xlu0 %v7219_v27, %s6577_s23  ;;  %6095 = vmatpush3.bf16.xpose.msk.msra.mxu0 %vm7214_vm8, %v6093_v28  ;;  %v6101_v55 = vpack.c.bf16 %v3141_v54, %v3136_v50  ;;  %v7259_v11 = vpack.i.bf16 %v3141_v54, %v3136_v50 }
0x101b   : > { %6096 = vmatprep.subr.bf16.mxu0 %v6568_v13 }
0x101c   : > { %v6097_v33 = vpack.c.bf16 %v3147_v29, %v3146_v30  ;;  %v7228_v35 = vpack.i.bf16 %v3147_v29, %v3146_v30  ;;  %6102 = vmatpush3.bf16.msra.mxu1 %v6101_v55 }
0x101d   : > { %5850 = vmatprep.subr.mxu1 %v6570_v16 }
0x101e   : > { %3475 = vrot.lane.b32.xlu0 %v7225_v32, %s6577_s23 }
0x1021   : > { %5834 = vmatmul.mubr.msk.f32.vlgmr.msra.gmra.mrb[26].mxu0 %vm1641_vm7, %v7225_v32 }
0x1022   : > { %3557 = vrot.lane.b32.xlu0 %v7208_v9, %s6577_s23  ;;  %6099 = vmatpush3.bf16.xpose.msk.msra.mxu0 %vm7214_vm8, %v6097_v33  ;;  %v5358_v33 = vld [vmem:[%s6793_s15 + $0x168] sm:$0xff] }
0x1023   : > { %5840 = vmatprep.mubr.msk.f32.mxu0 %vm6569_vm3, %v6570_v16  ;;  %6111 = vmatprep.subr.bf16.mxu0 %v6568_v13 }
0x1029   : > { %5841 = vmatmul.mubr.msk.f32.vlgmr.msra.gmra.mrb[26].mxu0 %vm1641_vm7, %v7208_v9 }
0x102a   : > { %5873 = vmatprep.mubr.msk.f32.mxu0 %vm6569_vm3, %v6570_v16 }
0x108c   : > { %v6314_v60 = vpop.permute.xlu0 %6313 }
0x108d   : > { %v6316_v61 = vunpack.i.h.bf16 %v6314_v60  ;;  %v6315_v62 = vunpack.i.l.bf16 %v6314_v60 }
0x108f   : > { %v6104_v63 = vpack.c.bf16 %v6316_v61, %v6315_v62 }
0x1090   : > { %v3476_v3 = vpop.permute.xlu0 %3475 }
0x1094   : > { %v3558_v6 = vpop.permute.xlu0 %3557 }
0x10fc   : > { %v3308_v42 = vpop.f32.mrb[26].mxu0 }
0x10fd   : > { %v5842_v43 = vpop.f32.mrb[27].mxu0  ;;  %v3313_v44 = vsel %vm3312_vm9, %v3308_v42, -inf }
0x10fe   : > { %3314 = vmax.xlane.f32.xlu1 %v3313_v44 }
0x118b   : > { %v3315_v45 = vpop.xlane.xlu1 %3314 }
0x118c   : > { %v3316_v46 = vsub.f32 %v3308_v42, %v3315_v45 }
0x118e   : > { %v3317_v47 = vmul.f32 1.442695, %v3316_v46 }
0x1190   : > { %6379 = vpow2.f32 %v3317_v47 }
0x119a   : > { %v6380_v48 = vpop.eup %6379 }
0x119b   : > { %v3319_v49 = vsel %vm3312_vm9, %v6380_v48, 0.0 }
0x119c   : > { %3320 = vadd.xlane.f32.xlu1 %v3319_v49 }
0x11ad   : > { %6318 = vrot.lane.b32.xlu1 %v7228_v35, %s6577_s23 }
0x1229   : > { %v3321_v56 = vpop.xlane.xlu1 %3320 }
0x122a   : > { %6381 = vrcp.f32 %v3321_v56 }
0x122d   : > { %v6319_v0 = vpop.permute.xlu1 %6318 }
0x122e   : > { %v6321_v39 = vunpack.i.h.bf16 %v6319_v0  ;;  %v6320_v2 = vunpack.i.l.bf16 %v6319_v0 }
0x1230   : > { %v6108_v4 = vpack.c.bf16 %v6321_v39, %v6320_v2 }
0x1234   : > { %v6382_v57 = vpop.eup %6381 }
0x1235   : > { %v3323_v58 = vmul.f32 %v6382_v57, %v6380_v48  ;;  %v5369_v48 = vld [vmem:[%s6841_s14 + $0xb] ss:$0 sm:$0xff] }
0x1237   : > { %5848 = vmatmul.mubr.msk.f32.vlgmr.msra.gmra.mrb[28].mxu1 %vm3312_vm9, %v3323_v58 }
0x1238   : > { %5851 = vmatpush3.msra.mxu1 %v5357_v59  ;;  %5852 = vmatprep.mubr.msk.f32.mxu1 %vm6569_vm3, %v6570_v16 }
0x1239   : > { %6103 = vmatprep.subr.bf16.mxu1 %v6568_v13 }
0x130a   : > { %v3393_v19 = vpop.f32.mrb[28].mxu1 }
0x130b   : > { %v5849_v1 = vpop.f32.mrb[29].mxu1  ;;  %5853 = vmatmul.mubr.msk.f32.vlgmr.msra.gmra.mrb[30].mxu1 %vm1641_vm7, %v3393_v19 }
0x130c   : > { %6106 = vmatpush3.bf16.xpose.msk.msra.mxu1 %vm7214_vm8, %v6104_v63  ;;  %5859 = vmatprep.mubr.msk.f32.mxu1 %vm6569_vm3, %v6570_v16  ;;  %v5359_v1 = vld [vmem:[%s6793_s15 + $0x170] sm:$0xff] }
0x130d   : > { %6107 = vmatprep.subr.bf16.mxu1 %v6568_v13 }
0x1313   : > { %5860 = vmatmul.mubr.msk.f32.vlgmr.msra.gmra.mrb[32].mxu1 %vm1641_vm7, %v3476_v3 }
0x1314   : > { %6110 = vmatpush3.bf16.xpose.msk.msra.mxu1 %vm7214_vm8, %v6108_v4  ;;  %5866 = vmatprep.mubr.msk.f32.mxu1 %vm6569_vm3, %v6570_v16 }
0x1315   : > { %6122 = vmatprep.subr.bf16.mxu1 %v6568_v13 }
0x131b   : > { %5867 = vmatmul.mubr.msk.f32.vlgmr.msra.gmra.mrb[32].mxu1 %vm1641_vm7, %v3558_v6 }
0x131c   : > { %5899 = vmatprep.mubr.msk.f32.mxu1 %vm6569_vm3, %v6570_v16 }
0x13de   : > { %v3466_v8 = vpop.f32.mrb[30].mxu1 }
0x13df   : > { %v5854_v24 = vpop.f32.mrb[31].mxu1  ;;  %v3474_v49 = vadd.f32 %v5369_v48, %v3466_v8 }
0x13ee   : > { %v3635_v12 = vpop.f32.mrb[32].mxu1 }
0x13ef   : > { %v5868_v14 = vpop.f32.mrb[33].mxu1  ;;  %v3639_v15 = vsel %vm3312_vm9, %v3635_v12, -inf }
0x13f0   : > { %3640 = vmax.xlane.f32.xlu0 %v3639_v15 }
0x1406   : > { %6323 = vrot.lane.b32.xlu0 %v7259_v11, %s6577_s23 }
0x140a   : > { %6333 = vrot.lane.b32.xlu0 %v7228_v35, %s6578_s19 }
0x140e   : > { %3805 = vrot.lane.b32.xlu0 %v7225_v32, %s6578_s19 }
0x147d   : > { %v3641_v5 = vpop.xlane.xlu0 %3640 }
0x147e   : > { %v3642_v17 = vsub.f32 %v3635_v12, %v3641_v5 }
0x1480   : > { %v3643_v18 = vmul.f32 1.442695, %v3642_v17 }
0x1481   : > { %v6324_v22 = vpop.permute.xlu0 %6323 }
0x1482   : > { %6383 = vpow2.f32 %v3643_v18  ;;  %v6326_v34 = vunpack.i.h.bf16 %v6324_v22  ;;  %v6325_v20 = vunpack.i.l.bf16 %v6324_v22 }
0x1484   : > { %v6112_v21 = vpack.c.bf16 %v6326_v34, %v6325_v20 }
0x1485   : > { %v6334_v41 = vpop.permute.xlu0 %6333 }
0x1486   : > { %6113 = vmatpush3.bf16.msra.mxu0 %v6112_v21  ;;  %v6336_v43 = vunpack.i.h.bf16 %v6334_v41  ;;  %v6335_v44 = vunpack.i.l.bf16 %v6334_v41 }
0x1487   : > { %5876 = vmatprep.subr.mxu0 %v6570_v16 }
0x1488   : > { %v6119_v45 = vpack.c.bf16 %v6336_v43, %v6335_v44 }
0x1489   : > { %v3806_v46 = vpop.permute.xlu0 %3805 }
0x148c   : > { %v6384_v23 = vpop.eup %6383 }
0x148d   : > { %v3645_v26 = vsel %vm3312_vm9, %v6384_v23, 0.0 }
0x148e   : > { %3646 = vadd.xlane.f32.xlu1 %v3645_v26 }
0x149f   : > { %6328 = vrot.lane.b32.xlu1 %v7219_v27, %s6578_s19 }
0x14a3   : > { %3887 = vrot.lane.b32.xlu1 %v7208_v9, %s6578_s19 }
0x151b   : > { %v3647_v28 = vpop.xlane.xlu1 %3646 }
0x151c   : > { %6385 = vrcp.f32 %v3647_v28 }
0x151f   : > { %v6329_v36 = vpop.permute.xlu1 %6328 }
0x1520   : > { %v6331_v37 = vunpack.i.h.bf16 %v6329_v36  ;;  %v6330_v38 = vunpack.i.l.bf16 %v6329_v36 }
0x1522   : > { %v6115_v40 = vpack.c.bf16 %v6331_v37, %v6330_v38 }
0x1523   : > { %v3888_v47 = vpop.permute.xlu1 %3887 }
0x1526   : > { %v6386_v29 = vpop.eup %6385 }
0x1527   : > { %v3649_v30 = vmul.f32 %v6386_v29, %v6384_v23 }
0x1529   : > { %5874 = vmatmul.mubr.msk.f32.vlgmr.msra.gmra.mrb[28].mxu0 %vm3312_vm9, %v3649_v30 }
0x152a   : > { %5877 = vmatpush3.msra.mxu0 %v5358_v33  ;;  %5878 = vmatprep.mubr.msk.f32.mxu0 %vm6569_vm3, %v6570_v16 }
0x152b   : > { %6114 = vmatprep.subr.bf16.mxu0 %v6568_v13 }
0x15fc   : > { %v3727_v31 = vpop.f32.mrb[28].mxu0 }
0x15fd   : > { %v5875_v42 = vpop.f32.mrb[29].mxu0  ;;  %5879 = vmatmul.mubr.msk.f32.vlgmr.msra.gmra.mrb[30].mxu0 %vm1641_vm7, %v3727_v31  ;;  %v5360_v31 = vld [vmem:[%s6793_s15 + $0x178] sm:$0xff] }
0x15fe   : > { %6117 = vmatpush3.bf16.xpose.msk.msra.mxu0 %vm7214_vm8, %v6115_v40  ;;  %5885 = vmatprep.mubr.msk.f32.mxu0 %vm6569_vm3, %v6570_v16 }
0x15ff   : > { %6118 = vmatprep.subr.bf16.mxu0 %v6568_v13 }
0x1605   : > { %5886 = vmatmul.mubr.msk.f32.vlgmr.msra.gmra.mrb[32].mxu0 %vm1641_vm7, %v3806_v46 }
0x1606   : > { %6121 = vmatpush3.bf16.xpose.msk.msra.mxu0 %vm7214_vm8, %v6119_v45  ;;  %5892 = vmatprep.mubr.msk.f32.mxu0 %vm6569_vm3, %v6570_v16 }
0x1607   : > { %6133 = vmatprep.subr.bf16.mxu0 %v6568_v13 }
0x160d   : > { %5893 = vmatmul.mubr.msk.f32.vlgmr.msra.gmra.mrb[32].mxu0 %vm1641_vm7, %v3888_v47 }
0x160e   : > { %5925 = vmatprep.mubr.msk.f32.mxu0 %vm6569_vm3, %v6570_v16 }
0x16d0   : > { %v3800_v25 = vpop.f32.mrb[30].mxu0 }
0x16d1   : > { %v3804_v52 = vadd.f32 %v3800_v25, %v3474_v49  ;;  %v5880_v53 = vpop.f32.mrb[31].mxu0 }
0x16d2   : > { %v4487_v53 = vld [vmem:[%s7615_s5] sm:$0xff] }
0x16e0   : > { %v3965_v54 = vpop.f32.mrb[32].mxu0 }
0x16e1   : > { %v5894_v50 = vpop.f32.mrb[33].mxu0  ;;  %v3969_v55 = vsel %vm3312_vm9, %v3965_v54, -inf }
0x16e2   : > { %3970 = vmax.xlane.f32.xlu0 %v3969_v55  ;;  %v4490_v55 = vld [vmem:[%s7615_s5 + $0x18] sm:$0xff] }
0x16f8   : > { %6338 = vrot.lane.b32.xlu0 %v7259_v11, %s6578_s19  ;;  %s5004_s19 = sshll.u32 %s562_s24, 4  ;;  %s5005_s19 = int_to_ptr.vmem [resolvable:$true] %s5004_s19 }
0x16f9   : > { %s6439_s15 = scalar_lea.vmem %s5005_s19, 128  ;;  %p6446_p11 = scmp.lt.s32.totalorder %s5005_s19, %s6444_s8 }
0x16fa   : > { %p6440_p1 = scmp.ne.s32.totalorder %s5005_s19, %s6439_s15  ;;  %p6447_p12 = scmp.lt.s32.totalorder %s6445_s27, %s6439_s15 }
0x16fc   : > { %6348 = vrot.lane.b32.xlu0 %v7228_v35, %s6579_s6  ;;  %p6441_p7 = pnand %p6440_p1, %p7622_p3  ;;  %p6448_p5 = por %p6447_p12, %p6446_p11 }
0x16fe   : > { %p6442_p10 = pneg %p6441_p7 }
0x1700   : > { %4215 = vrot.lane.b32.xlu0 %v7208_v9, %s6579_s6  ;;  %p6449_p6 = pnand %p6448_p5, %p6442_p10 }
0x176f   : > { %v3971_v56 = vpop.xlane.xlu0 %3970 }
0x1770   : > { %v3972_v57 = vsub.f32 %v3965_v54, %v3971_v56  ;;  %v4488_v54 = vld [vmem:[%s7615_s5 + $0x8] sm:$0xff] }
0x1771   : > { %v6137_v50 = vpack.c.bf16 %v4488_v54, %v4487_v53  ;;  %v5412_v54 = vld [vmem:[%s7610_s3 + $0xb0] sm:$0xff] }
0x1772   : > { %v3973_v58 = vmul.f32 1.442695, %v3972_v57  ;;  %v4572_v57 = vld [vmem:[%s6846_s1] sm:$0xff] }
0x1773   : > { %v6339_v59 = vpop.permute.xlu0 %6338 }
0x1774   : > { %6387 = vpow2.f32 %v3973_v58  ;;  %v6341_v60 = vunpack.i.h.bf16 %v6339_v59  ;;  %v6340_v61 = vunpack.i.l.bf16 %v6339_v59  ;;  %v4573_v58 = vld [vmem:[%s6846_s1 + $0x8] sm:$0xff]  ;;  %v4574_v59 = vld [vmem:[%s6846_s1 + $0x10] sm:$0xff] }
0x1776   : > { %v6123_v62 = vpack.c.bf16 %v6341_v60, %v6340_v61  ;;  %v6143_v60 = vpack.c.bf16 %v4573_v58, %v4572_v57  ;;  %v4575_v61 = vld [vmem:[%s6846_s1 + $0x18] sm:$0xff] }
0x1777   : > { %v6349_v6 = vpop.permute.xlu0 %6348 }
0x1778   : > { %6124 = vmatpush3.bf16.msra.mxu1 %v6123_v62  ;;  %v6351_v8 = vunpack.i.h.bf16 %v6349_v6  ;;  %v6350_v24 = vunpack.i.l.bf16 %v6349_v6  ;;  %v6146_v62 = vpack.c.bf16 %v4575_v61, %v4574_v59  ;;  %v5416_v59 = vld [vmem:[%s7610_s3 + $0xc0] sm:$0xff] }
0x1779   : > { %5902 = vmatprep.subr.mxu1 %v6570_v16 }
0x177a   : > { %v6130_v12 = vpack.c.bf16 %v6351_v8, %v6350_v24  ;;  %v4579_v8 = vld [vmem:[%s6846_s1 + $0x38] sm:$0xff] }
0x177b   : > { %v4216_v15 = vpop.permute.xlu0 %4215 }
0x177e   : > { %v6388_v63 = vpop.eup %6387 }
0x177f   : > { %v3975_v19 = vsel %vm3312_vm9, %v6388_v63, 0.0 }
0x1780   : > { %3976 = vadd.xlane.f32.xlu1 %v3975_v19  ;;  %v4577_v19 = vld [vmem:[%s6846_s1 + $0x28] sm:$0xff] }
0x1791   : > { %6343 = vrot.lane.b32.xlu1 %v7219_v27, %s6579_s6 }
0x1795   : > { %4133 = vrot.lane.b32.xlu1 %v7225_v32, %s6579_s6 }
0x180d   : > { %v3977_v9 = vpop.xlane.xlu1 %3976 }
0x180e   : > { %6389 = vrcp.f32 %v3977_v9 }
0x1811   : > { %v6344_v39 = vpop.permute.xlu1 %6343 }
0x1812   : > { %v6346_v2 = vunpack.i.h.bf16 %v6344_v39  ;;  %v6345_v3 = vunpack.i.l.bf16 %v6344_v39 }
0x1814   : > { %v6126_v27 = vpack.c.bf16 %v6346_v2, %v6345_v3  ;;  %v5394_v2 = vld [vmem:[%s6841_s14 + $0xf] ss:$0 sm:$0xff] }
0x1815   : > { %v4134_v14 = vpop.permute.xlu1 %4133 }
0x1818   : > { %v6390_v35 = vpop.eup %6389 }
0x1819   : > { %v3979_v0 = vmul.f32 %v6390_v35, %v6388_v63  ;;  %v4576_v63 = vld [vmem:[%s6846_s1 + $0x20] sm:$0xff] }
0x181a   : > { %v6149_v9 = vpack.c.bf16 %v4577_v19, %v4576_v63 }
0x181b   : > { %5900 = vmatmul.mubr.msk.f32.vlgmr.msra.gmra.mrb[34].mxu1 %vm3312_vm9, %v3979_v0 }
0x181c   : > { %5903 = vmatpush3.msra.mxu1 %v5359_v1  ;;  %5904 = vmatprep.mubr.msk.f32.mxu1 %vm6569_vm3, %v6570_v16 }
0x181d   : > { %6125 = vmatprep.subr.bf16.mxu1 %v6568_v13 }
0x18ee   : > { %v4055_v4 = vpop.f32.mrb[34].mxu1 }
0x18ef   : > { %v5901_v32 = vpop.f32.mrb[35].mxu1  ;;  %5905 = vmatmul.mubr.msk.f32.vlgmr.msra.gmra.mrb[36].mxu1 %vm1641_vm7, %v4055_v4 }
0x18f0   : > { %6128 = vmatpush3.bf16.xpose.msk.msra.mxu1 %vm7214_vm8, %v6126_v27  ;;  %5911 = vmatprep.mubr.msk.f32.mxu1 %vm6569_vm3, %v6570_v16  ;;  %v5395_v27 = vld [vmem:[%s6841_s14 + $0x10] ss:$0 sm:$0xff] }
0x18f1   : > { %6129 = vmatprep.subr.bf16.mxu1 %v6568_v13  ;;  %v4578_v32 = vld [vmem:[%s6846_s1 + $0x30] sm:$0xff] }
0x18f2   : > { %v6152_v24 = vpack.c.bf16 %v4579_v8, %v4578_v32  ;;  %v5403_v32 = vld [vmem:[%s7611_s16 + $0x8] ss:$0 sm:$0xff] }
0x18f7   : > { %5912 = vmatmul.mubr.msk.f32.vlgmr.msra.gmra.mrb[38].mxu1 %vm1641_vm7, %v4134_v14 }
0x18f8   : > { %6132 = vmatpush3.bf16.xpose.msk.msra.mxu1 %vm7214_vm8, %v6130_v12  ;;  %5918 = vmatprep.mubr.msk.f32.mxu1 %vm6569_vm3, %v6570_v16  ;;  %v5396_v12 = vld [vmem:[%s610_s10] ss:$0 sm:$0xff] }
0x18f9   : > { %6142 = vmatprep.subr.bf16.mxu1 %v6568_v13 }
0x18ff   : > { %5919 = vmatmul.mubr.msk.f32.vlgmr.msra.gmra.mrb[38].mxu1 %vm1641_vm7, %v4216_v15 }
0x1900   : > { %5960 = vmatprep.mubr.msk.f32.mxu1 %vm6569_vm3, %v6570_v16  ;;  %6144 = vmatpush3.bf16.msra.mxu1 %v6143_v60  ;;  %v5417_v60 = vld [vmem:[%s7610_s3 + $0xc8] sm:$0xff] }
0x1901   : > { %6145 = vmatprep.subr.bf16.mxu1 %v6568_v13  ;;  %v6167_v61 = vpack.c.bf16 %v5417_v60, %v5416_v59 }
0x1904   : > { %6147 = vmatpush3.bf16.msra.mxu1 %v6146_v62  ;;  %v5408_v62 = vld [vmem:[%s7611_s16 + $0x4] ss:$0 sm:$0xff] }
0x1905   : > { %6148 = vmatprep.subr.bf16.mxu1 %v6568_v13 }
0x1908   : > { %6150 = vmatpush3.bf16.msra.mxu1 %v6149_v9 }
0x1909   : > { %6151 = vmatprep.subr.bf16.mxu1 %v6568_v13 }
0x190c   : > { %6153 = vmatpush3.bf16.msra.mxu1 %v6152_v24 }
0x190d   : > { %6166 = vmatprep.subr.bf16.mxu1 %v6568_v13 }
0x19c2   : > { %v4128_v5 = vpop.f32.mrb[36].mxu1 }
0x19c3   : > { %v4132_v17 = vadd.f32 %v4128_v5, %v3804_v52  ;;  %v5906_v18 = vpop.f32.mrb[37].mxu1 }
0x19c4   : > { %v5398_v18 = vld [vmem:[%s6841_s14 + $0x13] ss:$0 sm:$0xff] }
0x19d2   : > { %v4293_v22 = vpop.f32.mrb[38].mxu1 }
0x19d3   : > { %v5920_v34 = vpop.f32.mrb[39].mxu1  ;;  %v4297_v20 = vsel %vm3312_vm9, %v4293_v22, -inf }
0x19d4   : > { %4298 = vmax.xlane.f32.xlu1 %v4297_v20 }
0x1a61   : > { %v4299_v10 = vpop.xlane.xlu1 %4298 }
0x1a62   : > { %v4300_v21 = vsub.f32 %v4293_v22, %v4299_v10 }
0x1a64   : > { %v4301_v23 = vmul.f32 1.442695, %v4300_v21 }
0x1a66   : > { %6391 = vpow2.f32 %v4301_v23 }
0x1a70   : > { %v6392_v26 = vpop.eup %6391 }
0x1a71   : > { %v4303_v28 = vsel %vm3312_vm9, %v6392_v26, 0.0 }
0x1a72   : > { %4304 = vadd.xlane.f32.xlu0 %v4303_v28 }
0x1a88   : > { %6353 = vrot.lane.b32.xlu0 %v7259_v11, %s6579_s6 }
0x1aff   : > { %v4305_v29 = vpop.xlane.xlu0 %4304 }
0x1b00   : > { %6393 = vrcp.f32 %v4305_v29 }
0x1b03   : > { %v6354_v30 = vpop.permute.xlu0 %6353 }
0x1b04   : > { %v6356_v33 = vunpack.i.h.bf16 %v6354_v30  ;;  %v6355_v36 = vunpack.i.l.bf16 %v6354_v30 }
0x1b06   : > { %v6134_v37 = vpack.c.bf16 %v6356_v33, %v6355_v36  ;;  %v5404_v33 = vld [vmem:[%s7610_s3 + $0x80] sm:$0xff]  ;;  %v5405_v36 = vld [vmem:[%s7610_s3 + $0x88] sm:$0xff] }
0x1b08   : > { %6135 = vmatpush3.bf16.msra.mxu0 %v6134_v37  ;;  %v6155_v37 = vpack.c.bf16 %v5405_v36, %v5404_v33 }
0x1b09   : > { %5928 = vmatprep.subr.mxu0 %v6570_v16 }
0x1b0a   : > { %v6394_v38 = vpop.eup %6393 }
0x1b0b   : > { %v4307_v40 = vmul.f32 %v6394_v38, %v6392_v26  ;;  %v5406_v38 = vld [vmem:[%s7610_s3 + $0x90] sm:$0xff] }
0x1b0d   : > { %5926 = vmatmul.mubr.msk.f32.vlgmr.msra.gmra.mrb[34].mxu0 %vm3312_vm9, %v4307_v40  ;;  %v5407_v40 = vld [vmem:[%s7610_s3 + $0x98] sm:$0xff] }
0x1b0e   : > { %5929 = vmatpush3.msra.mxu0 %v5360_v31  ;;  %5930 = vmatprep.mubr.msk.f32.mxu0 %vm6569_vm3, %v6570_v16  ;;  %v6158_v31 = vpack.c.bf16 %v5407_v40, %v5406_v38 }
0x1b0f   : > { %6136 = vmatprep.subr.bf16.mxu0 %v6568_v13 }
0x1be0   : > { %v4383_v11 = vpop.f32.mrb[34].mxu0 }
0x1be1   : > { %v5927_v41 = vpop.f32.mrb[35].mxu0  ;;  %5931 = vmatmul.mubr.msk.f32.vlgmr.msra.gmra.mrb[36].mxu0 %vm1641_vm7, %v4383_v11 }
0x1be2   : > { %5941 = vmatprep.mubr.msk.f32.mxu0 %vm6569_vm3, %v6570_v16  ;;  %6138 = vmatpush3.bf16.msra.mxu0 %v6137_v50 }
0x1be3   : > { %6139 = vmatprep.subr.bf16.mxu0 %v6568_v13 }
0x1cb4   : > { %v4456_v42 = vpop.f32.mrb[36].mxu0 }
0x1cb5   : > { %v4460_v43 = vadd.f32 %v4456_v42, %v4132_v17  ;;  %v5932_v44 = vpop.f32.mrb[37].mxu0 }
0x1cb6   : > { %v5400_v44 = vld [vmem:[%s6841_s14 + $0x11] ss:$0 sm:$0xff] }
0x1cb7   : > { %v4461_v45 = vadd.f32 %v4460_v43, %v7181_v51  ;;  %v4489_v51 = vld [vmem:[%s7615_s5 + $0x10] sm:$0xff]  ;;  %s4981_s5 = scalar_lea.sflag [#allocation6], %s7621_s2 }
0x1cb8   : > { %v6140_v56 = vpack.c.bf16 %v4490_v55, %v4489_v51 }
0x1cb9   : > { %v4464_v46 = vsel %vm898_vm6, %v4461_v45, 0.0 }
0x1cba   : > { %4465 = vadd.xlane.f32.xlu1 %v4464_v46  ;;  %6141 = vmatpush3.bf16.msra.mxu0 %v6140_v56  ;;  %v5401_v46 = vld [vmem:[%s6841_s14 + $0x12] ss:$0 sm:$0xff]  ;;  %s5000_s14 = sadd.s32 %s7617_s21, %s5423_s12 }
0x1cbb   : > { %6154 = vmatprep.subr.bf16.mxu0 %v6568_v13  ;;  %s5424_s23 = sshll.u32 %s5000_s14, 7 }
0x1cbc   : > { %s7470_s17 = scalar_lea.hbm %s7620_s0, %s5424_s23 }
0x1d47   : > { %v4466_v47 = vpop.xlane.xlu1 %4465 }
0x1d48   : > { %v4467_v48 = vmul.f32 0.03125, %v4466_v47 }
0x1d4a   : > { %v4468_v49 = vsub.f32 %v4461_v45, %v4467_v48 }
0x1d4c   : > { %v4469_v25 = vmul.f32 %v4468_v49, %v4468_v49 }
0x1d4e   : > { %v4470_v52 = vsel %vm898_vm6, %v4469_v25, 0.0  ;;  %v5410_v25 = vld [vmem:[%s7610_s3 + $0xa0] sm:$0xff] }
0x1d4f   : > { %4471 = vadd.xlane.f32.xlu1 %v4470_v52  ;;  %v5411_v52 = vld [vmem:[%s7610_s3 + $0xa8] sm:$0xff] }
0x1d50   : > { %v6161_v53 = vpack.c.bf16 %v5411_v52, %v5410_v25 }
0x1ddc   : > { %v4472_v35 = vpop.xlane.xlu1 %4471 }
0x1ddd   : > { %v4473_v0 = vmul.f32 0.03125, %v4472_v35 }
0x1ddf   : > { %v4474_v1 = vadd.f32 1e-05, %v4473_v0 }
0x1de1   : > { %6395 = vrsqrt.f32 %v4474_v1 }
0x1deb   : > { %v6396_v39 = vpop.eup %6395 }
0x1dec   : > { %v4476_v3 = vmul.f32 %v6396_v39, %v4468_v49 }
0x1dee   : > { %v4481_v4 = vmul.f32 %v5394_v2, %v4476_v3  ;;  %v5418_v2 = vld [vmem:[%s7610_s3 + $0xd0] sm:$0xff] }
0x1df0   : > { %v4486_v6 = vadd.f32 %v5395_v27, %v4481_v4  ;;  %v5402_v4 = vld [vmem:[%s7611_s16 + $0x7] ss:$0 sm:$0xff] }
0x1df2   : > { %5942 = vmatmul.mubr.msk.f32.vlgmr.msra.gmra.mrb[38].mxu0 %vm898_vm6, %v4486_v6 }
0x1df3   : > { %5971 = vmatprep.mubr.msk.f32.mxu0 %vm6569_vm3, %v6570_v16  ;;  %6156 = vmatpush3.bf16.msra.mxu0 %v6155_v37 }
0x1df4   : > { %6157 = vmatprep.subr.bf16.mxu0 %v6568_v13 }
0x1df7   : > { %6159 = vmatpush3.bf16.msra.mxu0 %v6158_v31 }
0x1df8   : > { %6160 = vmatprep.subr.bf16.mxu0 %v6568_v13 }
0x1ec5   : > { %v4567_v14 = vpop.f32.mrb[38].mxu0 }
0x1ec6   : > { %v4568_v15 = vadd.f32 %v5396_v12, %v4567_v14  ;;  %v5943_v5 = vpop.f32.mrb[39].mxu0  ;;  %v5414_v12 = vld [vmem:[%s7611_s16 + $0x5] ss:$0 sm:$0xff] }
0x1ec8   : > { %v4571_v17 = vmax.f32 %v4568_v15, 0.0 }
0x1eca   : > { %5961 = vmatmul.mubr.msk.f32.vlgmr.msra.gmra.mrb[40].mxu1 %vm4585_vm10, %v4571_v17 }
0x1ecb   : > { %5993 = vmatprep.mubr.msk.f32.mxu1 %vm6569_vm3, %v6570_v16  ;;  %6168 = vmatpush3.bf16.msra.mxu1 %v6167_v61 }
0x1ecc   : > { %6169 = vmatprep.subr.bf16.mxu1 %v6568_v13 }
0x1f9d   : > { %v4655_v22 = vpop.f32.mrb[40].mxu1 }
0x1f9e   : > { %v4656_v34 = vadd.f32 %v5398_v18, %v4655_v22  ;;  %v5962_v20 = vpop.f32.mrb[41].mxu1 }
0x1fa0   : > { %v4659_v10 = vadd.f32 %v4656_v34, %v4486_v6 }
0x1fa2   : > { %v4662_v21 = vsel %vm898_vm6, %v4659_v10, 0.0 }
0x1fa3   : > { %4663 = vadd.xlane.f32.xlu1 %v4662_v21 }
0x2030   : > { %v4664_v23 = vpop.xlane.xlu1 %4663 }
0x2031   : > { %v4665_v26 = vmul.f32 0.03125, %v4664_v23 }
0x2033   : > { %v4666_v28 = vsub.f32 %v4659_v10, %v4665_v26 }
0x2035   : > { %v4667_v29 = vmul.f32 %v4666_v28, %v4666_v28 }
0x2037   : > { %v4668_v30 = vsel %vm898_vm6, %v4667_v29, 0.0 }
0x2038   : > { %4669 = vadd.xlane.f32.xlu1 %v4668_v30 }
0x20c5   : > { %v4670_v11 = vpop.xlane.xlu1 %4669 }
0x20c6   : > { %v4671_v41 = vmul.f32 0.03125, %v4670_v11 }
0x20c8   : > { %v4672_v42 = vadd.f32 1e-05, %v4671_v41 }
0x20ca   : > { %6397 = vrsqrt.f32 %v4672_v42 }
0x20d4   : > { %v6398_v43 = vpop.eup %6397 }
0x20d5   : > { %v4674_v45 = vmul.f32 %v6398_v43, %v4666_v28 }
0x20d7   : > { %v4679_v47 = vmul.f32 %v5400_v44, %v4674_v45 }
0x20d9   : > { %v4684_v48 = vadd.f32 %v5401_v46, %v4679_v47 }
0x20db   : > { %4685 = vst.msk [vmem:[#allocation2] sm:$0xff] %vm898_vm6, %v4684_v48  ;;  %5972 = vmatmul.mubr.msk.f32.vlgmr.msra.gmra.mrb[40].mxu0 %vm898_vm6, %v4684_v48  ;;  %v4688_v49 = vsel %vm898_vm6, %v4684_v48, 0.0 }
0x20dc   : > { %4689 = vadd.xlane.f32.xlu1 %v4688_v49  ;;  %5982 = vmatprep.mubr.msk.f32.mxu0 %vm6569_vm3, %v6570_v16  ;;  %v5413_v16 = vld [vmem:[%s7610_s3 + $0xb8] sm:$0xff] }
0x20dd   : > { %6162 = vmatpush3.bf16.msra.mxu0 %v6161_v53  ;;  %v6164_v50 = vpack.c.bf16 %v5413_v16, %v5412_v54 }
0x20de   : > { %6163 = vmatprep.subr.bf16.mxu0 %v6568_v13  ;;  %v5419_v13 = vld [vmem:[%s7610_s3 + $0xd8] sm:$0xff] }
0x20df   : > { %v6170_v3 = vpack.c.bf16 %v5419_v13, %v5418_v2 }
0x20e1   : > { %6165 = vmatpush3.bf16.msra.mxu0 %v6164_v50  ;;  %6171 = vmatpush3.bf16.msra.mxu1 %v6170_v3 }
0x2169   : > { %v4690_v51 = vpop.xlane.xlu1 %4689 }
0x216a   : > { %v4691_v55 = vmul.f32 0.03125, %v4690_v51 }
0x216c   : > { %v4692_v56 = vsub.f32 %v4684_v48, %v4691_v55 }
0x216e   : > { %v4693_v57 = vmul.f32 %v4692_v56, %v4692_v56 }
0x2170   : > { %v4694_v58 = vsel %vm898_vm6, %v4693_v57, 0.0 }
0x2171   : > { %4695 = vadd.xlane.f32.xlu0 %v4694_v58 }
0x21ae   : > { %v4791_v63 = vpop.f32.mrb[40].mxu0 }
0x21af   : > { %v4792_v19 = vadd.f32 %v5408_v62, %v4791_v63  ;;  %v5973_v9 = vpop.f32.mrb[41].mxu0 }
0x21b1   : > { %v4795_v35 = vmax.f32 %v4792_v19, 0.0 }
0x21b3   : > { %5983 = vmatmul.mubr.msk.f32.vlgmr.msra.gmra.mrb[42].mxu0 %vm898_vm6, %v4795_v35 }
0x21fe   : > { %v4696_v0 = vpop.xlane.xlu0 %4695 }
0x21ff   : > { %v4697_v1 = vmul.f32 0.03125, %v4696_v0 }
0x2201   : > { %v4698_v39 = vadd.f32 1e-05, %v4697_v1 }
0x2203   : > { %6399 = vrsqrt.f32 %v4698_v39 }
0x220d   : > { %v6400_v27 = vpop.eup %6399 }
0x220e   : > { %v4700_v6 = vmul.f32 %v6400_v27, %v4692_v56 }
0x2210   : > { %v4705_v8 = vmul.f32 %v5402_v4, %v4700_v6 }
0x2212   : > { %v4710_v24 = vadd.f32 %v5403_v32, %v4705_v8 }
0x2214   : > { %4711 = vst.msk [vmem:[%s562_s24] sm:$0xff] %vm898_vm6, %v4710_v24 }
0x2286   : > { %v4875_v14 = vpop.f32.mrb[42].mxu0 }
0x2287   : > { %v4876_v15 = vadd.f32 %v5414_v12, %v4875_v14  ;;  %v5984_v5 = vpop.f32.mrb[43].mxu0 }
0x2289   : > { %v4879_v17 = vmax.f32 %v4876_v15, 0.0 }
0x228b   : > { %5994 = vmatmul.mubr.msk.f32.vlgmr.msra.gmra.mrb[42].mxu1 %vm898_vm6, %v4879_v17 }
0x228c   : > { %6452 = shalt.err (!%p6449_p6)
}
0x228d   : > { %s6453_s30 = scalar_lea.hbm %s7470_s17, 128  ;;  %s6457_s10 = scalar_lea.hbm %s7620_s0, 512 }
0x228e   : > { %p6454_p9 = scmp.ne.s32.totalorder %s7470_s17, %s6453_s30  ;;  %p6458_p4 = scmp.lt.u32.totalorder %s7470_s17, %s7620_s0 }
0x228f   : > { %p6459_p8 = scmp.lt.u32.totalorder %s6457_s10, %s6453_s30  ;;  %p6461_p1 = scmp.lt.u32.totalorder %s6453_s30, %s7470_s17 }
0x2290   : > { %p6455_p13 = pnand %p6454_p9, %p7622_p3 }
0x2291   : > { %p6460_p0 = por %p6459_p8, %p6458_p4 }
0x2292   : > { %p6456_p2 = pneg %p6455_p13 }
0x2293   : > { %p6462_p7 = por %p6461_p1, %p6460_p0 }
0x2295   : > { %p6463_p10 = pnand %p6462_p7, %p6456_p2 }
0x2297   : > { %6466 = shalt.err (!%p6463_p10)
}
0x2298   : > { %6190 = dma.vmem_to_hbm [thread:$0]  (%p7622_p3), %s5005_s19, 128, %s7470_s17, %s4981_s5   ;;  %v4963_v18 = vmax.f32 %v6859_v7, 0.0  ;;  %v5420_v28 = vld [vmem:[%s7611_s16 + $0x6] ss:$0 sm:$0xff] }
0x229a   : > { %v4964_v22 = vmin.f32 %v4963_v18, 1.0 }
0x229c   : > { %v4966_v34 = vsub.f32 1.0, %v4964_v22  ;;  %v4965_v10 = vmax.f32 %v4964_v22, 0.001 }
0x229e   : > { %v4967_v20 = vmax.f32 %v4966_v34, 0.001 }
0x22a0   : > { %6401 = vrcp.f32 %v4967_v20 }
0x22aa   : > { %v6402_v21 = vpop.eup %6401 }
0x22ab   : > { %v4969_v23 = vmul.f32 %v6402_v21, %v4965_v10 }
0x22ad   : > { %6403 = vlog2.f32 %v4969_v23 }
0x22b7   : > { %v6404_v26 = vpop.eup %6403 }
0x22b8   : > { %v4971_v29 = vmul.f32 0.6931472, %v6404_v26 }
0x235e   : > { %v4959_v30 = vpop.f32.mrb[42].mxu1 }
0x235f   : > { %v4960_v33 = vadd.f32 %v5420_v28, %v4959_v30  ;;  %v5995_v36 = vpop.f32.mrb[43].mxu1 }
0x2361   : > { %v4972_v37 = vadd.f32 %v4971_v29, %v4960_v33 }
0x2363   : > { %v4973_v38 = vsub.f32 0.0, %v4972_v37 }
0x2365   : > { %v4974_v7 = vmul.f32 1.442695, %v4973_v38 }
0x2367   : > { %6405 = vpow2.f32 %v4974_v7 }
0x2371   : > { %v6406_v40 = vpop.eup %6405 }
0x2372   : > { %v4976_v31 = vadd.f32 1.0, %v6406_v40 }
0x2374   : > { %6407 = vrcp.f32 %v4976_v31 }
0x237e   : > { %v6408_v11 = vpop.eup %6407 }
0x237f   : > { %4979 = vst.msk [vmem:[#allocation3] sm:$0xff] %vm639_vm2, %v6408_v11 }
0x2380 PF: > { %s7623_s18 = sld [smem:[#allocation18_spill]]  ;;  %s7624_s11 = sld [smem:[#allocation10_spill]] }
0x2381   : > { %s7625_s20 = sld [smem:[#allocation24_spill]] }
0x2386   : > { %p6201_p3 = scmp.ge.s32.totalorder %s7623_s18, 2  ;;  %s5019_s29 = sand.u32 1, %s7624_s11  }
0x2387   : > { %p7626_p11 = scmp.ne.s32.totalorder %s7625_s20, 0  ;;  %s5020_s4 = scalar_lea.sflag [#allocation6], %s5019_s29 }
0x2389   : > { %p6197_p12 = pnand %p6201_p3, %p7626_p11 }
0x238b   : > { %6516 = dma.done.wait (!%p6197_p12), %s5020_s4, 128  }
0x238c   : > { %6518 = vsyncadd (!%p6197_p12), %s5020_s4, 4294967168  ;;  %s29_s13 = sadd.s32 1, %s7623_s18   ;;  %s7627_s21 = sld [smem:[#allocation11_spill]] }
0x238d   : > { %p26_p5 = scmp.ge.s32.totalorder %s29_s13, 6   ;;  %s7628_s22 = sld [smem:[#allocation12_spill]] }
0x238e   : > { %s7629_s23 = sld [smem:[#allocation22_spill]]  ;;  %s7630_s24 = sld [smem:[#allocation13_spill]] }
0x238f   : > { %s7631_s25 = sld [smem:[#allocation14_spill]]  ;;  %s7632_s26 = sld [smem:[#allocation21_spill]] }
0x2390   : > { %s7633_s27 = sld [smem:[#allocation16_spill]]  ;;  %s7634_s28 = sld [smem:[#allocation17_spill]] }
0x2391   : > { %s7635_s29 = sld [smem:[#allocation19_spill]]  ;;  %s7636_s30 = sld [smem:[#allocation20_spill]] }
0x2392   :  { %28 = sbr.rel (!%p26_p5) target bundleno = 21 (0x15), region = 167 }
0x2399   :  { %5036 = vsyncpa [#allocation5], 1 }
0x239a   :  { %5038 = vsyncpa [#allocation5 + $0x1], 1 }
0x239b   :  { %5039 = vsyncpa [#allocation6], 1 }
0x239c   :  { %5041 = vsyncpa [#allocation6 + $0x1], 1 }

</bundles_post_ra>
